<compile_context>
chip_gen: v6e
topology: v6e:2x2x1
jax: 0.10.0
libtpu: 0.0.40
codegen_flags: <defaults>
</compile_context>

<pallas_src>
import jax
import jax.numpy as jnp
from jax.experimental import pallas as pl
from jax.experimental.pallas import tpu as pltpu


def sum_attention_dot2_kernel(bus_ref, metro_ref, taxi_ref,
                              w1t_ref, b1_ref, w2t_ref, wout_ref, bout_ref,
                              o_ref, xnat_ref):
    N = bus_ref.shape[1]                       # 1386 vertices (ragged vs sublane tiles)
    d = bus_ref.shape[2]                       # dim_out per modality
    Npad = xnat_ref.shape[0]                   # 1408 = 11 * 128
    A = xnat_ref.shape[1]                      # 3 * d

    # --- assemble all_x in natural (Npad, A) layout straight from the native inputs ---
    # Pad rows must be finite (they feed the K=Npad contraction as 0 * w1t_pad_rows), and
    # the scratch persists across grid steps, so zero them unconditionally every step.
    xnat_ref[N:Npad, :] = jnp.zeros((Npad - N, A), dtype=xnat_ref.dtype)
    xnat_ref[:N, 0 * d:1 * d] = bus_ref[0]
    xnat_ref[:N, 1 * d:2 * d] = metro_ref[0]
    xnat_ref[:N, 2 * d:3 * d] = taxi_ref[0]

    # In-kernel relayout to the lane-dense compute layout (XLU slot, idle otherwise).
    xT = jnp.transpose(xnat_ref[...], (1, 0))                      # (A, Npad)

    # att_channel Conv1d(k=1):  x_c = W1 @ all_x + b1  ->  x_c^T = all_x^T @ W1^T + b1
    # (pad lanes of xT and pad rows of w1t are zero)
    x_cT = jnp.dot(xT, w1t_ref[...], preferred_element_type=jnp.float32) + b1_ref[...]   # (A, A)

    # relation Conv1d(k=1, no bias):  x_r = W2 @ x_c  ->  x_r^T = x_c^T @ W2^T
    x_rT = jnp.dot(x_cT, w2t_ref[...], preferred_element_type=jnp.float32)               # (A, A)

    # softmax over the original last dim == axis 0 in the transposed layout
    m = jnp.max(x_rT, axis=0, keepdims=True)
    e = jnp.exp(x_rT - m)
    s = jnp.sum(e, axis=0, keepdims=True)
    scoreT = e * pl.reciprocal(s)              # exact reciprocal (kernel is not EUP-bound)

    # x = all_x @ score  ->  x^T = score^T @ all_x^T   (A, Npad): full-lane MXU result
    attT = jnp.dot(scoreT, xT, preferred_element_type=jnp.float32)
    xsT = jnp.maximum(attT, 0.0)               # ReLU; dropout = identity (eval mode)

    # outlayer Linear:  out = xs @ W_out^T + b_out  ->  out^T = W_out @ xs^T + b_out[:, None]
    outT = jnp.dot(wout_ref[...], xsT, preferred_element_type=jnp.float32) + bout_ref[...]  # (D, Npad)

    # In-kernel epilogue transpose (XLU): consumer-ready (Npad, D) slab; pad rows = b_out
    # and are sliced off by the wrapper, never exposed.
    o_ref[0] = jnp.transpose(outT, (1, 0)).astype(o_ref.dtype)      # (Npad, D)


def sum_attention_dot2(bus, metro, taxi, w_att_ch, b_att_ch, w_rel, w_out, b_out):
    """bus/metro/taxi: (B, N, dim_out) float32 (native layout). Returns (B, N, dim_out)."""
    B, N, d = bus.shape
    A = 3 * d
    D_out = w_out.shape[0]
    Npad = ((N + 127) // 128) * 128            # 1386 -> 1408 (11 x 128)

    # One-time, parameter-sized prep only (no activation-sized wrapper ops):
    w1t = jnp.pad(w_att_ch.reshape(A, N).T, ((0, Npad - N), (0, 0)))   # (Npad, A), zero pad rows
    b1 = b_att_ch.reshape(1, A)                                        # broadcast over rows
    w2t = w_rel.reshape(A, A).T                                        # (A, A)
    bout = b_out.reshape(D_out, 1)                                     # broadcast over lanes

    out_full = pl.pallas_call(
        sum_attention_dot2_kernel,
        out_shape=jax.ShapeDtypeStruct((B, Npad, D_out), jnp.float32),
        grid_spec=pltpu.PrefetchScalarGridSpec(
            num_scalar_prefetch=0,
            grid=(B,),
            in_specs=[
                pl.BlockSpec((1, N, d), lambda b: (b, 0, 0)),      # bus   (native layout)
                pl.BlockSpec((1, N, d), lambda b: (b, 0, 0)),      # metro (native layout)
                pl.BlockSpec((1, N, d), lambda b: (b, 0, 0)),      # taxi  (native layout)
                pl.BlockSpec((Npad, A), lambda b: (0, 0)),         # att_channel weight^T (resident)
                pl.BlockSpec((1, A), lambda b: (0, 0)),            # att_channel bias
                pl.BlockSpec((A, A), lambda b: (0, 0)),            # relation weight^T
                pl.BlockSpec((D_out, A), lambda b: (0, 0)),        # outlayer weight
                pl.BlockSpec((D_out, 1), lambda b: (0, 0)),        # outlayer bias
            ],
            out_specs=pl.BlockSpec((1, Npad, D_out), lambda b: (b, 0, 0)),
            scratch_shapes=[pltpu.VMEM((Npad, A), jnp.float32)],   # natural-layout all_x tile
        ),
        compiler_params=pltpu.CompilerParams(
            dimension_semantics=("parallel",),
            vmem_limit_bytes=32 * 1024 * 1024,
        ),
    )(bus, metro, taxi, w1t, b1, w2t, w_out, bout)

    # Only remaining wrapper op: drop the (never-exposed) pad rows.
    return out_full[:, :N, :]


def reference(bus, metro, taxi, w_att_ch, b_att_ch, w_rel, w_out, b_out):
    all_x = jnp.concatenate((bus, metro, taxi), axis=-1)               # (B, N, A)
    x_c = jnp.einsum("on,bnl->bol", w_att_ch.reshape(w_att_ch.shape[0], -1), all_x) \
        + b_att_ch[None, :, None]                                      # (B, A, A)
    x_r = jnp.einsum("oc,bcl->bol", w_rel.reshape(w_rel.shape[0], -1), x_c)
    score = jax.nn.softmax(x_r, axis=-1)
    x = jnp.einsum("bna,bal->bnl", all_x, score)                       # (B, N, A)
    xs = jax.nn.relu(x)
    return jnp.einsum("bnl,dl->bnd", xs, w_out) + b_out[None, None, :]


if __name__ == "__main__":
    # Module config: num_of_vertices is hardcoded to 1386 in the PyTorch module.
    dim_out = 8
    att_dim = dim_out * 3          # 24
    N = 1386                       # num_of_vertices
    B = 2

    key = jax.random.PRNGKey(0)
    k1, k2, k3, k4, k5, k6, k7, k8 = jax.random.split(key, 8)

    bus = jax.random.normal(k1, (B, N, dim_out), dtype=jnp.float32)
    metro = jax.random.normal(k2, (B, N, dim_out), dtype=jnp.float32)
    taxi = jax.random.normal(k3, (B, N, dim_out), dtype=jnp.float32)

    # deterministic parameter init (shapes match the module's __init__; PyTorch-style bounds)
    w_att_ch = jax.random.uniform(k4, (att_dim, N, 1), jnp.float32,
                                  minval=-1.0 / N ** 0.5, maxval=1.0 / N ** 0.5)       # Conv1d(N, A, 1)
    b_att_ch = jax.random.uniform(k5, (att_dim,), jnp.float32,
                                  minval=-1.0 / N ** 0.5, maxval=1.0 / N ** 0.5)
    w_rel = jax.random.uniform(k6, (att_dim, att_dim, 1), jnp.float32,
                               minval=-1.0 / att_dim ** 0.5, maxval=1.0 / att_dim ** 0.5)  # Conv1d(A, A, 1, no bias)
    w_out = jax.random.uniform(k7, (dim_out, att_dim), jnp.float32,
                               minval=-1.0 / att_dim ** 0.5, maxval=1.0 / att_dim ** 0.5)  # Linear(A, dim_out)
    b_out = jax.random.uniform(k8, (dim_out,), jnp.float32,
                               minval=-1.0 / att_dim ** 0.5, maxval=1.0 / att_dim ** 0.5)

    out = sum_attention_dot2(bus, metro, taxi, w_att_ch, b_att_ch, w_rel, w_out, b_out)
    out = jax.block_until_ready(out)

    ref = reference(bus, metro, taxi, w_att_ch, b_att_ch, w_rel, w_out, b_out)
    assert out.shape == (B, N, dim_out)
    err = float(jnp.max(jnp.abs(out - ref)))
    assert jnp.allclose(out, ref, atol=1e-4, rtol=1e-4), f"mismatch vs pure-JAX reference, max abs err {err}"

    print("KERNEL_OK")
</pallas_src>

<mosaic_0001>
module attributes {stable_mosaic.version = 11 : i64} {
  func.func @sum_attention_dot2_kernel(%arg0: i32, %arg1: memref<1x1386x8xf32, #tpu.memory_space<vmem>>, %arg2: memref<1x1386x8xf32, #tpu.memory_space<vmem>>, %arg3: memref<1x1386x8xf32, #tpu.memory_space<vmem>>, %arg4: memref<1408x24xf32, #tpu.memory_space<vmem>>, %arg5: memref<1x24xf32, #tpu.memory_space<vmem>>, %arg6: memref<24x24xf32, #tpu.memory_space<vmem>>, %arg7: memref<8x24xf32, #tpu.memory_space<vmem>>, %arg8: memref<8x1xf32, #tpu.memory_space<vmem>>, %arg9: memref<1x1408x8xf32, #tpu.memory_space<vmem>>, %arg10: memref<1408x24xf32, #tpu.memory_space<vmem>>) attributes {dimension_semantics = [#tpu.dimension_semantics<parallel>], iteration_bounds = array<i64: 2>, scalar_prefetch = 0 : i64, scratch_operands = 1 : i64, tpu.core_type = #tpu.core_type<tc>, window_params = [{transform_indices = @transform_0, window_bounds = array<i64: 1, 1386, 8>}, {transform_indices = @transform_1, window_bounds = array<i64: 1, 1386, 8>}, {transform_indices = @transform_2, window_bounds = array<i64: 1, 1386, 8>}, {pipeline_mode = #tpu.pipeline_mode<synchronous>, transform_indices = @transform_3, window_bounds = array<i64: 1408, 24>}, {pipeline_mode = #tpu.pipeline_mode<synchronous>, transform_indices = @transform_4, window_bounds = array<i64: 1, 24>}, {pipeline_mode = #tpu.pipeline_mode<synchronous>, transform_indices = @transform_5, window_bounds = array<i64: 24, 24>}, {pipeline_mode = #tpu.pipeline_mode<synchronous>, transform_indices = @transform_6, window_bounds = array<i64: 8, 24>}, {pipeline_mode = #tpu.pipeline_mode<synchronous>, transform_indices = @transform_7, window_bounds = array<i64: 8, 1>}, {transform_indices = @transform_8, window_bounds = array<i64: 1, 1408, 8>}]} {
    %cst = arith.constant 0.000000e+00 : f32
    %0 = vector.broadcast %cst : f32 to vector<22x24xf32>
    %c1386 = arith.constant 1386 : index
    %c0 = arith.constant 0 : index
    %1 = vector.load %arg10[%c1386, %c0] : memref<1408x24xf32, #tpu.memory_space<vmem>>, vector<22x24xf32>
    tpu.vector_store %arg10[%c1386, %c0], %0 {strides = array<i32>} : memref<1408x24xf32, #tpu.memory_space<vmem>>, vector<22x24xf32>,
    %c0_0 = arith.constant 0 : index
    %c0_1 = arith.constant 0 : index
    %c0_2 = arith.constant 0 : index
    %2 = vector.load %arg1[%c0_0, %c0_1, %c0_2] : memref<1x1386x8xf32, #tpu.memory_space<vmem>>, vector<1x1386x8xf32>
    %3 = vector.shape_cast %2 : vector<1x1386x8xf32> to vector<1386x8xf32>
    %c0_3 = arith.constant 0 : index
    %c0_4 = arith.constant 0 : index
    %4 = vector.load %arg10[%c0_3, %c0_4] : memref<1408x24xf32, #tpu.memory_space<vmem>>, vector<1386x8xf32>
    tpu.vector_store %arg10[%c0_3, %c0_4], %3 {strides = array<i32>} : memref<1408x24xf32, #tpu.memory_space<vmem>>, vector<1386x8xf32>,
    %c0_5 = arith.constant 0 : index
    %c0_6 = arith.constant 0 : index
    %c0_7 = arith.constant 0 : index
    %5 = vector.load %arg2[%c0_5, %c0_6, %c0_7] : memref<1x1386x8xf32, #tpu.memory_space<vmem>>, vector<1x1386x8xf32>
    %6 = vector.shape_cast %5 : vector<1x1386x8xf32> to vector<1386x8xf32>
    %c0_8 = arith.constant 0 : index
    %c8 = arith.constant 8 : index
    %7 = vector.load %arg10[%c0_8, %c8] : memref<1408x24xf32, #tpu.memory_space<vmem>>, vector<1386x8xf32>
    tpu.vector_store %arg10[%c0_8, %c8], %6 {strides = array<i32>} : memref<1408x24xf32, #tpu.memory_space<vmem>>, vector<1386x8xf32>,
    %c0_9 = arith.constant 0 : index
    %c0_10 = arith.constant 0 : index
    %c0_11 = arith.constant 0 : index
    %8 = vector.load %arg3[%c0_9, %c0_10, %c0_11] : memref<1x1386x8xf32, #tpu.memory_space<vmem>>, vector<1x1386x8xf32>
    %9 = vector.shape_cast %8 : vector<1x1386x8xf32> to vector<1386x8xf32>
    %c0_12 = arith.constant 0 : index
    %c16 = arith.constant 16 : index
    %10 = vector.load %arg10[%c0_12, %c16] : memref<1408x24xf32, #tpu.memory_space<vmem>>, vector<1386x8xf32>
    tpu.vector_store %arg10[%c0_12, %c16], %9 {strides = array<i32>} : memref<1408x24xf32, #tpu.memory_space<vmem>>, vector<1386x8xf32>,
    %c0_13 = arith.constant 0 : index
    %c0_14 = arith.constant 0 : index
    %11 = vector.load %arg10[%c0_13, %c0_14] : memref<1408x24xf32, #tpu.memory_space<vmem>>, vector<1408x24xf32>
    %12 = tpu.transpose %11, [1, 0] : vector<1408x24xf32> -> vector<24x1408xf32>
    %c0_15 = arith.constant 0 : index
    %c0_16 = arith.constant 0 : index
    %13 = vector.load %arg4[%c0_15, %c0_16] : memref<1408x24xf32, #tpu.memory_space<vmem>>, vector<1408x24xf32>
    %cst_17 = arith.constant dense<0.000000e+00> : vector<24x24xf32>
    %14 = tpu.matmul %12, %13, %cst_17 {dimension_numbers = #tpu.dot_dimension_numbers<[1], [0], [0], [1], [0, 0, 1, 1], [], []>} : vector<24x1408xf32>, vector<1408x24xf32>, vector<24x24xf32> -> vector<24x24xf32>
    %c0_18 = arith.constant 0 : index
    %c0_19 = arith.constant 0 : index
    %15 = vector.load %arg5[%c0_18, %c0_19] : memref<1x24xf32, #tpu.memory_space<vmem>>, vector<1x24xf32>
    %16 = vector.broadcast %15 : vector<1x24xf32> to vector<24x24xf32>
    %17 = arith.addf %14, %16 : vector<24x24xf32>
    %c0_20 = arith.constant 0 : index
    %c0_21 = arith.constant 0 : index
    %18 = vector.load %arg6[%c0_20, %c0_21] : memref<24x24xf32, #tpu.memory_space<vmem>>, vector<24x24xf32>
    %cst_22 = arith.constant dense<0.000000e+00> : vector<24x24xf32>
    %19 = tpu.matmul %17, %18, %cst_22 {dimension_numbers = #tpu.dot_dimension_numbers<[1], [0], [0], [1], [0, 0, 1, 1], [], []>} : vector<24x24xf32>, vector<24x24xf32>, vector<24x24xf32> -> vector<24x24xf32>
    %cst_23 = arith.constant dense<0xFF800000> : vector<24xf32>
    %20 = vector.multi_reduction <maximumf>, %19, %cst_23 [0] : vector<24x24xf32> to vector<24xf32>
    %21 = vector.shape_cast %20 : vector<24xf32> to vector<1x24xf32>
    %22 = vector.broadcast %21 : vector<1x24xf32> to vector<24x24xf32>
    %23 = arith.subf %19, %22 : vector<24x24xf32>
    %24 = math.exp %23 : vector<24x24xf32>
    %cst_24 = arith.constant dense<0.000000e+00> : vector<24xf32>
    %25 = vector.multi_reduction <add>, %24, %cst_24 [0] : vector<24x24xf32> to vector<24xf32>
    %26 = vector.shape_cast %25 : vector<24xf32> to vector<1x24xf32>
    %27 = tpu.reciprocal %26 : vector<1x24xf32> -> vector<1x24xf32>
    %28 = vector.broadcast %27 : vector<1x24xf32> to vector<24x24xf32>
    %29 = arith.mulf %24, %28 : vector<24x24xf32>
    %cst_25 = arith.constant dense<0.000000e+00> : vector<24x1408xf32>
    %30 = tpu.matmul %29, %12, %cst_25 {dimension_numbers = #tpu.dot_dimension_numbers<[1], [0], [0], [1], [0, 0, 1, 1], [], []>} : vector<24x24xf32>, vector<24x1408xf32>, vector<24x1408xf32> -> vector<24x1408xf32>
    %cst_26 = arith.constant 0.000000e+00 : f32
    %31 = vector.broadcast %cst_26 : f32 to vector<24x1408xf32>
    %32 = arith.maximumf %30, %31 : vector<24x1408xf32>
    %c0_27 = arith.constant 0 : index
    %c0_28 = arith.constant 0 : index
    %33 = vector.load %arg7[%c0_27, %c0_28] : memref<8x24xf32, #tpu.memory_space<vmem>>, vector<8x24xf32>
    %cst_29 = arith.constant dense<0.000000e+00> : vector<8x1408xf32>
    %34 = tpu.matmul %33, %32, %cst_29 {dimension_numbers = #tpu.dot_dimension_numbers<[1], [0], [0], [1], [0, 0, 1, 1], [], []>} : vector<8x24xf32>, vector<24x1408xf32>, vector<8x1408xf32> -> vector<8x1408xf32>
    %c0_30 = arith.constant 0 : index
    %c0_31 = arith.constant 0 : index
    %35 = vector.load %arg8[%c0_30, %c0_31] : memref<8x1xf32, #tpu.memory_space<vmem>>, vector<8x1xf32>
    %36 = vector.broadcast %35 : vector<8x1xf32> to vector<8x1408xf32>
    %37 = arith.addf %34, %36 : vector<8x1408xf32>
    %38 = tpu.transpose %37, [1, 0] : vector<8x1408xf32> -> vector<1408x8xf32>
    %c0_32 = arith.constant 0 : index
    %c0_33 = arith.constant 0 : index
    %c0_34 = arith.constant 0 : index
    %39 = vector.load %arg9[%c0_32, %c0_33, %c0_34] : memref<1x1408x8xf32, #tpu.memory_space<vmem>>, vector<1x1408x8xf32>
    %40 = vector.shape_cast %39 : vector<1x1408x8xf32> to vector<1408x8xf32>
    %41 = vector.shape_cast %38 : vector<1408x8xf32> to vector<1x1408x8xf32>
    tpu.vector_store %arg9[%c0_32, %c0_33, %c0_34], %41 {strides = array<i32>} : memref<1x1408x8xf32, #tpu.memory_space<vmem>>, vector<1x1408x8xf32>,
    return
  }
  func.func @transform_0(%arg0: i32) -> (i32, i32, i32) {
    %c0_i32 = arith.constant 0 : i32
    %c0_i32_0 = arith.constant 0 : i32
    %c0_i32_1 = arith.constant 0 : i32
    return %arg0, %c0_i32, %c0_i32_0 : i32, i32, i32
  }
  func.func @transform_1(%arg0: i32) -> (i32, i32, i32) {
    %c0_i32 = arith.constant 0 : i32
    %c0_i32_0 = arith.constant 0 : i32
    %c0_i32_1 = arith.constant 0 : i32
    return %arg0, %c0_i32, %c0_i32_0 : i32, i32, i32
  }
  func.func @transform_2(%arg0: i32) -> (i32, i32, i32) {
    %c0_i32 = arith.constant 0 : i32
    %c0_i32_0 = arith.constant 0 : i32
    %c0_i32_1 = arith.constant 0 : i32
    return %arg0, %c0_i32, %c0_i32_0 : i32, i32, i32
  }
  func.func @transform_3(%arg0: i32) -> (i32, i32) {
    %c0_i32 = arith.constant 0 : i32
    %c0_i32_0 = arith.constant 0 : i32
    %c0_i32_1 = arith.constant 0 : i32
    return %c0_i32, %c0_i32_0 : i32, i32
  }
  func.func @transform_4(%arg0: i32) -> (i32, i32) {
    %c0_i32 = arith.constant 0 : i32
    %c0_i32_0 = arith.constant 0 : i32
    %c0_i32_1 = arith.constant 0 : i32
    return %c0_i32, %c0_i32_0 : i32, i32
  }
  func.func @transform_5(%arg0: i32) -> (i32, i32) {
    %c0_i32 = arith.constant 0 : i32
    %c0_i32_0 = arith.constant 0 : i32
    %c0_i32_1 = arith.constant 0 : i32
    return %c0_i32, %c0_i32_0 : i32, i32
  }
  func.func @transform_6(%arg0: i32) -> (i32, i32) {
    %c0_i32 = arith.constant 0 : i32
    %c0_i32_0 = arith.constant 0 : i32
    %c0_i32_1 = arith.constant 0 : i32
    return %c0_i32, %c0_i32_0 : i32, i32
  }
  func.func @transform_7(%arg0: i32) -> (i32, i32) {
    %c0_i32 = arith.constant 0 : i32
    %c0_i32_0 = arith.constant 0 : i32
    %c0_i32_1 = arith.constant 0 : i32
    return %c0_i32, %c0_i32_0 : i32, i32
  }
  func.func @transform_8(%arg0: i32) -> (i32, i32, i32) {
    %c0_i32 = arith.constant 0 : i32
    %c0_i32_0 = arith.constant 0 : i32
    %c0_i32_1 = arith.constant 0 : i32
    return %arg0, %c0_i32, %c0_i32_0 : i32, i32, i32
  }
}

</mosaic_0001>

<bundles_post_ra>
// kernel: tpu_custom_call.1
= control target key start
LH: loop header
LB: loop body
LE: loop exit
PB: predicated region body
PF: predicated region fallthrough
CT: control target
= control target key end

     0   :  { %s6132_s27 = smov 0   ;;  %s8732_s0 = inlined_call_operand.vmem [shape: f32[2,1386,8], index: 0, kind: input, shape index: {}]   ;;  %s8733_s1 = inlined_call_operand.vmem [shape: f32[2,1386,8], index: 1, kind: input, shape index: {}]   ;;  %s8734_s2 = inlined_call_operand.vmem [shape: f32[2,1386,8], index: 2, kind: input, shape index: {}]   ;;  %s8735_s3 = inlined_call_operand.vmem [shape: f32[1408,24], index: 3, kind: input, shape index: {}]   ;;  %s8736_s4 = inlined_call_operand.vmem [shape: f32[1,24], index: 4, kind: input, shape index: {}]   ;;  %s8737_s5 = inlined_call_operand.vmem [shape: f32[24,24], index: 5, kind: input, shape index: {}]   ;;  %s8738_s6 = inlined_call_operand.vmem [shape: f32[8,24], index: 6, kind: input, shape index: {}]   ;;  %s8739_s7 = inlined_call_operand.vmem [shape: f32[8,1], index: 7, kind: input, shape index: {}]   ;;  %s8740_s8 = inlined_call_operand.vmem [shape: f32[2,1408,8], index: 8, kind: output, shape index: {}]  }
   0x1 LB: > { %s5690_s28 = sadd.s32 4294967295, %s6080_s27   ;;  %p5694_p0 = scmp.ge.s32.totalorder %s6080_s27, 1  ;;  %s6080_s27 = sphi %s6132_s27, %s18_s27  }
   0x2   : > { %p282_p1 = scmp.lt.s32.totalorder %s6080_s27, 3 }
   0x4   : > { %p283_p2 = pnand %p5694_p0, %p282_p1 }
   0x6   : > { %286 = sbr.rel (%p283_p2) target bundleno = 2564 (0xa04), region = 52 }
   0xb   : > { %p326_p3 = scmp.lt.s32.totalorder %s5690_s28, 1  ;;  %s6082_s11 = smov 8   ;;  %vm525_vm0 = vcmask 64512   ;;  %vm1571_vm1 = vcmask 130112   ;;  %vm2617_vm2 = vcmask 195712   ;;  %vm699_vm3 = vcmask 58368  }
   0xc   : > { %s6083_s18 = smov 16   ;;  %vm346_vm4 = vcmask 195584   ;;  %vm1745_vm5 = vcmask 123968   ;;  %vm2791_vm6 = vcmask 189568   ;;  %vm349_vm7 = vcmask 193536  }
   0xd   : > { %s8754_s28 = smov (!%p326_p3, %s5690_s28), 1  ;;  %vm6085_vm8 = vmmov 0  }
   0xe   : > { %s6143_s29 = smul.u32 1392, %s8754_s28 }
   0xf   : > { %s6050_s23 = smul.u32 1408, %s8754_s28 }
  0x10   : > { %s6149_s10 = scalar_lea.vmem %s8733_s1, %s6143_s29  ;;  %s6177_s14 = scalar_lea.vmem %s8732_s0, %s6143_s29 }
  0x11   : > { %v703_v0 = vld [vmem:[%s6149_s10 + $0x10] sm:$0xff]  ;;  %v701_v1 = vld [vmem:[%s6149_s10] sm:$0xff]  ;;  %v704_v2 = vld [vmem:[%s6149_s10 + $0x18] sm:$0xff]  ;;  %s6729_s17 = scalar_lea.vmem %s8734_s2, %s6143_s29  ;;  %s8366_s26 = scalar_lea.vmem %s8740_s8, %s6050_s23 }
  0x12   : > { %1053 = vrot.lane.b32.xlu1 %v703_v0, %s6082_s11  ;;  %1049 = vrot.lane.b32.xlu0 %v701_v1, %s6082_s11  ;;  %v702_v3 = vld [vmem:[%s6149_s10 + $0x8] sm:$0xff]  ;;  %v705_v5 = vld [vmem:[%s6149_s10 + $0x20] sm:$0xff] }
  0x13   : > { %v706_v4 = vld [vmem:[%s6149_s10 + $0x28] sm:$0xff]  ;;  %v708_v6 = vld [vmem:[%s6149_s10 + $0x38] sm:$0xff]  ;;  %v707_v7 = vld [vmem:[%s6149_s10 + $0x30] sm:$0xff] }
  0x14   : > { %v710_v8 = vld [vmem:[%s6149_s10 + $0x48] sm:$0xff]  ;;  %v709_v9 = vld [vmem:[%s6149_s10 + $0x40] sm:$0xff]  ;;  %v712_v10 = vld [vmem:[%s6149_s10 + $0x58] sm:$0xff] }
  0x15   : > { %v711_v11 = vld [vmem:[%s6149_s10 + $0x50] sm:$0xff]  ;;  %v351_v12 = vld [vmem:[%s6177_s14] sm:$0xff]  ;;  %v714_v13 = vld [vmem:[%s6149_s10 + $0x68] sm:$0xff] }
  0x16   : > { %1055 = vrot.lane.b32.xlu1 %v704_v2, %s6082_s11  ;;  %1051 = vrot.lane.b32.xlu0 %v702_v3, %s6082_s11  ;;  %v713_v14 = vld [vmem:[%s6149_s10 + $0x60] sm:$0xff]  ;;  %526 = vst.msk [vmem:[#allocation2] sm:$0xff] %vm525_vm0, %v351_v12  ;;  %v352_v15 = vld [vmem:[%s6177_s14 + $0x8] sm:$0xff] }
  0x17   : > { %527 = vst.msk [vmem:[#allocation2 + $0x8] sm:$0xff] %vm525_vm0, %v352_v15  ;;  %v353_v16 = vld [vmem:[%s6177_s14 + $0x10] sm:$0xff]  ;;  %v355_v17 = vld [vmem:[%s6177_s14 + $0x20] sm:$0xff]  ;;  %v354_v18 = vld [vmem:[%s6177_s14 + $0x18] sm:$0xff] }
  0x18   : > { %528 = vst.msk [vmem:[#allocation2 + $0x10] sm:$0xff] %vm525_vm0, %v353_v16  ;;  %530 = vst.msk [vmem:[#allocation2 + $0x20] sm:$0xff] %vm525_vm0, %v355_v17  ;;  %v716_v19 = vld [vmem:[%s6149_s10 + $0x78] sm:$0xff]  ;;  %v357_v20 = vld [vmem:[%s6177_s14 + $0x30] sm:$0xff] }
  0x19   : > { %529 = vst.msk [vmem:[#allocation2 + $0x18] sm:$0xff] %vm525_vm0, %v354_v18  ;;  %v715_v21 = vld [vmem:[%s6149_s10 + $0x70] sm:$0xff]  ;;  %532 = vst.msk [vmem:[#allocation2 + $0x30] sm:$0xff] %vm525_vm0, %v357_v20  ;;  %v356_v22 = vld [vmem:[%s6177_s14 + $0x28] sm:$0xff] }
  0x1a   : > { %1059 = vrot.lane.b32.xlu1 %v706_v4, %s6082_s11  ;;  %1057 = vrot.lane.b32.xlu0 %v705_v5, %s6082_s11  ;;  %v359_v23 = vld [vmem:[%s6177_s14 + $0x40] sm:$0xff]  ;;  %531 = vst.msk [vmem:[#allocation2 + $0x28] sm:$0xff] %vm525_vm0, %v356_v22  ;;  %v358_v24 = vld [vmem:[%s6177_s14 + $0x38] sm:$0xff] }
  0x1b   : > { %534 = vst.msk [vmem:[#allocation2 + $0x40] sm:$0xff] %vm525_vm0, %v359_v23  ;;  %533 = vst.msk [vmem:[#allocation2 + $0x38] sm:$0xff] %vm525_vm0, %v358_v24  ;;  %v361_v25 = vld [vmem:[%s6177_s14 + $0x50] sm:$0xff]  ;;  %v360_v26 = vld [vmem:[%s6177_s14 + $0x48] sm:$0xff] }
  0x1c   : > { %536 = vst.msk [vmem:[#allocation2 + $0x50] sm:$0xff] %vm525_vm0, %v361_v25  ;;  %v363_v27 = vld [vmem:[%s6177_s14 + $0x60] sm:$0xff]  ;;  %v718_v28 = vld [vmem:[%s6149_s10 + $0x88] sm:$0xff]  ;;  %535 = vst.msk [vmem:[#allocation2 + $0x48] sm:$0xff] %vm525_vm0, %v360_v26 }
  0x1d   : > { %v717_v29 = vld [vmem:[%s6149_s10 + $0x80] sm:$0xff]  ;;  %538 = vst.msk [vmem:[#allocation2 + $0x60] sm:$0xff] %vm525_vm0, %v363_v27  ;;  %v362_v30 = vld [vmem:[%s6177_s14 + $0x58] sm:$0xff]  ;;  %v365_v31 = vld [vmem:[%s6177_s14 + $0x70] sm:$0xff] }
  0x1e   : > { %1063 = vrot.lane.b32.xlu1 %v708_v6, %s6082_s11  ;;  %1061 = vrot.lane.b32.xlu0 %v707_v7, %s6082_s11  ;;  %537 = vst.msk [vmem:[#allocation2 + $0x58] sm:$0xff] %vm525_vm0, %v362_v30  ;;  %540 = vst.msk [vmem:[#allocation2 + $0x70] sm:$0xff] %vm525_vm0, %v365_v31  ;;  %v364_v32 = vld [vmem:[%s6177_s14 + $0x68] sm:$0xff]  ;;  %v367_v33 = vld [vmem:[%s6177_s14 + $0x80] sm:$0xff] }
  0x1f   : > { %539 = vst.msk [vmem:[#allocation2 + $0x68] sm:$0xff] %vm525_vm0, %v364_v32  ;;  %542 = vst.msk [vmem:[#allocation2 + $0x80] sm:$0xff] %vm525_vm0, %v367_v33  ;;  %v366_v34 = vld [vmem:[%s6177_s14 + $0x78] sm:$0xff]  ;;  %v719_v36 = vld [vmem:[%s6149_s10 + $0x90] sm:$0xff] }
  0x20   : > { %v720_v35 = vld [vmem:[%s6149_s10 + $0x98] sm:$0xff]  ;;  %541 = vst.msk [vmem:[#allocation2 + $0x78] sm:$0xff] %vm525_vm0, %v366_v34  ;;  %v369_v37 = vld [vmem:[%s6177_s14 + $0x90] sm:$0xff]  ;;  %v368_v38 = vld [vmem:[%s6177_s14 + $0x88] sm:$0xff] }
  0x21   : > { %544 = vst.msk [vmem:[#allocation2 + $0x90] sm:$0xff] %vm525_vm0, %v369_v37  ;;  %v371_v39 = vld [vmem:[%s6177_s14 + $0xa0] sm:$0xff]  ;;  %543 = vst.msk [vmem:[#allocation2 + $0x88] sm:$0xff] %vm525_vm0, %v368_v38  ;;  %v370_v40 = vld [vmem:[%s6177_s14 + $0x98] sm:$0xff] }
  0x22   : > { %1067 = vrot.lane.b32.xlu1 %v710_v8, %s6082_s11  ;;  %1065 = vrot.lane.b32.xlu0 %v709_v9, %s6082_s11  ;;  %546 = vst.msk [vmem:[#allocation2 + $0xa0] sm:$0xff] %vm525_vm0, %v371_v39  ;;  %v373_v41 = vld [vmem:[%s6177_s14 + $0xb0] sm:$0xff]  ;;  %v722_v42 = vld [vmem:[%s6149_s10 + $0xa8] sm:$0xff]  ;;  %545 = vst.msk [vmem:[#allocation2 + $0x98] sm:$0xff] %vm525_vm0, %v370_v40 }
  0x23   : > { %548 = vst.msk [vmem:[#allocation2 + $0xb0] sm:$0xff] %vm525_vm0, %v373_v41  ;;  %v721_v43 = vld [vmem:[%s6149_s10 + $0xa0] sm:$0xff]  ;;  %v372_v44 = vld [vmem:[%s6177_s14 + $0xa8] sm:$0xff]  ;;  %v374_v46 = vld [vmem:[%s6177_s14 + $0xb8] sm:$0xff] }
  0x24   : > { %v375_v45 = vld [vmem:[%s6177_s14 + $0xc0] sm:$0xff]  ;;  %547 = vst.msk [vmem:[#allocation2 + $0xa8] sm:$0xff] %vm525_vm0, %v372_v44  ;;  %v377_v47 = vld [vmem:[%s6177_s14 + $0xd0] sm:$0xff]  ;;  %549 = vst.msk [vmem:[#allocation2 + $0xb8] sm:$0xff] %vm525_vm0, %v374_v46 }
  0x25   : > { %550 = vst.msk [vmem:[#allocation2 + $0xc0] sm:$0xff] %vm525_vm0, %v375_v45  ;;  %552 = vst.msk [vmem:[#allocation2 + $0xd0] sm:$0xff] %vm525_vm0, %v377_v47  ;;  %v376_v48 = vld [vmem:[%s6177_s14 + $0xc8] sm:$0xff]  ;;  %v724_v49 = vld [vmem:[%s6149_s10 + $0xb8] sm:$0xff] }
  0x26   : > { %1071 = vrot.lane.b32.xlu1 %v712_v10, %s6082_s11  ;;  %1069 = vrot.lane.b32.xlu0 %v711_v11, %s6082_s11  ;;  %v723_v50 = vld [vmem:[%s6149_s10 + $0xb0] sm:$0xff]  ;;  %551 = vst.msk [vmem:[#allocation2 + $0xc8] sm:$0xff] %vm525_vm0, %v376_v48  ;;  %v379_v51 = vld [vmem:[%s6177_s14 + $0xe0] sm:$0xff] }
  0x27   : > { %554 = vst.msk [vmem:[#allocation2 + $0xe0] sm:$0xff] %vm525_vm0, %v379_v51  ;;  %v378_v52 = vld [vmem:[%s6177_s14 + $0xd8] sm:$0xff]  ;;  %v726_v53 = vld [vmem:[%s6149_s10 + $0xc8] sm:$0xff]  ;;  %v725_v54 = vld [vmem:[%s6149_s10 + $0xc0] sm:$0xff] }
  0x28   : > { %553 = vst.msk [vmem:[#allocation2 + $0xd8] sm:$0xff] %vm525_vm0, %v378_v52  ;;  %v381_v55 = vld [vmem:[%s6177_s14 + $0xf0] sm:$0xff]  ;;  %v380_v56 = vld [vmem:[%s6177_s14 + $0xe8] sm:$0xff]  ;;  %v728_v57 = vld [vmem:[%s6149_s10 + $0xd8] sm:$0xff] }
  0x29   : > { %556 = vst.msk [vmem:[#allocation2 + $0xf0] sm:$0xff] %vm525_vm0, %v381_v55  ;;  %v727_v58 = vld [vmem:[%s6149_s10 + $0xd0] sm:$0xff]  ;;  %555 = vst.msk [vmem:[#allocation2 + $0xe8] sm:$0xff] %vm525_vm0, %v380_v56  ;;  %v383_v59 = vld [vmem:[%s6177_s14 + $0x100] sm:$0xff] }
  0x2a   : > { %1075 = vrot.lane.b32.xlu1 %v714_v13, %s6082_s11  ;;  %1073 = vrot.lane.b32.xlu0 %v713_v14, %s6082_s11  ;;  %558 = vst.msk [vmem:[#allocation2 + $0x100] sm:$0xff] %vm525_vm0, %v383_v59  ;;  %v382_v60 = vld [vmem:[%s6177_s14 + $0xf8] sm:$0xff]  ;;  %v730_v61 = vld [vmem:[%s6149_s10 + $0xe8] sm:$0xff] }
  0x2b   : > { %v729_v62 = vld [vmem:[%s6149_s10 + $0xe0] sm:$0xff]  ;;  %557 = vst.msk [vmem:[#allocation2 + $0xf8] sm:$0xff] %vm525_vm0, %v382_v60  ;;  %v385_v63 = vld [vmem:[%s6177_s14 + $0x110] sm:$0xff]  ;;  %v384_v0 = vld [vmem:[%s6177_s14 + $0x108] sm:$0xff] }
  0x2c   : > { %560 = vst.msk [vmem:[#allocation2 + $0x110] sm:$0xff] %vm525_vm0, %v385_v63  ;;  %v732_v1 = vld [vmem:[%s6149_s10 + $0xf8] sm:$0xff]  ;;  %v731_v2 = vld [vmem:[%s6149_s10 + $0xf0] sm:$0xff]  ;;  %559 = vst.msk [vmem:[#allocation2 + $0x108] sm:$0xff] %vm525_vm0, %v384_v0 }
  0x2d   : > { %v387_v3 = vld [vmem:[%s6177_s14 + $0x120] sm:$0xff]  ;;  %v386_v4 = vld [vmem:[%s6177_s14 + $0x118] sm:$0xff]  ;;  %v734_v5 = vld [vmem:[%s6149_s10 + $0x108] sm:$0xff] }
  0x2e   : > { %1079 = vrot.lane.b32.xlu1 %v716_v19, %s6082_s11  ;;  %1077 = vrot.lane.b32.xlu0 %v715_v21, %s6082_s11  ;;  %562 = vst.msk [vmem:[#allocation2 + $0x120] sm:$0xff] %vm525_vm0, %v387_v3  ;;  %v733_v6 = vld [vmem:[%s6149_s10 + $0x100] sm:$0xff]  ;;  %561 = vst.msk [vmem:[#allocation2 + $0x118] sm:$0xff] %vm525_vm0, %v386_v4  ;;  %v389_v7 = vld [vmem:[%s6177_s14 + $0x130] sm:$0xff] }
  0x2f   : > { %564 = vst.msk [vmem:[#allocation2 + $0x130] sm:$0xff] %vm525_vm0, %v389_v7  ;;  %v388_v8 = vld [vmem:[%s6177_s14 + $0x128] sm:$0xff]  ;;  %v736_v9 = vld [vmem:[%s6149_s10 + $0x118] sm:$0xff]  ;;  %v735_v10 = vld [vmem:[%s6149_s10 + $0x110] sm:$0xff] }
  0x30   : > { %563 = vst.msk [vmem:[#allocation2 + $0x128] sm:$0xff] %vm525_vm0, %v388_v8  ;;  %v391_v11 = vld [vmem:[%s6177_s14 + $0x140] sm:$0xff]  ;;  %v390_v12 = vld [vmem:[%s6177_s14 + $0x138] sm:$0xff]  ;;  %v738_v13 = vld [vmem:[%s6149_s10 + $0x128] sm:$0xff] }
  0x31   : > { %566 = vst.msk [vmem:[#allocation2 + $0x140] sm:$0xff] %vm525_vm0, %v391_v11  ;;  %v737_v14 = vld [vmem:[%s6149_s10 + $0x120] sm:$0xff]  ;;  %565 = vst.msk [vmem:[#allocation2 + $0x138] sm:$0xff] %vm525_vm0, %v390_v12  ;;  %v393_v15 = vld [vmem:[%s6177_s14 + $0x150] sm:$0xff] }
  0x32   : > { %1083 = vrot.lane.b32.xlu1 %v718_v28, %s6082_s11  ;;  %1081 = vrot.lane.b32.xlu0 %v717_v29, %s6082_s11  ;;  %568 = vst.msk [vmem:[#allocation2 + $0x150] sm:$0xff] %vm525_vm0, %v393_v15  ;;  %v392_v16 = vld [vmem:[%s6177_s14 + $0x148] sm:$0xff]  ;;  %v740_v17 = vld [vmem:[%s6149_s10 + $0x138] sm:$0xff] }
  0x33   : > { %v739_v18 = vld [vmem:[%s6149_s10 + $0x130] sm:$0xff]  ;;  %567 = vst.msk [vmem:[#allocation2 + $0x148] sm:$0xff] %vm525_vm0, %v392_v16  ;;  %v395_v19 = vld [vmem:[%s6177_s14 + $0x160] sm:$0xff]  ;;  %v394_v20 = vld [vmem:[%s6177_s14 + $0x158] sm:$0xff] }
  0x34   : > { %570 = vst.msk [vmem:[#allocation2 + $0x160] sm:$0xff] %vm525_vm0, %v395_v19  ;;  %v742_v21 = vld [vmem:[%s6149_s10 + $0x148] sm:$0xff]  ;;  %v741_v22 = vld [vmem:[%s6149_s10 + $0x140] sm:$0xff]  ;;  %569 = vst.msk [vmem:[#allocation2 + $0x158] sm:$0xff] %vm525_vm0, %v394_v20 }
  0x35   : > { %v397_v23 = vld [vmem:[%s6177_s14 + $0x170] sm:$0xff]  ;;  %v396_v24 = vld [vmem:[%s6177_s14 + $0x168] sm:$0xff]  ;;  %v744_v25 = vld [vmem:[%s6149_s10 + $0x158] sm:$0xff] }
  0x36   : > { %1087 = vrot.lane.b32.xlu1 %v720_v35, %s6082_s11  ;;  %1085 = vrot.lane.b32.xlu0 %v719_v36, %s6082_s11  ;;  %572 = vst.msk [vmem:[#allocation2 + $0x170] sm:$0xff] %vm525_vm0, %v397_v23  ;;  %v743_v26 = vld [vmem:[%s6149_s10 + $0x150] sm:$0xff]  ;;  %571 = vst.msk [vmem:[#allocation2 + $0x168] sm:$0xff] %vm525_vm0, %v396_v24  ;;  %v399_v27 = vld [vmem:[%s6177_s14 + $0x180] sm:$0xff] }
  0x37   : > { %574 = vst.msk [vmem:[#allocation2 + $0x180] sm:$0xff] %vm525_vm0, %v399_v27  ;;  %v398_v28 = vld [vmem:[%s6177_s14 + $0x178] sm:$0xff]  ;;  %v746_v29 = vld [vmem:[%s6149_s10 + $0x168] sm:$0xff]  ;;  %v745_v30 = vld [vmem:[%s6149_s10 + $0x160] sm:$0xff] }
  0x38   : > { %573 = vst.msk [vmem:[#allocation2 + $0x178] sm:$0xff] %vm525_vm0, %v398_v28  ;;  %v401_v31 = vld [vmem:[%s6177_s14 + $0x190] sm:$0xff]  ;;  %v400_v32 = vld [vmem:[%s6177_s14 + $0x188] sm:$0xff]  ;;  %v748_v33 = vld [vmem:[%s6149_s10 + $0x178] sm:$0xff] }
  0x39   : > { %576 = vst.msk [vmem:[#allocation2 + $0x190] sm:$0xff] %vm525_vm0, %v401_v31  ;;  %v747_v34 = vld [vmem:[%s6149_s10 + $0x170] sm:$0xff]  ;;  %575 = vst.msk [vmem:[#allocation2 + $0x188] sm:$0xff] %vm525_vm0, %v400_v32  ;;  %v403_v35 = vld [vmem:[%s6177_s14 + $0x1a0] sm:$0xff] }
  0x3a   : > { %1091 = vrot.lane.b32.xlu1 %v722_v42, %s6082_s11  ;;  %1089 = vrot.lane.b32.xlu0 %v721_v43, %s6082_s11  ;;  %578 = vst.msk [vmem:[#allocation2 + $0x1a0] sm:$0xff] %vm525_vm0, %v403_v35  ;;  %v402_v36 = vld [vmem:[%s6177_s14 + $0x198] sm:$0xff]  ;;  %v750_v37 = vld [vmem:[%s6149_s10 + $0x188] sm:$0xff] }
  0x3b   : > { %v749_v38 = vld [vmem:[%s6149_s10 + $0x180] sm:$0xff]  ;;  %577 = vst.msk [vmem:[#allocation2 + $0x198] sm:$0xff] %vm525_vm0, %v402_v36  ;;  %v405_v39 = vld [vmem:[%s6177_s14 + $0x1b0] sm:$0xff]  ;;  %v404_v40 = vld [vmem:[%s6177_s14 + $0x1a8] sm:$0xff] }
  0x3c   : > { %580 = vst.msk [vmem:[#allocation2 + $0x1b0] sm:$0xff] %vm525_vm0, %v405_v39  ;;  %v752_v41 = vld [vmem:[%s6149_s10 + $0x198] sm:$0xff]  ;;  %v751_v42 = vld [vmem:[%s6149_s10 + $0x190] sm:$0xff]  ;;  %579 = vst.msk [vmem:[#allocation2 + $0x1a8] sm:$0xff] %vm525_vm0, %v404_v40 }
  0x3d   : > { %v407_v43 = vld [vmem:[%s6177_s14 + $0x1c0] sm:$0xff]  ;;  %v406_v44 = vld [vmem:[%s6177_s14 + $0x1b8] sm:$0xff]  ;;  %v754_v45 = vld [vmem:[%s6149_s10 + $0x1a8] sm:$0xff] }
  0x3e   : > { %1095 = vrot.lane.b32.xlu1 %v724_v49, %s6082_s11  ;;  %1093 = vrot.lane.b32.xlu0 %v723_v50, %s6082_s11  ;;  %582 = vst.msk [vmem:[#allocation2 + $0x1c0] sm:$0xff] %vm525_vm0, %v407_v43  ;;  %v753_v46 = vld [vmem:[%s6149_s10 + $0x1a0] sm:$0xff]  ;;  %581 = vst.msk [vmem:[#allocation2 + $0x1b8] sm:$0xff] %vm525_vm0, %v406_v44  ;;  %v409_v47 = vld [vmem:[%s6177_s14 + $0x1d0] sm:$0xff] }
  0x3f   : > { %584 = vst.msk [vmem:[#allocation2 + $0x1d0] sm:$0xff] %vm525_vm0, %v409_v47  ;;  %v408_v48 = vld [vmem:[%s6177_s14 + $0x1c8] sm:$0xff]  ;;  %v756_v49 = vld [vmem:[%s6149_s10 + $0x1b8] sm:$0xff]  ;;  %v755_v50 = vld [vmem:[%s6149_s10 + $0x1b0] sm:$0xff] }
  0x40   : > { %583 = vst.msk [vmem:[#allocation2 + $0x1c8] sm:$0xff] %vm525_vm0, %v408_v48  ;;  %v411_v51 = vld [vmem:[%s6177_s14 + $0x1e0] sm:$0xff]  ;;  %v410_v52 = vld [vmem:[%s6177_s14 + $0x1d8] sm:$0xff]  ;;  %v413_v55 = vld [vmem:[%s6177_s14 + $0x1f0] sm:$0xff] }
  0x41   : > { %586 = vst.msk [vmem:[#allocation2 + $0x1e0] sm:$0xff] %vm525_vm0, %v411_v51  ;;  %585 = vst.msk [vmem:[#allocation2 + $0x1d8] sm:$0xff] %vm525_vm0, %v410_v52  ;;  %v412_v56 = vld [vmem:[%s6177_s14 + $0x1e8] sm:$0xff]  ;;  %v415_v59 = vld [vmem:[%s6177_s14 + $0x200] sm:$0xff] }
  0x42   : > { %1099 = vrot.lane.b32.xlu1 %v726_v53, %s6082_s11  ;;  %1097 = vrot.lane.b32.xlu0 %v725_v54, %s6082_s11  ;;  %v758_v53 = vld [vmem:[%s6149_s10 + $0x1c8] sm:$0xff]  ;;  %v757_v54 = vld [vmem:[%s6149_s10 + $0x1c0] sm:$0xff]  ;;  %588 = vst.msk [vmem:[#allocation2 + $0x1f0] sm:$0xff] %vm525_vm0, %v413_v55  ;;  %587 = vst.msk [vmem:[#allocation2 + $0x1e8] sm:$0xff] %vm525_vm0, %v412_v56 }
  0x43   : > { %590 = vst.msk [vmem:[#allocation2 + $0x200] sm:$0xff] %vm525_vm0, %v415_v59  ;;  %v762_v63 = vld [vmem:[%s6149_s10 + $0x1e8] sm:$0xff]  ;;  %v761_v0 = vld [vmem:[%s6149_s10 + $0x1e0] sm:$0xff] }
  0x44   : > { %v416_v4 = vld [vmem:[%s6177_s14 + $0x208] sm:$0xff]  ;;  %v419_v7 = vld [vmem:[%s6177_s14 + $0x220] sm:$0xff] }
  0x45   : > { %591 = vst.msk [vmem:[#allocation2 + $0x208] sm:$0xff] %vm525_vm0, %v416_v4  ;;  %594 = vst.msk [vmem:[#allocation2 + $0x220] sm:$0xff] %vm525_vm0, %v419_v7  ;;  %v766_v11 = vld [vmem:[%s6149_s10 + $0x208] sm:$0xff]  ;;  %v765_v12 = vld [vmem:[%s6149_s10 + $0x200] sm:$0xff] }
  0x46   : > { %1103 = vrot.lane.b32.xlu1 %v728_v57, %s6082_s11  ;;  %1101 = vrot.lane.b32.xlu0 %v727_v58, %s6082_s11  ;;  %v760_v57 = vld [vmem:[%s6149_s10 + $0x1d8] sm:$0xff]  ;;  %v759_v58 = vld [vmem:[%s6149_s10 + $0x1d0] sm:$0xff] }
  0x47   : > { %v420_v16 = vld [vmem:[%s6177_s14 + $0x228] sm:$0xff]  ;;  %v423_v19 = vld [vmem:[%s6177_s14 + $0x240] sm:$0xff] }
  0x48   : > { %595 = vst.msk [vmem:[#allocation2 + $0x228] sm:$0xff] %vm525_vm0, %v420_v16  ;;  %598 = vst.msk [vmem:[#allocation2 + $0x240] sm:$0xff] %vm525_vm0, %v423_v19  ;;  %v770_v23 = vld [vmem:[%s6149_s10 + $0x228] sm:$0xff]  ;;  %v769_v24 = vld [vmem:[%s6149_s10 + $0x220] sm:$0xff] }
  0x49   : > { %v424_v28 = vld [vmem:[%s6177_s14 + $0x248] sm:$0xff]  ;;  %v427_v31 = vld [vmem:[%s6177_s14 + $0x260] sm:$0xff] }
  0x4a   : > { %1107 = vrot.lane.b32.xlu1 %v730_v61, %s6082_s11  ;;  %1105 = vrot.lane.b32.xlu0 %v729_v62, %s6082_s11  ;;  %v414_v62 = vld [vmem:[%s6177_s14 + $0x1f8] sm:$0xff]  ;;  %599 = vst.msk [vmem:[#allocation2 + $0x248] sm:$0xff] %vm525_vm0, %v424_v28  ;;  %602 = vst.msk [vmem:[#allocation2 + $0x260] sm:$0xff] %vm525_vm0, %v427_v31  ;;  %v774_v35 = vld [vmem:[%s6149_s10 + $0x248] sm:$0xff] }
  0x4b   : > { %589 = vst.msk [vmem:[#allocation2 + $0x1f8] sm:$0xff] %vm525_vm0, %v414_v62  ;;  %v773_v36 = vld [vmem:[%s6149_s10 + $0x240] sm:$0xff]  ;;  %v428_v40 = vld [vmem:[%s6177_s14 + $0x268] sm:$0xff] }
  0x4c   : > { %603 = vst.msk [vmem:[#allocation2 + $0x268] sm:$0xff] %vm525_vm0, %v428_v40  ;;  %v431_v43 = vld [vmem:[%s6177_s14 + $0x280] sm:$0xff]  ;;  %v778_v47 = vld [vmem:[%s6149_s10 + $0x268] sm:$0xff] }
  0x4d   : > { %606 = vst.msk [vmem:[#allocation2 + $0x280] sm:$0xff] %vm525_vm0, %v431_v43  ;;  %v777_v48 = vld [vmem:[%s6149_s10 + $0x260] sm:$0xff]  ;;  %v432_v52 = vld [vmem:[%s6177_s14 + $0x288] sm:$0xff] }
  0x4e   : > { %1111 = vrot.lane.b32.xlu1 %v732_v1, %s6082_s11  ;;  %1109 = vrot.lane.b32.xlu0 %v731_v2, %s6082_s11  ;;  %v417_v1 = vld [vmem:[%s6177_s14 + $0x210] sm:$0xff]  ;;  %607 = vst.msk [vmem:[#allocation2 + $0x288] sm:$0xff] %vm525_vm0, %v432_v52  ;;  %v435_v55 = vld [vmem:[%s6177_s14 + $0x2a0] sm:$0xff] }
  0x4f   : > { %592 = vst.msk [vmem:[#allocation2 + $0x210] sm:$0xff] %vm525_vm0, %v417_v1  ;;  %610 = vst.msk [vmem:[#allocation2 + $0x2a0] sm:$0xff] %vm525_vm0, %v435_v55  ;;  %v782_v59 = vld [vmem:[%s6149_s10 + $0x288] sm:$0xff]  ;;  %v784_v1 = vld [vmem:[%s6149_s10 + $0x298] sm:$0xff] }
  0x50   : > { %v786_v7 = vld [vmem:[%s6149_s10 + $0x2a8] sm:$0xff] }
  0x51   : > { %v790_v19 = vld [vmem:[%s6149_s10 + $0x2c8] sm:$0xff] }
  0x52   : > { %1115 = vrot.lane.b32.xlu1 %v734_v5, %s6082_s11  ;;  %1113 = vrot.lane.b32.xlu0 %v733_v6, %s6082_s11  ;;  %v764_v5 = vld [vmem:[%s6149_s10 + $0x1f8] sm:$0xff]  ;;  %v763_v6 = vld [vmem:[%s6149_s10 + $0x1f0] sm:$0xff] }
  0x53   : > { %v794_v31 = vld [vmem:[%s6149_s10 + $0x2e8] sm:$0xff] }
  0x54   : > { %v798_v43 = vld [vmem:[%s6149_s10 + $0x308] sm:$0xff] }
  0x55   : > { %v802_v55 = vld [vmem:[%s6149_s10 + $0x328] sm:$0xff] }
  0x56   : > { %1119 = vrot.lane.b32.xlu1 %v736_v9, %s6082_s11  ;;  %1117 = vrot.lane.b32.xlu0 %v735_v10, %s6082_s11  ;;  %v418_v10 = vld [vmem:[%s6177_s14 + $0x218] sm:$0xff] }
  0x57   : > { %593 = vst.msk [vmem:[#allocation2 + $0x218] sm:$0xff] %vm525_vm0, %v418_v10 }
  0x5a   : > { %1123 = vrot.lane.b32.xlu1 %v738_v13, %s6082_s11  ;;  %1121 = vrot.lane.b32.xlu0 %v737_v14, %s6082_s11  ;;  %v421_v13 = vld [vmem:[%s6177_s14 + $0x230] sm:$0xff] }
  0x5b   : > { %596 = vst.msk [vmem:[#allocation2 + $0x230] sm:$0xff] %vm525_vm0, %v421_v13  ;;  %v788_v13 = vld [vmem:[%s6149_s10 + $0x2b8] sm:$0xff] }
  0x5e   : > { %1127 = vrot.lane.b32.xlu1 %v740_v17, %s6082_s11  ;;  %1125 = vrot.lane.b32.xlu0 %v739_v18, %s6082_s11  ;;  %v768_v17 = vld [vmem:[%s6149_s10 + $0x218] sm:$0xff]  ;;  %v767_v18 = vld [vmem:[%s6149_s10 + $0x210] sm:$0xff] }
  0x62   : > { %1131 = vrot.lane.b32.xlu1 %v742_v21, %s6082_s11  ;;  %1129 = vrot.lane.b32.xlu0 %v741_v22, %s6082_s11  ;;  %v422_v22 = vld [vmem:[%s6177_s14 + $0x238] sm:$0xff] }
  0x63   : > { %597 = vst.msk [vmem:[#allocation2 + $0x238] sm:$0xff] %vm525_vm0, %v422_v22 }
  0x66   : > { %1135 = vrot.lane.b32.xlu1 %v744_v25, %s6082_s11  ;;  %1133 = vrot.lane.b32.xlu0 %v743_v26, %s6082_s11  ;;  %v425_v25 = vld [vmem:[%s6177_s14 + $0x250] sm:$0xff] }
  0x67   : > { %600 = vst.msk [vmem:[#allocation2 + $0x250] sm:$0xff] %vm525_vm0, %v425_v25  ;;  %v792_v25 = vld [vmem:[%s6149_s10 + $0x2d8] sm:$0xff] }
  0x6a   : > { %1139 = vrot.lane.b32.xlu1 %v746_v29, %s6082_s11  ;;  %1137 = vrot.lane.b32.xlu0 %v745_v30, %s6082_s11  ;;  %v772_v29 = vld [vmem:[%s6149_s10 + $0x238] sm:$0xff]  ;;  %v771_v30 = vld [vmem:[%s6149_s10 + $0x230] sm:$0xff] }
  0x6e   : > { %1143 = vrot.lane.b32.xlu1 %v748_v33, %s6082_s11  ;;  %1141 = vrot.lane.b32.xlu0 %v747_v34, %s6082_s11  ;;  %v426_v34 = vld [vmem:[%s6177_s14 + $0x258] sm:$0xff] }
  0x6f   : > { %601 = vst.msk [vmem:[#allocation2 + $0x258] sm:$0xff] %vm525_vm0, %v426_v34 }
  0x72   : > { %1147 = vrot.lane.b32.xlu1 %v750_v37, %s6082_s11  ;;  %1145 = vrot.lane.b32.xlu0 %v749_v38, %s6082_s11  ;;  %v429_v37 = vld [vmem:[%s6177_s14 + $0x270] sm:$0xff] }
  0x73   : > { %604 = vst.msk [vmem:[#allocation2 + $0x270] sm:$0xff] %vm525_vm0, %v429_v37  ;;  %v796_v37 = vld [vmem:[%s6149_s10 + $0x2f8] sm:$0xff] }
  0x76   : > { %1151 = vrot.lane.b32.xlu1 %v752_v41, %s6082_s11  ;;  %1149 = vrot.lane.b32.xlu0 %v751_v42, %s6082_s11  ;;  %v776_v41 = vld [vmem:[%s6149_s10 + $0x258] sm:$0xff]  ;;  %v775_v42 = vld [vmem:[%s6149_s10 + $0x250] sm:$0xff] }
  0x7a   : > { %1155 = vrot.lane.b32.xlu1 %v754_v45, %s6082_s11  ;;  %1153 = vrot.lane.b32.xlu0 %v753_v46, %s6082_s11  ;;  %v430_v46 = vld [vmem:[%s6177_s14 + $0x278] sm:$0xff] }
  0x7b   : > { %605 = vst.msk [vmem:[#allocation2 + $0x278] sm:$0xff] %vm525_vm0, %v430_v46 }
  0x7e   : > { %1159 = vrot.lane.b32.xlu1 %v756_v49, %s6082_s11  ;;  %1157 = vrot.lane.b32.xlu0 %v755_v50, %s6082_s11  ;;  %v433_v49 = vld [vmem:[%s6177_s14 + $0x290] sm:$0xff] }
  0x7f   : > { %608 = vst.msk [vmem:[#allocation2 + $0x290] sm:$0xff] %vm525_vm0, %v433_v49  ;;  %v800_v49 = vld [vmem:[%s6149_s10 + $0x318] sm:$0xff] }
  0x82   : > { %1163 = vrot.lane.b32.xlu1 %v758_v53, %s6082_s11  ;;  %1161 = vrot.lane.b32.xlu0 %v757_v54, %s6082_s11  ;;  %v780_v53 = vld [vmem:[%s6149_s10 + $0x278] sm:$0xff]  ;;  %v779_v54 = vld [vmem:[%s6149_s10 + $0x270] sm:$0xff] }
  0x84   : > { %v1050_v60 = vpop.permute.xlu0 %1049  ;;  %v1054_v61 = vpop.permute.xlu1 %1053 }
  0x85   : > { %1572 = vst.msk [vmem:[#allocation2] sm:$0xff] %vm1571_vm1, %v1050_v60  ;;  %1574 = vst.msk [vmem:[#allocation2 + $0x10] sm:$0xff] %vm1571_vm1, %v1054_v61  ;;  %v781_v60 = vld [vmem:[%s6149_s10 + $0x280] sm:$0xff]  ;;  %v437_v61 = vld [vmem:[%s6177_s14 + $0x2b0] sm:$0xff] }
  0x86   : > { %1167 = vrot.lane.b32.xlu1 %v760_v57, %s6082_s11  ;;  %1165 = vrot.lane.b32.xlu0 %v759_v58, %s6082_s11  ;;  %v434_v58 = vld [vmem:[%s6177_s14 + $0x298] sm:$0xff]  ;;  %612 = vst.msk [vmem:[#allocation2 + $0x2b0] sm:$0xff] %vm525_vm0, %v437_v61 }
  0x87   : > { %609 = vst.msk [vmem:[#allocation2 + $0x298] sm:$0xff] %vm525_vm0, %v434_v58  ;;  %v804_v61 = vld [vmem:[%s6149_s10 + $0x338] sm:$0xff] }
  0x88   : > { %v1052_v2 = vpop.permute.xlu0 %1051  ;;  %v1056_v3 = vpop.permute.xlu1 %1055 }
  0x89   : > { %1573 = vst.msk [vmem:[#allocation2 + $0x8] sm:$0xff] %vm1571_vm1, %v1052_v2  ;;  %1575 = vst.msk [vmem:[#allocation2 + $0x18] sm:$0xff] %vm1571_vm1, %v1056_v3  ;;  %v783_v2 = vld [vmem:[%s6149_s10 + $0x290] sm:$0xff]  ;;  %v439_v3 = vld [vmem:[%s6177_s14 + $0x2c0] sm:$0xff] }
  0x8a   : > { %1171 = vrot.lane.b32.xlu1 %v762_v63, %s6082_s11  ;;  %1169 = vrot.lane.b32.xlu0 %v761_v0, %s6082_s11  ;;  %v436_v0 = vld [vmem:[%s6177_s14 + $0x2a8] sm:$0xff]  ;;  %614 = vst.msk [vmem:[#allocation2 + $0x2c0] sm:$0xff] %vm525_vm0, %v439_v3 }
  0x8b   : > { %611 = vst.msk [vmem:[#allocation2 + $0x2a8] sm:$0xff] %vm525_vm0, %v436_v0  ;;  %v806_v3 = vld [vmem:[%s6149_s10 + $0x348] sm:$0xff] }
  0x8c   : > { %v1058_v8 = vpop.permute.xlu0 %1057  ;;  %v1060_v9 = vpop.permute.xlu1 %1059 }
  0x8d   : > { %1576 = vst.msk [vmem:[#allocation2 + $0x20] sm:$0xff] %vm1571_vm1, %v1058_v8  ;;  %1577 = vst.msk [vmem:[#allocation2 + $0x28] sm:$0xff] %vm1571_vm1, %v1060_v9  ;;  %v785_v8 = vld [vmem:[%s6149_s10 + $0x2a0] sm:$0xff]  ;;  %v441_v9 = vld [vmem:[%s6177_s14 + $0x2d0] sm:$0xff] }
  0x8e   : > { %1175 = vrot.lane.b32.xlu1 %v764_v5, %s6082_s11  ;;  %1173 = vrot.lane.b32.xlu0 %v763_v6, %s6082_s11  ;;  %v438_v6 = vld [vmem:[%s6177_s14 + $0x2b8] sm:$0xff]  ;;  %616 = vst.msk [vmem:[#allocation2 + $0x2d0] sm:$0xff] %vm525_vm0, %v441_v9 }
  0x8f   : > { %613 = vst.msk [vmem:[#allocation2 + $0x2b8] sm:$0xff] %vm525_vm0, %v438_v6  ;;  %v808_v9 = vld [vmem:[%s6149_s10 + $0x358] sm:$0xff] }
  0x90   : > { %v1062_v14 = vpop.permute.xlu0 %1061  ;;  %v1064_v15 = vpop.permute.xlu1 %1063 }
  0x91   : > { %1578 = vst.msk [vmem:[#allocation2 + $0x30] sm:$0xff] %vm1571_vm1, %v1062_v14  ;;  %1579 = vst.msk [vmem:[#allocation2 + $0x38] sm:$0xff] %vm1571_vm1, %v1064_v15  ;;  %v787_v14 = vld [vmem:[%s6149_s10 + $0x2b0] sm:$0xff]  ;;  %v443_v15 = vld [vmem:[%s6177_s14 + $0x2e0] sm:$0xff] }
  0x92   : > { %1179 = vrot.lane.b32.xlu1 %v766_v11, %s6082_s11  ;;  %1177 = vrot.lane.b32.xlu0 %v765_v12, %s6082_s11  ;;  %v440_v12 = vld [vmem:[%s6177_s14 + $0x2c8] sm:$0xff]  ;;  %618 = vst.msk [vmem:[#allocation2 + $0x2e0] sm:$0xff] %vm525_vm0, %v443_v15 }
  0x93   : > { %615 = vst.msk [vmem:[#allocation2 + $0x2c8] sm:$0xff] %vm525_vm0, %v440_v12  ;;  %v810_v15 = vld [vmem:[%s6149_s10 + $0x368] sm:$0xff] }
  0x94   : > { %v1066_v20 = vpop.permute.xlu0 %1065  ;;  %v1068_v21 = vpop.permute.xlu1 %1067 }
  0x95   : > { %1580 = vst.msk [vmem:[#allocation2 + $0x40] sm:$0xff] %vm1571_vm1, %v1066_v20  ;;  %1581 = vst.msk [vmem:[#allocation2 + $0x48] sm:$0xff] %vm1571_vm1, %v1068_v21  ;;  %v789_v20 = vld [vmem:[%s6149_s10 + $0x2c0] sm:$0xff]  ;;  %v445_v21 = vld [vmem:[%s6177_s14 + $0x2f0] sm:$0xff] }
  0x96   : > { %1183 = vrot.lane.b32.xlu1 %v768_v17, %s6082_s11  ;;  %1181 = vrot.lane.b32.xlu0 %v767_v18, %s6082_s11  ;;  %v442_v18 = vld [vmem:[%s6177_s14 + $0x2d8] sm:$0xff]  ;;  %620 = vst.msk [vmem:[#allocation2 + $0x2f0] sm:$0xff] %vm525_vm0, %v445_v21 }
  0x97   : > { %617 = vst.msk [vmem:[#allocation2 + $0x2d8] sm:$0xff] %vm525_vm0, %v442_v18  ;;  %v812_v21 = vld [vmem:[%s6149_s10 + $0x378] sm:$0xff] }
  0x98   : > { %v1070_v26 = vpop.permute.xlu0 %1069  ;;  %v1072_v27 = vpop.permute.xlu1 %1071 }
  0x99   : > { %1582 = vst.msk [vmem:[#allocation2 + $0x50] sm:$0xff] %vm1571_vm1, %v1070_v26  ;;  %1583 = vst.msk [vmem:[#allocation2 + $0x58] sm:$0xff] %vm1571_vm1, %v1072_v27  ;;  %v791_v26 = vld [vmem:[%s6149_s10 + $0x2d0] sm:$0xff]  ;;  %v447_v27 = vld [vmem:[%s6177_s14 + $0x300] sm:$0xff] }
  0x9a   : > { %1187 = vrot.lane.b32.xlu1 %v770_v23, %s6082_s11  ;;  %1185 = vrot.lane.b32.xlu0 %v769_v24, %s6082_s11  ;;  %v444_v24 = vld [vmem:[%s6177_s14 + $0x2e8] sm:$0xff]  ;;  %622 = vst.msk [vmem:[#allocation2 + $0x300] sm:$0xff] %vm525_vm0, %v447_v27 }
  0x9b   : > { %619 = vst.msk [vmem:[#allocation2 + $0x2e8] sm:$0xff] %vm525_vm0, %v444_v24  ;;  %v814_v27 = vld [vmem:[%s6149_s10 + $0x388] sm:$0xff] }
  0x9c   : > { %v1074_v32 = vpop.permute.xlu0 %1073  ;;  %v1076_v33 = vpop.permute.xlu1 %1075 }
  0x9d   : > { %1584 = vst.msk [vmem:[#allocation2 + $0x60] sm:$0xff] %vm1571_vm1, %v1074_v32  ;;  %1585 = vst.msk [vmem:[#allocation2 + $0x68] sm:$0xff] %vm1571_vm1, %v1076_v33  ;;  %v793_v32 = vld [vmem:[%s6149_s10 + $0x2e0] sm:$0xff]  ;;  %v449_v33 = vld [vmem:[%s6177_s14 + $0x310] sm:$0xff] }
  0x9e   : > { %1191 = vrot.lane.b32.xlu1 %v772_v29, %s6082_s11  ;;  %1189 = vrot.lane.b32.xlu0 %v771_v30, %s6082_s11  ;;  %v446_v30 = vld [vmem:[%s6177_s14 + $0x2f8] sm:$0xff]  ;;  %624 = vst.msk [vmem:[#allocation2 + $0x310] sm:$0xff] %vm525_vm0, %v449_v33 }
  0x9f   : > { %621 = vst.msk [vmem:[#allocation2 + $0x2f8] sm:$0xff] %vm525_vm0, %v446_v30  ;;  %v816_v33 = vld [vmem:[%s6149_s10 + $0x398] sm:$0xff] }
  0xa0   : > { %v1078_v38 = vpop.permute.xlu0 %1077  ;;  %v1080_v39 = vpop.permute.xlu1 %1079 }
  0xa1   : > { %1586 = vst.msk [vmem:[#allocation2 + $0x70] sm:$0xff] %vm1571_vm1, %v1078_v38  ;;  %1587 = vst.msk [vmem:[#allocation2 + $0x78] sm:$0xff] %vm1571_vm1, %v1080_v39  ;;  %v795_v38 = vld [vmem:[%s6149_s10 + $0x2f0] sm:$0xff]  ;;  %v451_v39 = vld [vmem:[%s6177_s14 + $0x320] sm:$0xff] }
  0xa2   : > { %1195 = vrot.lane.b32.xlu1 %v774_v35, %s6082_s11  ;;  %1193 = vrot.lane.b32.xlu0 %v773_v36, %s6082_s11  ;;  %v448_v36 = vld [vmem:[%s6177_s14 + $0x308] sm:$0xff]  ;;  %626 = vst.msk [vmem:[#allocation2 + $0x320] sm:$0xff] %vm525_vm0, %v451_v39 }
  0xa3   : > { %623 = vst.msk [vmem:[#allocation2 + $0x308] sm:$0xff] %vm525_vm0, %v448_v36  ;;  %v818_v39 = vld [vmem:[%s6149_s10 + $0x3a8] sm:$0xff] }
  0xa4   : > { %v1082_v44 = vpop.permute.xlu0 %1081  ;;  %v1084_v45 = vpop.permute.xlu1 %1083 }
  0xa5   : > { %1588 = vst.msk [vmem:[#allocation2 + $0x80] sm:$0xff] %vm1571_vm1, %v1082_v44  ;;  %1589 = vst.msk [vmem:[#allocation2 + $0x88] sm:$0xff] %vm1571_vm1, %v1084_v45  ;;  %v797_v44 = vld [vmem:[%s6149_s10 + $0x300] sm:$0xff]  ;;  %v453_v45 = vld [vmem:[%s6177_s14 + $0x330] sm:$0xff] }
  0xa6   : > { %1199 = vrot.lane.b32.xlu1 %v776_v41, %s6082_s11  ;;  %1197 = vrot.lane.b32.xlu0 %v775_v42, %s6082_s11  ;;  %v450_v42 = vld [vmem:[%s6177_s14 + $0x318] sm:$0xff]  ;;  %628 = vst.msk [vmem:[#allocation2 + $0x330] sm:$0xff] %vm525_vm0, %v453_v45 }
  0xa7   : > { %625 = vst.msk [vmem:[#allocation2 + $0x318] sm:$0xff] %vm525_vm0, %v450_v42  ;;  %v820_v45 = vld [vmem:[%s6149_s10 + $0x3b8] sm:$0xff] }
  0xa8   : > { %v1086_v50 = vpop.permute.xlu0 %1085  ;;  %v1088_v51 = vpop.permute.xlu1 %1087 }
  0xa9   : > { %1590 = vst.msk [vmem:[#allocation2 + $0x90] sm:$0xff] %vm1571_vm1, %v1086_v50  ;;  %1591 = vst.msk [vmem:[#allocation2 + $0x98] sm:$0xff] %vm1571_vm1, %v1088_v51  ;;  %v799_v50 = vld [vmem:[%s6149_s10 + $0x310] sm:$0xff]  ;;  %v455_v51 = vld [vmem:[%s6177_s14 + $0x340] sm:$0xff] }
  0xaa   : > { %1203 = vrot.lane.b32.xlu1 %v778_v47, %s6082_s11  ;;  %1201 = vrot.lane.b32.xlu0 %v777_v48, %s6082_s11  ;;  %v452_v48 = vld [vmem:[%s6177_s14 + $0x328] sm:$0xff]  ;;  %630 = vst.msk [vmem:[#allocation2 + $0x340] sm:$0xff] %vm525_vm0, %v455_v51 }
  0xab   : > { %627 = vst.msk [vmem:[#allocation2 + $0x328] sm:$0xff] %vm525_vm0, %v452_v48  ;;  %v822_v51 = vld [vmem:[%s6149_s10 + $0x3c8] sm:$0xff] }
  0xac   : > { %v1090_v56 = vpop.permute.xlu0 %1089  ;;  %v1092_v57 = vpop.permute.xlu1 %1091 }
  0xad   : > { %1592 = vst.msk [vmem:[#allocation2 + $0xa0] sm:$0xff] %vm1571_vm1, %v1090_v56  ;;  %1593 = vst.msk [vmem:[#allocation2 + $0xa8] sm:$0xff] %vm1571_vm1, %v1092_v57  ;;  %v801_v56 = vld [vmem:[%s6149_s10 + $0x320] sm:$0xff]  ;;  %v457_v57 = vld [vmem:[%s6177_s14 + $0x350] sm:$0xff] }
  0xae   : > { %1207 = vrot.lane.b32.xlu1 %v780_v53, %s6082_s11  ;;  %1205 = vrot.lane.b32.xlu0 %v779_v54, %s6082_s11  ;;  %v454_v54 = vld [vmem:[%s6177_s14 + $0x338] sm:$0xff]  ;;  %632 = vst.msk [vmem:[#allocation2 + $0x350] sm:$0xff] %vm525_vm0, %v457_v57  ;;  %v823_v57 = vld [vmem:[%s6149_s10 + $0x3d0] sm:$0xff] }
  0xaf   : > { %629 = vst.msk [vmem:[#allocation2 + $0x338] sm:$0xff] %vm525_vm0, %v454_v54 }
  0xb0   : > { %v1094_v62 = vpop.permute.xlu0 %1093  ;;  %v1096_v63 = vpop.permute.xlu1 %1095 }
  0xb1   : > { %1594 = vst.msk [vmem:[#allocation2 + $0xb0] sm:$0xff] %vm1571_vm1, %v1094_v62  ;;  %1595 = vst.msk [vmem:[#allocation2 + $0xb8] sm:$0xff] %vm1571_vm1, %v1096_v63  ;;  %v803_v62 = vld [vmem:[%s6149_s10 + $0x330] sm:$0xff]  ;;  %v459_v63 = vld [vmem:[%s6177_s14 + $0x360] sm:$0xff] }
  0xb2   : > { %1211 = vrot.lane.b32.xlu1 %v782_v59, %s6082_s11  ;;  %1209 = vrot.lane.b32.xlu0 %v781_v60, %s6082_s11  ;;  %v456_v60 = vld [vmem:[%s6177_s14 + $0x348] sm:$0xff]  ;;  %634 = vst.msk [vmem:[#allocation2 + $0x360] sm:$0xff] %vm525_vm0, %v459_v63 }
  0xb3   : > { %631 = vst.msk [vmem:[#allocation2 + $0x348] sm:$0xff] %vm525_vm0, %v456_v60  ;;  %v826_v60 = vld [vmem:[%s6149_s10 + $0x3e8] sm:$0xff] }
  0xb4   : > { %v1098_v4 = vpop.permute.xlu0 %1097  ;;  %v1100_v5 = vpop.permute.xlu1 %1099 }
  0xb5   : > { %1596 = vst.msk [vmem:[#allocation2 + $0xc0] sm:$0xff] %vm1571_vm1, %v1098_v4  ;;  %1597 = vst.msk [vmem:[#allocation2 + $0xc8] sm:$0xff] %vm1571_vm1, %v1100_v5  ;;  %v805_v4 = vld [vmem:[%s6149_s10 + $0x340] sm:$0xff]  ;;  %v461_v5 = vld [vmem:[%s6177_s14 + $0x370] sm:$0xff] }
  0xb6   : > { %1215 = vrot.lane.b32.xlu1 %v784_v1, %s6082_s11  ;;  %1213 = vrot.lane.b32.xlu0 %v783_v2, %s6082_s11  ;;  %v458_v2 = vld [vmem:[%s6177_s14 + $0x358] sm:$0xff]  ;;  %636 = vst.msk [vmem:[#allocation2 + $0x370] sm:$0xff] %vm525_vm0, %v461_v5  ;;  %v1764_v5 = vld [vmem:[%s6729_s17 + $0x88] sm:$0xff] }
  0xb7   : > { %633 = vst.msk [vmem:[#allocation2 + $0x358] sm:$0xff] %vm525_vm0, %v458_v2 }
  0xb8   : > { %v1102_v10 = vpop.permute.xlu0 %1101  ;;  %v1104_v11 = vpop.permute.xlu1 %1103 }
  0xb9   : > { %1598 = vst.msk [vmem:[#allocation2 + $0xd0] sm:$0xff] %vm1571_vm1, %v1102_v10  ;;  %1599 = vst.msk [vmem:[#allocation2 + $0xd8] sm:$0xff] %vm1571_vm1, %v1104_v11  ;;  %v807_v10 = vld [vmem:[%s6149_s10 + $0x350] sm:$0xff]  ;;  %v463_v11 = vld [vmem:[%s6177_s14 + $0x380] sm:$0xff] }
  0xba   : > { %1219 = vrot.lane.b32.xlu1 %v786_v7, %s6082_s11  ;;  %1217 = vrot.lane.b32.xlu0 %v785_v8, %s6082_s11  ;;  %v460_v8 = vld [vmem:[%s6177_s14 + $0x368] sm:$0xff]  ;;  %638 = vst.msk [vmem:[#allocation2 + $0x380] sm:$0xff] %vm525_vm0, %v463_v11 }
  0xbb   : > { %635 = vst.msk [vmem:[#allocation2 + $0x368] sm:$0xff] %vm525_vm0, %v460_v8  ;;  %v1749_v8 = vld [vmem:[%s6729_s17 + $0x10] sm:$0xff] }
  0xbc   : > { %v1106_v16 = vpop.permute.xlu0 %1105  ;;  %v1108_v17 = vpop.permute.xlu1 %1107 }
  0xbd   : > { %1600 = vst.msk [vmem:[#allocation2 + $0xe0] sm:$0xff] %vm1571_vm1, %v1106_v16  ;;  %1601 = vst.msk [vmem:[#allocation2 + $0xe8] sm:$0xff] %vm1571_vm1, %v1108_v17  ;;  %v809_v16 = vld [vmem:[%s6149_s10 + $0x360] sm:$0xff]  ;;  %v465_v17 = vld [vmem:[%s6177_s14 + $0x390] sm:$0xff] }
  0xbe   : > { %1223 = vrot.lane.b32.xlu1 %v788_v13, %s6082_s11  ;;  %1221 = vrot.lane.b32.xlu0 %v787_v14, %s6082_s11  ;;  %v462_v14 = vld [vmem:[%s6177_s14 + $0x378] sm:$0xff]  ;;  %640 = vst.msk [vmem:[#allocation2 + $0x390] sm:$0xff] %vm525_vm0, %v465_v17 }
  0xbf   : > { %637 = vst.msk [vmem:[#allocation2 + $0x378] sm:$0xff] %vm525_vm0, %v462_v14  ;;  %v1750_v17 = vld [vmem:[%s6729_s17 + $0x18] sm:$0xff] }
  0xc0   : > { %v1110_v22 = vpop.permute.xlu0 %1109  ;;  %v1112_v23 = vpop.permute.xlu1 %1111 }
  0xc1   : > { %1602 = vst.msk [vmem:[#allocation2 + $0xf0] sm:$0xff] %vm1571_vm1, %v1110_v22  ;;  %1603 = vst.msk [vmem:[#allocation2 + $0xf8] sm:$0xff] %vm1571_vm1, %v1112_v23  ;;  %v811_v22 = vld [vmem:[%s6149_s10 + $0x370] sm:$0xff]  ;;  %v467_v23 = vld [vmem:[%s6177_s14 + $0x3a0] sm:$0xff] }
  0xc2   : > { %1227 = vrot.lane.b32.xlu1 %v790_v19, %s6082_s11  ;;  %1225 = vrot.lane.b32.xlu0 %v789_v20, %s6082_s11  ;;  %v464_v20 = vld [vmem:[%s6177_s14 + $0x388] sm:$0xff]  ;;  %642 = vst.msk [vmem:[#allocation2 + $0x3a0] sm:$0xff] %vm525_vm0, %v467_v23 }
  0xc3   : > { %639 = vst.msk [vmem:[#allocation2 + $0x388] sm:$0xff] %vm525_vm0, %v464_v20  ;;  %v1796_v20 = vld [vmem:[%s6729_s17 + $0x188] sm:$0xff] }
  0xc4   : > { %v1114_v28 = vpop.permute.xlu0 %1113  ;;  %v1116_v29 = vpop.permute.xlu1 %1115 }
  0xc5   : > { %1604 = vst.msk [vmem:[#allocation2 + $0x100] sm:$0xff] %vm1571_vm1, %v1114_v28  ;;  %1605 = vst.msk [vmem:[#allocation2 + $0x108] sm:$0xff] %vm1571_vm1, %v1116_v29  ;;  %v813_v28 = vld [vmem:[%s6149_s10 + $0x380] sm:$0xff]  ;;  %v469_v29 = vld [vmem:[%s6177_s14 + $0x3b0] sm:$0xff] }
  0xc6   : > { %1231 = vrot.lane.b32.xlu1 %v792_v25, %s6082_s11  ;;  %1229 = vrot.lane.b32.xlu0 %v791_v26, %s6082_s11  ;;  %v466_v26 = vld [vmem:[%s6177_s14 + $0x398] sm:$0xff]  ;;  %644 = vst.msk [vmem:[#allocation2 + $0x3b0] sm:$0xff] %vm525_vm0, %v469_v29  ;;  %v1768_v29 = vld [vmem:[%s6729_s17 + $0xa8] sm:$0xff] }
  0xc7   : > { %641 = vst.msk [vmem:[#allocation2 + $0x398] sm:$0xff] %vm525_vm0, %v466_v26 }
  0xc8   : > { %v1118_v34 = vpop.permute.xlu0 %1117  ;;  %v1120_v35 = vpop.permute.xlu1 %1119 }
  0xc9   : > { %1606 = vst.msk [vmem:[#allocation2 + $0x110] sm:$0xff] %vm1571_vm1, %v1118_v34  ;;  %1607 = vst.msk [vmem:[#allocation2 + $0x118] sm:$0xff] %vm1571_vm1, %v1120_v35  ;;  %v815_v34 = vld [vmem:[%s6149_s10 + $0x390] sm:$0xff]  ;;  %v471_v35 = vld [vmem:[%s6177_s14 + $0x3c0] sm:$0xff] }
  0xca   : > { %1235 = vrot.lane.b32.xlu1 %v794_v31, %s6082_s11  ;;  %1233 = vrot.lane.b32.xlu0 %v793_v32, %s6082_s11  ;;  %v468_v32 = vld [vmem:[%s6177_s14 + $0x3a8] sm:$0xff]  ;;  %646 = vst.msk [vmem:[#allocation2 + $0x3c0] sm:$0xff] %vm525_vm0, %v471_v35 }
  0xcb   : > { %643 = vst.msk [vmem:[#allocation2 + $0x3a8] sm:$0xff] %vm525_vm0, %v468_v32  ;;  %v1781_v32 = vld [vmem:[%s6729_s17 + $0x110] sm:$0xff] }
  0xcc   : > { %v1122_v40 = vpop.permute.xlu0 %1121  ;;  %v1124_v41 = vpop.permute.xlu1 %1123 }
  0xcd   : > { %1608 = vst.msk [vmem:[#allocation2 + $0x120] sm:$0xff] %vm1571_vm1, %v1122_v40  ;;  %1609 = vst.msk [vmem:[#allocation2 + $0x128] sm:$0xff] %vm1571_vm1, %v1124_v41  ;;  %v817_v40 = vld [vmem:[%s6149_s10 + $0x3a0] sm:$0xff]  ;;  %v473_v41 = vld [vmem:[%s6177_s14 + $0x3d0] sm:$0xff] }
  0xce   : > { %1239 = vrot.lane.b32.xlu1 %v796_v37, %s6082_s11  ;;  %1237 = vrot.lane.b32.xlu0 %v795_v38, %s6082_s11  ;;  %v470_v38 = vld [vmem:[%s6177_s14 + $0x3b8] sm:$0xff]  ;;  %648 = vst.msk [vmem:[#allocation2 + $0x3d0] sm:$0xff] %vm525_vm0, %v473_v41  ;;  %v1753_v41 = vld [vmem:[%s6729_s17 + $0x30] sm:$0xff] }
  0xcf   : > { %645 = vst.msk [vmem:[#allocation2 + $0x3b8] sm:$0xff] %vm525_vm0, %v470_v38 }
  0xd0   : > { %v1126_v46 = vpop.permute.xlu0 %1125  ;;  %v1128_v47 = vpop.permute.xlu1 %1127 }
  0xd1   : > { %1610 = vst.msk [vmem:[#allocation2 + $0x130] sm:$0xff] %vm1571_vm1, %v1126_v46  ;;  %1611 = vst.msk [vmem:[#allocation2 + $0x138] sm:$0xff] %vm1571_vm1, %v1128_v47  ;;  %v819_v46 = vld [vmem:[%s6149_s10 + $0x3b0] sm:$0xff]  ;;  %v475_v47 = vld [vmem:[%s6177_s14 + $0x3e0] sm:$0xff] }
  0xd2   : > { %1243 = vrot.lane.b32.xlu1 %v798_v43, %s6082_s11  ;;  %1241 = vrot.lane.b32.xlu0 %v797_v44, %s6082_s11  ;;  %v472_v44 = vld [vmem:[%s6177_s14 + $0x3c8] sm:$0xff]  ;;  %650 = vst.msk [vmem:[#allocation2 + $0x3e0] sm:$0xff] %vm525_vm0, %v475_v47 }
  0xd3   : > { %647 = vst.msk [vmem:[#allocation2 + $0x3c8] sm:$0xff] %vm525_vm0, %v472_v44  ;;  %v1799_v44 = vld [vmem:[%s6729_s17 + $0x1a0] sm:$0xff] }
  0xd4   : > { %v1130_v52 = vpop.permute.xlu0 %1129  ;;  %v1132_v53 = vpop.permute.xlu1 %1131 }
  0xd5   : > { %1612 = vst.msk [vmem:[#allocation2 + $0x140] sm:$0xff] %vm1571_vm1, %v1130_v52  ;;  %1613 = vst.msk [vmem:[#allocation2 + $0x148] sm:$0xff] %vm1571_vm1, %v1132_v53  ;;  %v821_v52 = vld [vmem:[%s6149_s10 + $0x3c0] sm:$0xff] }
  0xd6   : > { %1247 = vrot.lane.b32.xlu1 %v800_v49, %s6082_s11  ;;  %1245 = vrot.lane.b32.xlu0 %v799_v50, %s6082_s11  ;;  %v474_v50 = vld [vmem:[%s6177_s14 + $0x3d8] sm:$0xff] }
  0xd7   : > { %649 = vst.msk [vmem:[#allocation2 + $0x3d8] sm:$0xff] %vm525_vm0, %v474_v50 }
  0xd8   : > { %v1134_v58 = vpop.permute.xlu0 %1133  ;;  %v1136_v59 = vpop.permute.xlu1 %1135 }
  0xd9   : > { %1614 = vst.msk [vmem:[#allocation2 + $0x150] sm:$0xff] %vm1571_vm1, %v1134_v58  ;;  %1615 = vst.msk [vmem:[#allocation2 + $0x158] sm:$0xff] %vm1571_vm1, %v1136_v59 }
  0xda   : > { %1251 = vrot.lane.b32.xlu1 %v802_v55, %s6082_s11  ;;  %1249 = vrot.lane.b32.xlu0 %v801_v56, %s6082_s11  ;;  %v476_v55 = vld [vmem:[%s6177_s14 + $0x3e8] sm:$0xff]  ;;  %v824_v56 = vld [vmem:[%s6149_s10 + $0x3d8] sm:$0xff] }
  0xdb   : > { %651 = vst.msk [vmem:[#allocation2 + $0x3e8] sm:$0xff] %vm525_vm0, %v476_v55 }
  0xdc   : > { %v1138_v0 = vpop.permute.xlu0 %1137  ;;  %v1140_v1 = vpop.permute.xlu1 %1139 }
  0xdd   : > { %1616 = vst.msk [vmem:[#allocation2 + $0x160] sm:$0xff] %vm1571_vm1, %v1138_v0  ;;  %1617 = vst.msk [vmem:[#allocation2 + $0x168] sm:$0xff] %vm1571_vm1, %v1140_v1  ;;  %v1747_v0 = vld [vmem:[%s6729_s17] sm:$0xff] }
  0xde   : > { %1255 = vrot.lane.b32.xlu1 %v804_v61, %s6082_s11  ;;  %1253 = vrot.lane.b32.xlu0 %v803_v62, %s6082_s11  ;;  %v825_v61 = vld [vmem:[%s6149_s10 + $0x3e0] sm:$0xff] }
  0xdf   : > { %v1763_v1 = vld [vmem:[%s6729_s17 + $0x80] sm:$0xff] }
  0xe0   : > { %v1142_v6 = vpop.permute.xlu0 %1141  ;;  %v1144_v7 = vpop.permute.xlu1 %1143 }
  0xe1   : > { %1618 = vst.msk [vmem:[#allocation2 + $0x170] sm:$0xff] %vm1571_vm1, %v1142_v6  ;;  %1619 = vst.msk [vmem:[#allocation2 + $0x178] sm:$0xff] %vm1571_vm1, %v1144_v7 }
  0xe2   : > { %1259 = vrot.lane.b32.xlu1 %v806_v3, %s6082_s11  ;;  %1257 = vrot.lane.b32.xlu0 %v805_v4, %s6082_s11  ;;  %v1748_v4 = vld [vmem:[%s6729_s17 + $0x8] sm:$0xff] }
  0xe4   : > { %v1146_v12 = vpop.permute.xlu0 %1145  ;;  %v1148_v13 = vpop.permute.xlu1 %1147 }
  0xe5   : > { %1620 = vst.msk [vmem:[#allocation2 + $0x180] sm:$0xff] %vm1571_vm1, %v1146_v12  ;;  %1621 = vst.msk [vmem:[#allocation2 + $0x188] sm:$0xff] %vm1571_vm1, %v1148_v13  ;;  %v1795_v12 = vld [vmem:[%s6729_s17 + $0x180] sm:$0xff]  ;;  %v1766_v13 = vld [vmem:[%s6729_s17 + $0x98] sm:$0xff] }
  0xe6   : > { %1263 = vrot.lane.b32.xlu1 %v808_v9, %s6082_s11  ;;  %1261 = vrot.lane.b32.xlu0 %v807_v10, %s6082_s11  ;;  %v1765_v9 = vld [vmem:[%s6729_s17 + $0x90] sm:$0xff] }
  0xe8   : > { %v1150_v18 = vpop.permute.xlu0 %1149  ;;  %v1152_v19 = vpop.permute.xlu1 %1151 }
  0xe9   : > { %1622 = vst.msk [vmem:[#allocation2 + $0x190] sm:$0xff] %vm1571_vm1, %v1150_v18  ;;  %1623 = vst.msk [vmem:[#allocation2 + $0x198] sm:$0xff] %vm1571_vm1, %v1152_v19 }
  0xea   : > { %1267 = vrot.lane.b32.xlu1 %v810_v15, %s6082_s11  ;;  %1265 = vrot.lane.b32.xlu0 %v809_v16, %s6082_s11  ;;  %v1779_v16 = vld [vmem:[%s6729_s17 + $0x100] sm:$0xff] }
  0xec   : > { %v1154_v24 = vpop.permute.xlu0 %1153  ;;  %v1156_v25 = vpop.permute.xlu1 %1155 }
  0xed   : > { %1624 = vst.msk [vmem:[#allocation2 + $0x1a0] sm:$0xff] %vm1571_vm1, %v1154_v24  ;;  %1625 = vst.msk [vmem:[#allocation2 + $0x1a8] sm:$0xff] %vm1571_vm1, %v1156_v25  ;;  %v1780_v24 = vld [vmem:[%s6729_s17 + $0x108] sm:$0xff]  ;;  %v1751_v25 = vld [vmem:[%s6729_s17 + $0x20] sm:$0xff] }
  0xee   : > { %1271 = vrot.lane.b32.xlu1 %v812_v21, %s6082_s11  ;;  %1269 = vrot.lane.b32.xlu0 %v811_v22, %s6082_s11  ;;  %v1767_v21 = vld [vmem:[%s6729_s17 + $0xa0] sm:$0xff] }
  0xf0   : > { %v1158_v30 = vpop.permute.xlu0 %1157  ;;  %v1160_v31 = vpop.permute.xlu1 %1159 }
  0xf1   : > { %1626 = vst.msk [vmem:[#allocation2 + $0x1b0] sm:$0xff] %vm1571_vm1, %v1158_v30  ;;  %1627 = vst.msk [vmem:[#allocation2 + $0x1b8] sm:$0xff] %vm1571_vm1, %v1160_v31 }
  0xf2   : > { %1275 = vrot.lane.b32.xlu1 %v814_v27, %s6082_s11  ;;  %1273 = vrot.lane.b32.xlu0 %v813_v28, %s6082_s11  ;;  %v1797_v28 = vld [vmem:[%s6729_s17 + $0x190] sm:$0xff] }
  0xf4   : > { %v1162_v36 = vpop.permute.xlu0 %1161  ;;  %v1164_v37 = vpop.permute.xlu1 %1163 }
  0xf5   : > { %1628 = vst.msk [vmem:[#allocation2 + $0x1c0] sm:$0xff] %vm1571_vm1, %v1162_v36  ;;  %1629 = vst.msk [vmem:[#allocation2 + $0x1c8] sm:$0xff] %vm1571_vm1, %v1164_v37  ;;  %v1798_v36 = vld [vmem:[%s6729_s17 + $0x198] sm:$0xff]  ;;  %v1769_v37 = vld [vmem:[%s6729_s17 + $0xb0] sm:$0xff] }
  0xf6   : > { %1279 = vrot.lane.b32.xlu1 %v816_v33, %s6082_s11  ;;  %1277 = vrot.lane.b32.xlu0 %v815_v34, %s6082_s11  ;;  %v1752_v33 = vld [vmem:[%s6729_s17 + $0x28] sm:$0xff] }
  0xf8   : > { %v1166_v42 = vpop.permute.xlu0 %1165  ;;  %v1168_v43 = vpop.permute.xlu1 %1167 }
  0xf9   : > { %1630 = vst.msk [vmem:[#allocation2 + $0x1d0] sm:$0xff] %vm1571_vm1, %v1166_v42  ;;  %1631 = vst.msk [vmem:[#allocation2 + $0x1d8] sm:$0xff] %vm1571_vm1, %v1168_v43 }
  0xfa   : > { %1283 = vrot.lane.b32.xlu1 %v818_v39, %s6082_s11  ;;  %1281 = vrot.lane.b32.xlu0 %v817_v40, %s6082_s11  ;;  %v1782_v40 = vld [vmem:[%s6729_s17 + $0x118] sm:$0xff] }
  0xfc   : > { %v1170_v48 = vpop.permute.xlu0 %1169  ;;  %v1172_v49 = vpop.permute.xlu1 %1171 }
  0xfd   : > { %1632 = vst.msk [vmem:[#allocation2 + $0x1e0] sm:$0xff] %vm1571_vm1, %v1170_v48  ;;  %1633 = vst.msk [vmem:[#allocation2 + $0x1e8] sm:$0xff] %vm1571_vm1, %v1172_v49  ;;  %v1783_v48 = vld [vmem:[%s6729_s17 + $0x120] sm:$0xff]  ;;  %v1754_v49 = vld [vmem:[%s6729_s17 + $0x38] sm:$0xff] }
  0xfe   : > { %1287 = vrot.lane.b32.xlu1 %v820_v45, %s6082_s11  ;;  %1285 = vrot.lane.b32.xlu0 %v819_v46, %s6082_s11  ;;  %v1770_v45 = vld [vmem:[%s6729_s17 + $0xb8] sm:$0xff] }
 0x100   : > { %v1174_v53 = vpop.permute.xlu0 %1173  ;;  %v1176_v54 = vpop.permute.xlu1 %1175 }
 0x101   : > { %1634 = vst.msk [vmem:[#allocation2 + $0x1f0] sm:$0xff] %vm1571_vm1, %v1174_v53  ;;  %1635 = vst.msk [vmem:[#allocation2 + $0x1f8] sm:$0xff] %vm1571_vm1, %v1176_v54  ;;  %v1771_v53 = vld [vmem:[%s6729_s17 + $0xc0] sm:$0xff] }
 0x102   : > { %1291 = vrot.lane.b32.xlu1 %v822_v51, %s6082_s11  ;;  %1289 = vrot.lane.b32.xlu0 %v821_v52, %s6082_s11  ;;  %v1800_v52 = vld [vmem:[%s6729_s17 + $0x1a8] sm:$0xff] }
 0x104   : > { %v1178_v58 = vpop.permute.xlu0 %1177  ;;  %v1180_v59 = vpop.permute.xlu1 %1179 }
 0x105   : > { %1636 = vst.msk [vmem:[#allocation2 + $0x200] sm:$0xff] %vm1571_vm1, %v1178_v58  ;;  %1637 = vst.msk [vmem:[#allocation2 + $0x208] sm:$0xff] %vm1571_vm1, %v1180_v59 }
 0x106   : > { %1295 = vrot.lane.b32.xlu1 %v824_v56, %s6082_s11  ;;  %1293 = vrot.lane.b32.xlu0 %v823_v57, %s6082_s11  ;;  %v1784_v56 = vld [vmem:[%s6729_s17 + $0x128] sm:$0xff]  ;;  %v1755_v57 = vld [vmem:[%s6729_s17 + $0x40] sm:$0xff] }
 0x108   : > { %v1182_v62 = vpop.permute.xlu0 %1181  ;;  %v1184_v63 = vpop.permute.xlu1 %1183 }
 0x109   : > { %1638 = vst.msk [vmem:[#allocation2 + $0x210] sm:$0xff] %vm1571_vm1, %v1182_v62  ;;  %1639 = vst.msk [vmem:[#allocation2 + $0x218] sm:$0xff] %vm1571_vm1, %v1184_v63 }
 0x10a   : > { %1299 = vrot.lane.b32.xlu1 %v826_v60, %s6082_s11  ;;  %1297 = vrot.lane.b32.xlu0 %v825_v61, %s6082_s11  ;;  %v1801_v60 = vld [vmem:[%s6729_s17 + $0x1b0] sm:$0xff]  ;;  %v1772_v61 = vld [vmem:[%s6729_s17 + $0xc8] sm:$0xff] }
 0x10c   : > { %v1186_v2 = vpop.permute.xlu0 %1185  ;;  %v1188_v3 = vpop.permute.xlu1 %1187 }
 0x10d   : > { %1640 = vst.msk [vmem:[#allocation2 + $0x220] sm:$0xff] %vm1571_vm1, %v1186_v2  ;;  %1641 = vst.msk [vmem:[#allocation2 + $0x228] sm:$0xff] %vm1571_vm1, %v1188_v3 }
 0x10e   : > { %2095 = vrot.lane.b32.xlu1 %v1747_v0, %s6083_s18  ;;  %2127 = vrot.lane.b32.xlu0 %v1763_v1, %s6083_s18  ;;  %v1785_v0 = vld [vmem:[%s6729_s17 + $0x130] sm:$0xff]  ;;  %v1756_v1 = vld [vmem:[%s6729_s17 + $0x48] sm:$0xff] }
 0x110   : > { %v1190_v6 = vpop.permute.xlu0 %1189  ;;  %v1192_v7 = vpop.permute.xlu1 %1191 }
 0x111   : > { %1642 = vst.msk [vmem:[#allocation2 + $0x230] sm:$0xff] %vm1571_vm1, %v1190_v6  ;;  %1643 = vst.msk [vmem:[#allocation2 + $0x238] sm:$0xff] %vm1571_vm1, %v1192_v7 }
 0x112   : > { %2097 = vrot.lane.b32.xlu1 %v1748_v4, %s6083_s18  ;;  %2129 = vrot.lane.b32.xlu0 %v1764_v5, %s6083_s18  ;;  %v1802_v4 = vld [vmem:[%s6729_s17 + $0x1b8] sm:$0xff]  ;;  %v1773_v5 = vld [vmem:[%s6729_s17 + $0xd0] sm:$0xff] }
 0x114   : > { %v1194_v10 = vpop.permute.xlu0 %1193  ;;  %v1196_v11 = vpop.permute.xlu1 %1195 }
 0x115   : > { %1644 = vst.msk [vmem:[#allocation2 + $0x240] sm:$0xff] %vm1571_vm1, %v1194_v10  ;;  %1645 = vst.msk [vmem:[#allocation2 + $0x248] sm:$0xff] %vm1571_vm1, %v1196_v11 }
 0x116   : > { %2099 = vrot.lane.b32.xlu1 %v1749_v8, %s6083_s18  ;;  %2131 = vrot.lane.b32.xlu0 %v1765_v9, %s6083_s18  ;;  %v1786_v8 = vld [vmem:[%s6729_s17 + $0x138] sm:$0xff]  ;;  %v1757_v9 = vld [vmem:[%s6729_s17 + $0x50] sm:$0xff] }
 0x118   : > { %v1198_v14 = vpop.permute.xlu0 %1197  ;;  %v1200_v15 = vpop.permute.xlu1 %1199 }
 0x119   : > { %1646 = vst.msk [vmem:[#allocation2 + $0x250] sm:$0xff] %vm1571_vm1, %v1198_v14  ;;  %1647 = vst.msk [vmem:[#allocation2 + $0x258] sm:$0xff] %vm1571_vm1, %v1200_v15 }
 0x11a   : > { %2191 = vrot.lane.b32.xlu1 %v1795_v12, %s6083_s18  ;;  %2133 = vrot.lane.b32.xlu0 %v1766_v13, %s6083_s18  ;;  %v1803_v12 = vld [vmem:[%s6729_s17 + $0x1c0] sm:$0xff]  ;;  %v1774_v13 = vld [vmem:[%s6729_s17 + $0xd8] sm:$0xff] }
 0x11c   : > { %v1202_v18 = vpop.permute.xlu0 %1201  ;;  %v1204_v19 = vpop.permute.xlu1 %1203 }
 0x11d   : > { %1648 = vst.msk [vmem:[#allocation2 + $0x260] sm:$0xff] %vm1571_vm1, %v1202_v18  ;;  %1649 = vst.msk [vmem:[#allocation2 + $0x268] sm:$0xff] %vm1571_vm1, %v1204_v19 }
 0x11e   : > { %2159 = vrot.lane.b32.xlu1 %v1779_v16, %s6083_s18  ;;  %2101 = vrot.lane.b32.xlu0 %v1750_v17, %s6083_s18  ;;  %v1787_v16 = vld [vmem:[%s6729_s17 + $0x140] sm:$0xff]  ;;  %v1758_v17 = vld [vmem:[%s6729_s17 + $0x58] sm:$0xff] }
 0x120   : > { %v1206_v22 = vpop.permute.xlu0 %1205  ;;  %v1208_v23 = vpop.permute.xlu1 %1207 }
 0x121   : > { %1650 = vst.msk [vmem:[#allocation2 + $0x270] sm:$0xff] %vm1571_vm1, %v1206_v22  ;;  %1651 = vst.msk [vmem:[#allocation2 + $0x278] sm:$0xff] %vm1571_vm1, %v1208_v23 }
 0x122   : > { %2193 = vrot.lane.b32.xlu1 %v1796_v20, %s6083_s18  ;;  %2135 = vrot.lane.b32.xlu0 %v1767_v21, %s6083_s18  ;;  %v1804_v20 = vld [vmem:[%s6729_s17 + $0x1c8] sm:$0xff]  ;;  %v1775_v21 = vld [vmem:[%s6729_s17 + $0xe0] sm:$0xff] }
 0x124   : > { %v1210_v26 = vpop.permute.xlu0 %1209  ;;  %v1212_v27 = vpop.permute.xlu1 %1211 }
 0x125   : > { %1652 = vst.msk [vmem:[#allocation2 + $0x280] sm:$0xff] %vm1571_vm1, %v1210_v26  ;;  %1653 = vst.msk [vmem:[#allocation2 + $0x288] sm:$0xff] %vm1571_vm1, %v1212_v27 }
 0x126   : > { %2161 = vrot.lane.b32.xlu1 %v1780_v24, %s6083_s18  ;;  %2103 = vrot.lane.b32.xlu0 %v1751_v25, %s6083_s18  ;;  %v1788_v24 = vld [vmem:[%s6729_s17 + $0x148] sm:$0xff]  ;;  %v1759_v25 = vld [vmem:[%s6729_s17 + $0x60] sm:$0xff] }
 0x128   : > { %v1214_v30 = vpop.permute.xlu0 %1213  ;;  %v1216_v31 = vpop.permute.xlu1 %1215 }
 0x129   : > { %1654 = vst.msk [vmem:[#allocation2 + $0x290] sm:$0xff] %vm1571_vm1, %v1214_v30  ;;  %1655 = vst.msk [vmem:[#allocation2 + $0x298] sm:$0xff] %vm1571_vm1, %v1216_v31 }
 0x12a   : > { %2195 = vrot.lane.b32.xlu1 %v1797_v28, %s6083_s18  ;;  %2137 = vrot.lane.b32.xlu0 %v1768_v29, %s6083_s18  ;;  %v1805_v28 = vld [vmem:[%s6729_s17 + $0x1d0] sm:$0xff]  ;;  %v1776_v29 = vld [vmem:[%s6729_s17 + $0xe8] sm:$0xff] }
 0x12c   : > { %v1218_v34 = vpop.permute.xlu0 %1217  ;;  %v1220_v35 = vpop.permute.xlu1 %1219 }
 0x12d   : > { %1656 = vst.msk [vmem:[#allocation2 + $0x2a0] sm:$0xff] %vm1571_vm1, %v1218_v34  ;;  %1657 = vst.msk [vmem:[#allocation2 + $0x2a8] sm:$0xff] %vm1571_vm1, %v1220_v35 }
 0x12e   : > { %2163 = vrot.lane.b32.xlu1 %v1781_v32, %s6083_s18  ;;  %2105 = vrot.lane.b32.xlu0 %v1752_v33, %s6083_s18  ;;  %v1789_v32 = vld [vmem:[%s6729_s17 + $0x150] sm:$0xff]  ;;  %v1760_v33 = vld [vmem:[%s6729_s17 + $0x68] sm:$0xff] }
 0x130   : > { %v1222_v38 = vpop.permute.xlu0 %1221  ;;  %v1224_v39 = vpop.permute.xlu1 %1223 }
 0x131   : > { %1658 = vst.msk [vmem:[#allocation2 + $0x2b0] sm:$0xff] %vm1571_vm1, %v1222_v38  ;;  %1659 = vst.msk [vmem:[#allocation2 + $0x2b8] sm:$0xff] %vm1571_vm1, %v1224_v39 }
 0x132   : > { %2197 = vrot.lane.b32.xlu1 %v1798_v36, %s6083_s18  ;;  %2139 = vrot.lane.b32.xlu0 %v1769_v37, %s6083_s18  ;;  %v1806_v36 = vld [vmem:[%s6729_s17 + $0x1d8] sm:$0xff]  ;;  %v1777_v37 = vld [vmem:[%s6729_s17 + $0xf0] sm:$0xff] }
 0x134   : > { %v1226_v42 = vpop.permute.xlu0 %1225  ;;  %v1228_v43 = vpop.permute.xlu1 %1227 }
 0x135   : > { %1660 = vst.msk [vmem:[#allocation2 + $0x2c0] sm:$0xff] %vm1571_vm1, %v1226_v42  ;;  %1661 = vst.msk [vmem:[#allocation2 + $0x2c8] sm:$0xff] %vm1571_vm1, %v1228_v43 }
 0x136   : > { %2165 = vrot.lane.b32.xlu1 %v1782_v40, %s6083_s18  ;;  %2107 = vrot.lane.b32.xlu0 %v1753_v41, %s6083_s18  ;;  %v1790_v40 = vld [vmem:[%s6729_s17 + $0x158] sm:$0xff]  ;;  %v1761_v41 = vld [vmem:[%s6729_s17 + $0x70] sm:$0xff] }
 0x138   : > { %v1230_v46 = vpop.permute.xlu0 %1229  ;;  %v1232_v47 = vpop.permute.xlu1 %1231 }
 0x139   : > { %1662 = vst.msk [vmem:[#allocation2 + $0x2d0] sm:$0xff] %vm1571_vm1, %v1230_v46  ;;  %1663 = vst.msk [vmem:[#allocation2 + $0x2d8] sm:$0xff] %vm1571_vm1, %v1232_v47 }
 0x13a   : > { %2199 = vrot.lane.b32.xlu1 %v1799_v44, %s6083_s18  ;;  %2141 = vrot.lane.b32.xlu0 %v1770_v45, %s6083_s18  ;;  %v1807_v44 = vld [vmem:[%s6729_s17 + $0x1e0] sm:$0xff]  ;;  %v1778_v45 = vld [vmem:[%s6729_s17 + $0xf8] sm:$0xff] }
 0x13c   : > { %v1234_v50 = vpop.permute.xlu0 %1233  ;;  %v1236_v51 = vpop.permute.xlu1 %1235 }
 0x13d   : > { %1664 = vst.msk [vmem:[#allocation2 + $0x2e0] sm:$0xff] %vm1571_vm1, %v1234_v50  ;;  %1665 = vst.msk [vmem:[#allocation2 + $0x2e8] sm:$0xff] %vm1571_vm1, %v1236_v51 }
 0x13e   : > { %2167 = vrot.lane.b32.xlu1 %v1783_v48, %s6083_s18  ;;  %2109 = vrot.lane.b32.xlu0 %v1754_v49, %s6083_s18  ;;  %v1791_v48 = vld [vmem:[%s6729_s17 + $0x160] sm:$0xff]  ;;  %v1762_v49 = vld [vmem:[%s6729_s17 + $0x78] sm:$0xff] }
 0x140   : > { %v1238_v54 = vpop.permute.xlu0 %1237  ;;  %v1240_v55 = vpop.permute.xlu1 %1239 }
 0x141   : > { %1666 = vst.msk [vmem:[#allocation2 + $0x2f0] sm:$0xff] %vm1571_vm1, %v1238_v54  ;;  %1667 = vst.msk [vmem:[#allocation2 + $0x2f8] sm:$0xff] %vm1571_vm1, %v1240_v55 }
 0x142   : > { %2201 = vrot.lane.b32.xlu1 %v1800_v52, %s6083_s18  ;;  %2143 = vrot.lane.b32.xlu0 %v1771_v53, %s6083_s18  ;;  %v1827_v52 = vld [vmem:[%s6729_s17 + $0x280] sm:$0xff]  ;;  %v1808_v53 = vld [vmem:[%s6729_s17 + $0x1e8] sm:$0xff] }
 0x144   : > { %v1242_v58 = vpop.permute.xlu0 %1241  ;;  %v1244_v59 = vpop.permute.xlu1 %1243 }
 0x145   : > { %1668 = vst.msk [vmem:[#allocation2 + $0x300] sm:$0xff] %vm1571_vm1, %v1242_v58  ;;  %1669 = vst.msk [vmem:[#allocation2 + $0x308] sm:$0xff] %vm1571_vm1, %v1244_v59 }
 0x146   : > { %2169 = vrot.lane.b32.xlu1 %v1784_v56, %s6083_s18  ;;  %2111 = vrot.lane.b32.xlu0 %v1755_v57, %s6083_s18  ;;  %v1811_v56 = vld [vmem:[%s6729_s17 + $0x200] sm:$0xff]  ;;  %v1792_v57 = vld [vmem:[%s6729_s17 + $0x168] sm:$0xff] }
 0x148   : > { %v1246_v62 = vpop.permute.xlu0 %1245  ;;  %v1248_v63 = vpop.permute.xlu1 %1247 }
 0x149   : > { %1670 = vst.msk [vmem:[#allocation2 + $0x310] sm:$0xff] %vm1571_vm1, %v1246_v62  ;;  %1671 = vst.msk [vmem:[#allocation2 + $0x318] sm:$0xff] %vm1571_vm1, %v1248_v63 }
 0x14a   : > { %2203 = vrot.lane.b32.xlu1 %v1801_v60, %s6083_s18  ;;  %2145 = vrot.lane.b32.xlu0 %v1772_v61, %s6083_s18  ;;  %v1828_v60 = vld [vmem:[%s6729_s17 + $0x288] sm:$0xff]  ;;  %v1809_v61 = vld [vmem:[%s6729_s17 + $0x1f0] sm:$0xff] }
 0x14c   : > { %v1250_v2 = vpop.permute.xlu0 %1249  ;;  %v1252_v3 = vpop.permute.xlu1 %1251 }
 0x14d   : > { %1672 = vst.msk [vmem:[#allocation2 + $0x320] sm:$0xff] %vm1571_vm1, %v1250_v2  ;;  %1673 = vst.msk [vmem:[#allocation2 + $0x328] sm:$0xff] %vm1571_vm1, %v1252_v3 }
 0x14e   : > { %2171 = vrot.lane.b32.xlu1 %v1785_v0, %s6083_s18  ;;  %2113 = vrot.lane.b32.xlu0 %v1756_v1, %s6083_s18  ;;  %v1812_v0 = vld [vmem:[%s6729_s17 + $0x208] sm:$0xff]  ;;  %v1793_v1 = vld [vmem:[%s6729_s17 + $0x170] sm:$0xff] }
 0x150   : > { %v1254_v6 = vpop.permute.xlu0 %1253  ;;  %v1256_v7 = vpop.permute.xlu1 %1255 }
 0x151   : > { %1674 = vst.msk [vmem:[#allocation2 + $0x330] sm:$0xff] %vm1571_vm1, %v1254_v6  ;;  %1675 = vst.msk [vmem:[#allocation2 + $0x338] sm:$0xff] %vm1571_vm1, %v1256_v7 }
 0x152   : > { %2205 = vrot.lane.b32.xlu1 %v1802_v4, %s6083_s18  ;;  %2147 = vrot.lane.b32.xlu0 %v1773_v5, %s6083_s18  ;;  %v1829_v4 = vld [vmem:[%s6729_s17 + $0x290] sm:$0xff]  ;;  %v1810_v5 = vld [vmem:[%s6729_s17 + $0x1f8] sm:$0xff] }
 0x154   : > { %v1258_v10 = vpop.permute.xlu0 %1257  ;;  %v1260_v11 = vpop.permute.xlu1 %1259 }
 0x155   : > { %1676 = vst.msk [vmem:[#allocation2 + $0x340] sm:$0xff] %vm1571_vm1, %v1258_v10  ;;  %1677 = vst.msk [vmem:[#allocation2 + $0x348] sm:$0xff] %vm1571_vm1, %v1260_v11 }
 0x156   : > { %2173 = vrot.lane.b32.xlu1 %v1786_v8, %s6083_s18  ;;  %2115 = vrot.lane.b32.xlu0 %v1757_v9, %s6083_s18  ;;  %v1813_v8 = vld [vmem:[%s6729_s17 + $0x210] sm:$0xff]  ;;  %v1794_v9 = vld [vmem:[%s6729_s17 + $0x178] sm:$0xff] }
 0x158   : > { %v1262_v14 = vpop.permute.xlu0 %1261  ;;  %v1264_v15 = vpop.permute.xlu1 %1263 }
 0x159   : > { %1678 = vst.msk [vmem:[#allocation2 + $0x350] sm:$0xff] %vm1571_vm1, %v1262_v14  ;;  %1679 = vst.msk [vmem:[#allocation2 + $0x358] sm:$0xff] %vm1571_vm1, %v1264_v15 }
 0x15a   : > { %2207 = vrot.lane.b32.xlu1 %v1803_v12, %s6083_s18  ;;  %2149 = vrot.lane.b32.xlu0 %v1774_v13, %s6083_s18  ;;  %v1859_v12 = vld [vmem:[%s6729_s17 + $0x380] sm:$0xff]  ;;  %v1830_v13 = vld [vmem:[%s6729_s17 + $0x298] sm:$0xff] }
 0x15c   : > { %v1266_v18 = vpop.permute.xlu0 %1265  ;;  %v1268_v19 = vpop.permute.xlu1 %1267 }
 0x15d   : > { %1680 = vst.msk [vmem:[#allocation2 + $0x360] sm:$0xff] %vm1571_vm1, %v1266_v18  ;;  %1681 = vst.msk [vmem:[#allocation2 + $0x368] sm:$0xff] %vm1571_vm1, %v1268_v19 }
 0x15e   : > { %2175 = vrot.lane.b32.xlu1 %v1787_v16, %s6083_s18  ;;  %2117 = vrot.lane.b32.xlu0 %v1758_v17, %s6083_s18  ;;  %v1843_v16 = vld [vmem:[%s6729_s17 + $0x300] sm:$0xff]  ;;  %v1814_v17 = vld [vmem:[%s6729_s17 + $0x218] sm:$0xff] }
 0x160   : > { %v1270_v22 = vpop.permute.xlu0 %1269  ;;  %v1272_v23 = vpop.permute.xlu1 %1271 }
 0x161   : > { %1682 = vst.msk [vmem:[#allocation2 + $0x370] sm:$0xff] %vm1571_vm1, %v1270_v22  ;;  %1683 = vst.msk [vmem:[#allocation2 + $0x378] sm:$0xff] %vm1571_vm1, %v1272_v23 }
 0x162   : > { %2209 = vrot.lane.b32.xlu1 %v1804_v20, %s6083_s18  ;;  %2151 = vrot.lane.b32.xlu0 %v1775_v21, %s6083_s18  ;;  %v1860_v20 = vld [vmem:[%s6729_s17 + $0x388] sm:$0xff]  ;;  %v1831_v21 = vld [vmem:[%s6729_s17 + $0x2a0] sm:$0xff] }
 0x164   : > { %v1274_v26 = vpop.permute.xlu0 %1273  ;;  %v1276_v27 = vpop.permute.xlu1 %1275 }
 0x165   : > { %1684 = vst.msk [vmem:[#allocation2 + $0x380] sm:$0xff] %vm1571_vm1, %v1274_v26  ;;  %1685 = vst.msk [vmem:[#allocation2 + $0x388] sm:$0xff] %vm1571_vm1, %v1276_v27 }
 0x166   : > { %2177 = vrot.lane.b32.xlu1 %v1788_v24, %s6083_s18  ;;  %2119 = vrot.lane.b32.xlu0 %v1759_v25, %s6083_s18  ;;  %v1844_v24 = vld [vmem:[%s6729_s17 + $0x308] sm:$0xff]  ;;  %v1815_v25 = vld [vmem:[%s6729_s17 + $0x220] sm:$0xff] }
 0x168   : > { %v1278_v30 = vpop.permute.xlu0 %1277  ;;  %v1280_v31 = vpop.permute.xlu1 %1279 }
 0x169   : > { %1686 = vst.msk [vmem:[#allocation2 + $0x390] sm:$0xff] %vm1571_vm1, %v1278_v30  ;;  %1687 = vst.msk [vmem:[#allocation2 + $0x398] sm:$0xff] %vm1571_vm1, %v1280_v31 }
 0x16a   : > { %2211 = vrot.lane.b32.xlu1 %v1805_v28, %s6083_s18  ;;  %2153 = vrot.lane.b32.xlu0 %v1776_v29, %s6083_s18  ;;  %v1861_v28 = vld [vmem:[%s6729_s17 + $0x390] sm:$0xff]  ;;  %v1832_v29 = vld [vmem:[%s6729_s17 + $0x2a8] sm:$0xff] }
 0x16c   : > { %v1282_v34 = vpop.permute.xlu0 %1281  ;;  %v1284_v35 = vpop.permute.xlu1 %1283 }
 0x16d   : > { %1688 = vst.msk [vmem:[#allocation2 + $0x3a0] sm:$0xff] %vm1571_vm1, %v1282_v34  ;;  %1689 = vst.msk [vmem:[#allocation2 + $0x3a8] sm:$0xff] %vm1571_vm1, %v1284_v35 }
 0x16e   : > { %2179 = vrot.lane.b32.xlu1 %v1789_v32, %s6083_s18  ;;  %2121 = vrot.lane.b32.xlu0 %v1760_v33, %s6083_s18  ;;  %v1845_v32 = vld [vmem:[%s6729_s17 + $0x310] sm:$0xff]  ;;  %v1816_v33 = vld [vmem:[%s6729_s17 + $0x228] sm:$0xff] }
 0x170   : > { %v1286_v38 = vpop.permute.xlu0 %1285  ;;  %v1288_v39 = vpop.permute.xlu1 %1287 }
 0x171   : > { %1690 = vst.msk [vmem:[#allocation2 + $0x3b0] sm:$0xff] %vm1571_vm1, %v1286_v38  ;;  %1691 = vst.msk [vmem:[#allocation2 + $0x3b8] sm:$0xff] %vm1571_vm1, %v1288_v39 }
 0x172   : > { %2213 = vrot.lane.b32.xlu1 %v1806_v36, %s6083_s18  ;;  %2155 = vrot.lane.b32.xlu0 %v1777_v37, %s6083_s18  ;;  %v1862_v36 = vld [vmem:[%s6729_s17 + $0x398] sm:$0xff]  ;;  %v1833_v37 = vld [vmem:[%s6729_s17 + $0x2b0] sm:$0xff] }
 0x174   : > { %v1290_v42 = vpop.permute.xlu0 %1289  ;;  %v1292_v43 = vpop.permute.xlu1 %1291 }
 0x175   : > { %1692 = vst.msk [vmem:[#allocation2 + $0x3c0] sm:$0xff] %vm1571_vm1, %v1290_v42  ;;  %1693 = vst.msk [vmem:[#allocation2 + $0x3c8] sm:$0xff] %vm1571_vm1, %v1292_v43 }
 0x176   : > { %2181 = vrot.lane.b32.xlu1 %v1790_v40, %s6083_s18  ;;  %2123 = vrot.lane.b32.xlu0 %v1761_v41, %s6083_s18  ;;  %v1846_v40 = vld [vmem:[%s6729_s17 + $0x318] sm:$0xff]  ;;  %v1817_v41 = vld [vmem:[%s6729_s17 + $0x230] sm:$0xff] }
 0x178   : > { %v1294_v46 = vpop.permute.xlu0 %1293  ;;  %v1296_v47 = vpop.permute.xlu1 %1295 }
 0x179   : > { %1694 = vst.msk [vmem:[#allocation2 + $0x3d0] sm:$0xff] %vm1571_vm1, %v1294_v46  ;;  %1695 = vst.msk [vmem:[#allocation2 + $0x3d8] sm:$0xff] %vm1571_vm1, %v1296_v47 }
 0x17a   : > { %2215 = vrot.lane.b32.xlu1 %v1807_v44, %s6083_s18  ;;  %2157 = vrot.lane.b32.xlu0 %v1778_v45, %s6083_s18  ;;  %v1863_v44 = vld [vmem:[%s6729_s17 + $0x3a0] sm:$0xff]  ;;  %v1834_v45 = vld [vmem:[%s6729_s17 + $0x2b8] sm:$0xff] }
 0x17c   : > { %v1298_v50 = vpop.permute.xlu0 %1297  ;;  %v1300_v51 = vpop.permute.xlu1 %1299 }
 0x17d   : > { %1696 = vst.msk [vmem:[#allocation2 + $0x3e0] sm:$0xff] %vm1571_vm1, %v1298_v50  ;;  %1697 = vst.msk [vmem:[#allocation2 + $0x3e8] sm:$0xff] %vm1571_vm1, %v1300_v51 }
 0x17e   : > { %2183 = vrot.lane.b32.xlu1 %v1791_v48, %s6083_s18  ;;  %2125 = vrot.lane.b32.xlu0 %v1762_v49, %s6083_s18  ;;  %v1847_v48 = vld [vmem:[%s6729_s17 + $0x320] sm:$0xff]  ;;  %v1818_v49 = vld [vmem:[%s6729_s17 + $0x238] sm:$0xff] }
 0x180   : > { %v2128_v54 = vpop.permute.xlu0 %2127  ;;  %v2096_v55 = vpop.permute.xlu1 %2095 }
 0x181   : > { %2634 = vst.msk [vmem:[#allocation2 + $0x80] sm:$0xff] %vm2617_vm2, %v2128_v54  ;;  %2618 = vst.msk [vmem:[#allocation2] sm:$0xff] %vm2617_vm2, %v2096_v55 }
 0x182   : > { %2255 = vrot.lane.b32.xlu1 %v1827_v52, %s6083_s18  ;;  %2217 = vrot.lane.b32.xlu0 %v1808_v53, %s6083_s18  ;;  %v1864_v52 = vld [vmem:[%s6729_s17 + $0x3a8] sm:$0xff]  ;;  %v1835_v53 = vld [vmem:[%s6729_s17 + $0x2c0] sm:$0xff] }
 0x184   : > { %v2130_v58 = vpop.permute.xlu0 %2129  ;;  %v2098_v59 = vpop.permute.xlu1 %2097 }
 0x185   : > { %2635 = vst.msk [vmem:[#allocation2 + $0x88] sm:$0xff] %vm2617_vm2, %v2130_v58  ;;  %2619 = vst.msk [vmem:[#allocation2 + $0x8] sm:$0xff] %vm2617_vm2, %v2098_v59 }
 0x186   : > { %2223 = vrot.lane.b32.xlu1 %v1811_v56, %s6083_s18  ;;  %2185 = vrot.lane.b32.xlu0 %v1792_v57, %s6083_s18  ;;  %v1848_v56 = vld [vmem:[%s6729_s17 + $0x328] sm:$0xff]  ;;  %v1819_v57 = vld [vmem:[%s6729_s17 + $0x240] sm:$0xff] }
 0x188   : > { %v2132_v62 = vpop.permute.xlu0 %2131  ;;  %v2100_v63 = vpop.permute.xlu1 %2099 }
 0x189   : > { %2636 = vst.msk [vmem:[#allocation2 + $0x90] sm:$0xff] %vm2617_vm2, %v2132_v62  ;;  %2620 = vst.msk [vmem:[#allocation2 + $0x10] sm:$0xff] %vm2617_vm2, %v2100_v63 }
 0x18a   : > { %2257 = vrot.lane.b32.xlu1 %v1828_v60, %s6083_s18  ;;  %2219 = vrot.lane.b32.xlu0 %v1809_v61, %s6083_s18  ;;  %v1865_v60 = vld [vmem:[%s6729_s17 + $0x3b0] sm:$0xff]  ;;  %v1836_v61 = vld [vmem:[%s6729_s17 + $0x2c8] sm:$0xff] }
 0x18c   : > { %v2134_v2 = vpop.permute.xlu0 %2133  ;;  %v2192_v3 = vpop.permute.xlu1 %2191 }
 0x18d   : > { %2637 = vst.msk [vmem:[#allocation2 + $0x98] sm:$0xff] %vm2617_vm2, %v2134_v2  ;;  %2666 = vst.msk [vmem:[#allocation2 + $0x180] sm:$0xff] %vm2617_vm2, %v2192_v3 }
 0x18e   : > { %2225 = vrot.lane.b32.xlu1 %v1812_v0, %s6083_s18  ;;  %2187 = vrot.lane.b32.xlu0 %v1793_v1, %s6083_s18  ;;  %v1849_v0 = vld [vmem:[%s6729_s17 + $0x330] sm:$0xff]  ;;  %v1820_v1 = vld [vmem:[%s6729_s17 + $0x248] sm:$0xff] }
 0x190   : > { %v2102_v6 = vpop.permute.xlu0 %2101  ;;  %v2160_v7 = vpop.permute.xlu1 %2159 }
 0x191   : > { %2621 = vst.msk [vmem:[#allocation2 + $0x18] sm:$0xff] %vm2617_vm2, %v2102_v6  ;;  %2650 = vst.msk [vmem:[#allocation2 + $0x100] sm:$0xff] %vm2617_vm2, %v2160_v7 }
 0x192   : > { %2259 = vrot.lane.b32.xlu1 %v1829_v4, %s6083_s18  ;;  %2221 = vrot.lane.b32.xlu0 %v1810_v5, %s6083_s18  ;;  %v1866_v4 = vld [vmem:[%s6729_s17 + $0x3b8] sm:$0xff]  ;;  %v1837_v5 = vld [vmem:[%s6729_s17 + $0x2d0] sm:$0xff] }
 0x194   : > { %v2136_v10 = vpop.permute.xlu0 %2135  ;;  %v2194_v11 = vpop.permute.xlu1 %2193 }
 0x195   : > { %2638 = vst.msk [vmem:[#allocation2 + $0xa0] sm:$0xff] %vm2617_vm2, %v2136_v10  ;;  %2667 = vst.msk [vmem:[#allocation2 + $0x188] sm:$0xff] %vm2617_vm2, %v2194_v11 }
 0x196   : > { %2227 = vrot.lane.b32.xlu1 %v1813_v8, %s6083_s18  ;;  %2189 = vrot.lane.b32.xlu0 %v1794_v9, %s6083_s18  ;;  %v1850_v8 = vld [vmem:[%s6729_s17 + $0x338] sm:$0xff]  ;;  %v1821_v9 = vld [vmem:[%s6729_s17 + $0x250] sm:$0xff] }
 0x198   : > { %v2104_v14 = vpop.permute.xlu0 %2103  ;;  %v2162_v15 = vpop.permute.xlu1 %2161 }
 0x199   : > { %2622 = vst.msk [vmem:[#allocation2 + $0x20] sm:$0xff] %vm2617_vm2, %v2104_v14  ;;  %2651 = vst.msk [vmem:[#allocation2 + $0x108] sm:$0xff] %vm2617_vm2, %v2162_v15 }
 0x19a   : > { %2319 = vrot.lane.b32.xlu1 %v1859_v12, %s6083_s18  ;;  %2261 = vrot.lane.b32.xlu0 %v1830_v13, %s6083_s18  ;;  %v1867_v12 = vld [vmem:[%s6729_s17 + $0x3c0] sm:$0xff]  ;;  %v1838_v13 = vld [vmem:[%s6729_s17 + $0x2d8] sm:$0xff] }
 0x19c   : > { %v2138_v18 = vpop.permute.xlu0 %2137  ;;  %v2196_v19 = vpop.permute.xlu1 %2195 }
 0x19d   : > { %2639 = vst.msk [vmem:[#allocation2 + $0xa8] sm:$0xff] %vm2617_vm2, %v2138_v18  ;;  %2668 = vst.msk [vmem:[#allocation2 + $0x190] sm:$0xff] %vm2617_vm2, %v2196_v19 }
 0x19e   : > { %2287 = vrot.lane.b32.xlu1 %v1843_v16, %s6083_s18  ;;  %2229 = vrot.lane.b32.xlu0 %v1814_v17, %s6083_s18  ;;  %v1851_v16 = vld [vmem:[%s6729_s17 + $0x340] sm:$0xff]  ;;  %v1822_v17 = vld [vmem:[%s6729_s17 + $0x258] sm:$0xff] }
 0x1a0   : > { %v2106_v22 = vpop.permute.xlu0 %2105  ;;  %v2164_v23 = vpop.permute.xlu1 %2163 }
 0x1a1   : > { %2623 = vst.msk [vmem:[#allocation2 + $0x28] sm:$0xff] %vm2617_vm2, %v2106_v22  ;;  %2652 = vst.msk [vmem:[#allocation2 + $0x110] sm:$0xff] %vm2617_vm2, %v2164_v23 }
 0x1a2   : > { %2321 = vrot.lane.b32.xlu1 %v1860_v20, %s6083_s18  ;;  %2263 = vrot.lane.b32.xlu0 %v1831_v21, %s6083_s18  ;;  %v1868_v20 = vld [vmem:[%s6729_s17 + $0x3c8] sm:$0xff]  ;;  %v1839_v21 = vld [vmem:[%s6729_s17 + $0x2e0] sm:$0xff] }
 0x1a4   : > { %v2140_v26 = vpop.permute.xlu0 %2139  ;;  %v2198_v27 = vpop.permute.xlu1 %2197 }
 0x1a5   : > { %2640 = vst.msk [vmem:[#allocation2 + $0xb0] sm:$0xff] %vm2617_vm2, %v2140_v26  ;;  %2669 = vst.msk [vmem:[#allocation2 + $0x198] sm:$0xff] %vm2617_vm2, %v2198_v27 }
 0x1a6   : > { %2289 = vrot.lane.b32.xlu1 %v1844_v24, %s6083_s18  ;;  %2231 = vrot.lane.b32.xlu0 %v1815_v25, %s6083_s18  ;;  %v1852_v24 = vld [vmem:[%s6729_s17 + $0x348] sm:$0xff]  ;;  %v1823_v25 = vld [vmem:[%s6729_s17 + $0x260] sm:$0xff] }
 0x1a8   : > { %v2108_v30 = vpop.permute.xlu0 %2107  ;;  %v2166_v31 = vpop.permute.xlu1 %2165 }
 0x1a9   : > { %2624 = vst.msk [vmem:[#allocation2 + $0x30] sm:$0xff] %vm2617_vm2, %v2108_v30  ;;  %2653 = vst.msk [vmem:[#allocation2 + $0x118] sm:$0xff] %vm2617_vm2, %v2166_v31 }
 0x1aa   : > { %2323 = vrot.lane.b32.xlu1 %v1861_v28, %s6083_s18  ;;  %2265 = vrot.lane.b32.xlu0 %v1832_v29, %s6083_s18  ;;  %v1869_v28 = vld [vmem:[%s6729_s17 + $0x3d0] sm:$0xff]  ;;  %v1840_v29 = vld [vmem:[%s6729_s17 + $0x2e8] sm:$0xff] }
 0x1ac   : > { %v2142_v34 = vpop.permute.xlu0 %2141  ;;  %v2200_v35 = vpop.permute.xlu1 %2199 }
 0x1ad   : > { %2641 = vst.msk [vmem:[#allocation2 + $0xb8] sm:$0xff] %vm2617_vm2, %v2142_v34  ;;  %2670 = vst.msk [vmem:[#allocation2 + $0x1a0] sm:$0xff] %vm2617_vm2, %v2200_v35  ;;  %v495_v34 = vld [vmem:[%s6177_s14 + $0x480] sm:$0xff] }
 0x1ae   : > { %2291 = vrot.lane.b32.xlu1 %v1845_v32, %s6083_s18  ;;  %2233 = vrot.lane.b32.xlu0 %v1816_v33, %s6083_s18  ;;  %v1853_v32 = vld [vmem:[%s6729_s17 + $0x350] sm:$0xff]  ;;  %v1824_v33 = vld [vmem:[%s6729_s17 + $0x268] sm:$0xff]  ;;  %670 = vst.msk [vmem:[#allocation2 + $0x480] sm:$0xff] %vm525_vm0, %v495_v34 }
 0x1af   : > { %v511_v34 = vld [vmem:[%s6177_s14 + $0x500] sm:$0xff] }
 0x1b0   : > { %v2110_v38 = vpop.permute.xlu0 %2109  ;;  %v2168_v39 = vpop.permute.xlu1 %2167  ;;  %686 = vst.msk [vmem:[#allocation2 + $0x500] sm:$0xff] %vm525_vm0, %v511_v34 }
 0x1b1   : > { %2625 = vst.msk [vmem:[#allocation2 + $0x38] sm:$0xff] %vm2617_vm2, %v2110_v38  ;;  %2654 = vst.msk [vmem:[#allocation2 + $0x120] sm:$0xff] %vm2617_vm2, %v2168_v39  ;;  %v1841_v38 = vld [vmem:[%s6729_s17 + $0x2f0] sm:$0xff] }
 0x1b2   : > { %2325 = vrot.lane.b32.xlu1 %v1862_v36, %s6083_s18  ;;  %2267 = vrot.lane.b32.xlu0 %v1833_v37, %s6083_s18  ;;  %v1870_v37 = vld [vmem:[%s6729_s17 + $0x3d8] sm:$0xff] }
 0x1b4   : > { %v2144_v42 = vpop.permute.xlu0 %2143  ;;  %v2202_v43 = vpop.permute.xlu1 %2201 }
 0x1b5   : > { %2642 = vst.msk [vmem:[#allocation2 + $0xc0] sm:$0xff] %vm2617_vm2, %v2144_v42  ;;  %2671 = vst.msk [vmem:[#allocation2 + $0x1a8] sm:$0xff] %vm2617_vm2, %v2202_v43  ;;  %v1825_v42 = vld [vmem:[%s6729_s17 + $0x270] sm:$0xff] }
 0x1b6   : > { %2293 = vrot.lane.b32.xlu1 %v1846_v40, %s6083_s18  ;;  %2235 = vrot.lane.b32.xlu0 %v1817_v41, %s6083_s18  ;;  %v1854_v41 = vld [vmem:[%s6729_s17 + $0x358] sm:$0xff] }
 0x1b8   : > { %v2112_v46 = vpop.permute.xlu0 %2111  ;;  %v2170_v47 = vpop.permute.xlu1 %2169 }
 0x1b9   : > { %2626 = vst.msk [vmem:[#allocation2 + $0x40] sm:$0xff] %vm2617_vm2, %v2112_v46  ;;  %2655 = vst.msk [vmem:[#allocation2 + $0x128] sm:$0xff] %vm2617_vm2, %v2170_v47  ;;  %v1842_v46 = vld [vmem:[%s6729_s17 + $0x2f8] sm:$0xff]  ;;  %v845_v47 = vld [vmem:[%s6149_s10 + $0x480] sm:$0xff] }
 0x1ba   : > { %2327 = vrot.lane.b32.xlu1 %v1863_v44, %s6083_s18  ;;  %2269 = vrot.lane.b32.xlu0 %v1834_v45, %s6083_s18  ;;  %v479_v45 = vld [vmem:[%s6177_s14 + $0x400] sm:$0xff] }
 0x1bb   : > { %654 = vst.msk [vmem:[#allocation2 + $0x400] sm:$0xff] %vm525_vm0, %v479_v45  ;;  %v1858_v45 = vld [vmem:[%s6729_s17 + $0x378] sm:$0xff] }
 0x1bc   : > { %v2146_v50 = vpop.permute.xlu0 %2145  ;;  %v2204_v51 = vpop.permute.xlu1 %2203 }
 0x1bd   : > { %2643 = vst.msk [vmem:[#allocation2 + $0xc8] sm:$0xff] %vm2617_vm2, %v2146_v50  ;;  %2672 = vst.msk [vmem:[#allocation2 + $0x1b0] sm:$0xff] %vm2617_vm2, %v2204_v51  ;;  %v829_v50 = vld [vmem:[%s6149_s10 + $0x400] sm:$0xff] }
 0x1be   : > { %2295 = vrot.lane.b32.xlu1 %v1847_v48, %s6083_s18  ;;  %2237 = vrot.lane.b32.xlu0 %v1818_v49, %s6083_s18  ;;  %v1871_v51 = vld [vmem:[%s6729_s17 + $0x3e0] sm:$0xff] }
 0x1c0   : > { %v2114_v54 = vpop.permute.xlu0 %2113  ;;  %v2172_v55 = vpop.permute.xlu1 %2171 }
 0x1c1   : > { %2627 = vst.msk [vmem:[#allocation2 + $0x48] sm:$0xff] %vm2617_vm2, %v2114_v54  ;;  %2656 = vst.msk [vmem:[#allocation2 + $0x130] sm:$0xff] %vm2617_vm2, %v2172_v55  ;;  %v496_v54 = vld [vmem:[%s6177_s14 + $0x488] sm:$0xff]  ;;  %v1855_v55 = vld [vmem:[%s6729_s17 + $0x360] sm:$0xff] }
 0x1c2   : > { %2329 = vrot.lane.b32.xlu1 %v1864_v52, %s6083_s18  ;;  %2271 = vrot.lane.b32.xlu0 %v1835_v53, %s6083_s18  ;;  %671 = vst.msk [vmem:[#allocation2 + $0x488] sm:$0xff] %vm525_vm0, %v496_v54 }
 0x1c4   : > { %v2148_v58 = vpop.permute.xlu0 %2147  ;;  %v2206_v59 = vpop.permute.xlu1 %2205 }
 0x1c5   : > { %2644 = vst.msk [vmem:[#allocation2 + $0xd0] sm:$0xff] %vm2617_vm2, %v2148_v58  ;;  %2673 = vst.msk [vmem:[#allocation2 + $0x1b8] sm:$0xff] %vm2617_vm2, %v2206_v59 }
 0x1c6   : > { %2297 = vrot.lane.b32.xlu1 %v1848_v56, %s6083_s18  ;;  %2239 = vrot.lane.b32.xlu0 %v1819_v57, %s6083_s18  ;;  %v1826_v56 = vld [vmem:[%s6729_s17 + $0x278] sm:$0xff]  ;;  %v477_v57 = vld [vmem:[%s6177_s14 + $0x3f0] sm:$0xff] }
 0x1c7   : > { %652 = vst.msk [vmem:[#allocation2 + $0x3f0] sm:$0xff] %vm525_vm0, %v477_v57 }
 0x1c8   : > { %v2116_v62 = vpop.permute.xlu0 %2115  ;;  %v2174_v63 = vpop.permute.xlu1 %2173 }
 0x1c9   : > { %2628 = vst.msk [vmem:[#allocation2 + $0x50] sm:$0xff] %vm2617_vm2, %v2116_v62  ;;  %2657 = vst.msk [vmem:[#allocation2 + $0x138] sm:$0xff] %vm2617_vm2, %v2174_v63 }
 0x1ca   : > { %2331 = vrot.lane.b32.xlu1 %v1865_v60, %s6083_s18  ;;  %2273 = vrot.lane.b32.xlu0 %v1836_v61, %s6083_s18  ;;  %v846_v60 = vld [vmem:[%s6149_s10 + $0x488] sm:$0xff]  ;;  %v1891_v61 = vld [vmem:[%s6729_s17 + $0x480] sm:$0xff] }
 0x1cc   : > { %v2150_v2 = vpop.permute.xlu0 %2149  ;;  %v2208_v3 = vpop.permute.xlu1 %2207 }
 0x1cd   : > { %2645 = vst.msk [vmem:[#allocation2 + $0xd8] sm:$0xff] %vm2617_vm2, %v2150_v2  ;;  %2674 = vst.msk [vmem:[#allocation2 + $0x1c0] sm:$0xff] %vm2617_vm2, %v2208_v3  ;;  %v1872_v2 = vld [vmem:[%s6729_s17 + $0x3e8] sm:$0xff]  ;;  %v497_v3 = vld [vmem:[%s6177_s14 + $0x490] sm:$0xff] }
 0x1ce   : > { %2299 = vrot.lane.b32.xlu1 %v1849_v0, %s6083_s18  ;;  %2241 = vrot.lane.b32.xlu0 %v1820_v1, %s6083_s18  ;;  %v480_v0 = vld [vmem:[%s6177_s14 + $0x408] sm:$0xff]  ;;  %v1875_v1 = vld [vmem:[%s6729_s17 + $0x400] sm:$0xff]  ;;  %672 = vst.msk [vmem:[#allocation2 + $0x490] sm:$0xff] %vm525_vm0, %v497_v3 }
 0x1cf   : > { %655 = vst.msk [vmem:[#allocation2 + $0x408] sm:$0xff] %vm525_vm0, %v480_v0  ;;  %v484_v0 = vld [vmem:[%s6177_s14 + $0x428] sm:$0xff]  ;;  %v501_v3 = vld [vmem:[%s6177_s14 + $0x4b0] sm:$0xff] }
 0x1d0   : > { %v2118_v6 = vpop.permute.xlu0 %2117  ;;  %v2176_v7 = vpop.permute.xlu1 %2175  ;;  %659 = vst.msk [vmem:[#allocation2 + $0x428] sm:$0xff] %vm525_vm0, %v484_v0  ;;  %676 = vst.msk [vmem:[#allocation2 + $0x4b0] sm:$0xff] %vm525_vm0, %v501_v3  ;;  %v1912_v3 = vld [vmem:[%s6729_s17 + $0x528] sm:$0xff] }
 0x1d1   : > { %2629 = vst.msk [vmem:[#allocation2 + $0x58] sm:$0xff] %vm2617_vm2, %v2118_v6  ;;  %2658 = vst.msk [vmem:[#allocation2 + $0x140] sm:$0xff] %vm2617_vm2, %v2176_v7  ;;  %v830_v6 = vld [vmem:[%s6149_s10 + $0x408] sm:$0xff]  ;;  %v827_v7 = vld [vmem:[%s6149_s10 + $0x3f0] sm:$0xff] }
 0x1d2   : > { %2333 = vrot.lane.b32.xlu1 %v1866_v4, %s6083_s18  ;;  %2275 = vrot.lane.b32.xlu0 %v1837_v5, %s6083_s18 }
 0x1d4   : > { %v2152_v10 = vpop.permute.xlu0 %2151  ;;  %v2210_v11 = vpop.permute.xlu1 %2209 }
 0x1d5   : > { %2646 = vst.msk [vmem:[#allocation2 + $0xe0] sm:$0xff] %vm2617_vm2, %v2152_v10  ;;  %2675 = vst.msk [vmem:[#allocation2 + $0x1c8] sm:$0xff] %vm2617_vm2, %v2210_v11  ;;  %v1892_v10 = vld [vmem:[%s6729_s17 + $0x488] sm:$0xff] }
 0x1d6   : > { %2301 = vrot.lane.b32.xlu1 %v1850_v8, %s6083_s18  ;;  %2243 = vrot.lane.b32.xlu0 %v1821_v9, %s6083_s18  ;;  %v1856_v11 = vld [vmem:[%s6729_s17 + $0x368] sm:$0xff] }
 0x1d8   : > { %v2120_v14 = vpop.permute.xlu0 %2119  ;;  %v2178_v15 = vpop.permute.xlu1 %2177 }
 0x1d9   : > { %2630 = vst.msk [vmem:[#allocation2 + $0x60] sm:$0xff] %vm2617_vm2, %v2120_v14  ;;  %2659 = vst.msk [vmem:[#allocation2 + $0x148] sm:$0xff] %vm2617_vm2, %v2178_v15  ;;  %v478_v15 = vld [vmem:[%s6177_s14 + $0x3f8] sm:$0xff] }
 0x1da   : > { %2335 = vrot.lane.b32.xlu1 %v1867_v12, %s6083_s18  ;;  %2277 = vrot.lane.b32.xlu0 %v1838_v13, %s6083_s18  ;;  %v481_v12 = vld [vmem:[%s6177_s14 + $0x410] sm:$0xff]  ;;  %653 = vst.msk [vmem:[#allocation2 + $0x3f8] sm:$0xff] %vm525_vm0, %v478_v15 }
 0x1db   : > { %656 = vst.msk [vmem:[#allocation2 + $0x410] sm:$0xff] %vm525_vm0, %v481_v12  ;;  %v514_v12 = vld [vmem:[%s6177_s14 + $0x518] sm:$0xff]  ;;  %v485_v15 = vld [vmem:[%s6177_s14 + $0x430] sm:$0xff] }
 0x1dc   : > { %v2154_v18 = vpop.permute.xlu0 %2153  ;;  %v2212_v19 = vpop.permute.xlu1 %2211  ;;  %689 = vst.msk [vmem:[#allocation2 + $0x518] sm:$0xff] %vm525_vm0, %v514_v12  ;;  %660 = vst.msk [vmem:[#allocation2 + $0x430] sm:$0xff] %vm525_vm0, %v485_v15  ;;  %v1884_v12 = vld [vmem:[%s6729_s17 + $0x448] sm:$0xff] }
 0x1dd   : > { %2647 = vst.msk [vmem:[#allocation2 + $0xe8] sm:$0xff] %vm2617_vm2, %v2154_v18  ;;  %2676 = vst.msk [vmem:[#allocation2 + $0x1d0] sm:$0xff] %vm2617_vm2, %v2212_v19 }
 0x1de   : > { %2303 = vrot.lane.b32.xlu1 %v1851_v16, %s6083_s18  ;;  %2245 = vrot.lane.b32.xlu0 %v1822_v17, %s6083_s18  ;;  %v1873_v16 = vld [vmem:[%s6729_s17 + $0x3f0] sm:$0xff] }
 0x1df   : > { %v847_v17 = vld [vmem:[%s6149_s10 + $0x490] sm:$0xff] }
 0x1e0   : > { %v2122_v22 = vpop.permute.xlu0 %2121  ;;  %v2180_v23 = vpop.permute.xlu1 %2179 }
 0x1e1   : > { %2631 = vst.msk [vmem:[#allocation2 + $0x68] sm:$0xff] %vm2617_vm2, %v2122_v22  ;;  %2660 = vst.msk [vmem:[#allocation2 + $0x150] sm:$0xff] %vm2617_vm2, %v2180_v23 }
 0x1e2   : > { %2337 = vrot.lane.b32.xlu1 %v1868_v20, %s6083_s18  ;;  %2279 = vrot.lane.b32.xlu0 %v1839_v21, %s6083_s18  ;;  %v828_v20 = vld [vmem:[%s6149_s10 + $0x3f8] sm:$0xff]  ;;  %v1876_v21 = vld [vmem:[%s6729_s17 + $0x408] sm:$0xff] }
 0x1e4   : > { %v2156_v26 = vpop.permute.xlu0 %2155  ;;  %v2214_v27 = vpop.permute.xlu1 %2213 }
 0x1e5   : > { %2648 = vst.msk [vmem:[#allocation2 + $0xf0] sm:$0xff] %vm2617_vm2, %v2156_v26  ;;  %2677 = vst.msk [vmem:[#allocation2 + $0x1d8] sm:$0xff] %vm2617_vm2, %v2214_v27  ;;  %v831_v26 = vld [vmem:[%s6149_s10 + $0x410] sm:$0xff]  ;;  %v482_v27 = vld [vmem:[%s6177_s14 + $0x418] sm:$0xff] }
 0x1e6   : > { %2305 = vrot.lane.b32.xlu1 %v1852_v24, %s6083_s18  ;;  %2247 = vrot.lane.b32.xlu0 %v1823_v25, %s6083_s18  ;;  %v498_v24 = vld [vmem:[%s6177_s14 + $0x498] sm:$0xff]  ;;  %v1857_v25 = vld [vmem:[%s6729_s17 + $0x370] sm:$0xff]  ;;  %657 = vst.msk [vmem:[#allocation2 + $0x418] sm:$0xff] %vm525_vm0, %v482_v27 }
 0x1e7   : > { %673 = vst.msk [vmem:[#allocation2 + $0x498] sm:$0xff] %vm525_vm0, %v498_v24  ;;  %v515_v27 = vld [vmem:[%s6177_s14 + $0x520] sm:$0xff] }
 0x1e8   : > { %v2124_v30 = vpop.permute.xlu0 %2123  ;;  %v2182_v31 = vpop.permute.xlu1 %2181  ;;  %690 = vst.msk [vmem:[#allocation2 + $0x520] sm:$0xff] %vm525_vm0, %v515_v27  ;;  %v1885_v27 = vld [vmem:[%s6729_s17 + $0x450] sm:$0xff] }
 0x1e9   : > { %2632 = vst.msk [vmem:[#allocation2 + $0x70] sm:$0xff] %vm2617_vm2, %v2124_v30  ;;  %2661 = vst.msk [vmem:[#allocation2 + $0x158] sm:$0xff] %vm2617_vm2, %v2182_v31  ;;  %v848_v30 = vld [vmem:[%s6149_s10 + $0x498] sm:$0xff]  ;;  %v1893_v31 = vld [vmem:[%s6729_s17 + $0x490] sm:$0xff] }
 0x1ea   : > { %2339 = vrot.lane.b32.xlu1 %v1869_v28, %s6083_s18  ;;  %2281 = vrot.lane.b32.xlu0 %v1840_v29, %s6083_s18 }
 0x1ec   : > { %v2158_v35 = vpop.permute.xlu0 %2157  ;;  %v2216_v36 = vpop.permute.xlu1 %2215 }
 0x1ed   : > { %2649 = vst.msk [vmem:[#allocation2 + $0xf8] sm:$0xff] %vm2617_vm2, %v2158_v35  ;;  %2678 = vst.msk [vmem:[#allocation2 + $0x1e0] sm:$0xff] %vm2617_vm2, %v2216_v36  ;;  %v1877_v35 = vld [vmem:[%s6729_s17 + $0x410] sm:$0xff]  ;;  %v1874_v36 = vld [vmem:[%s6729_s17 + $0x3f8] sm:$0xff] }
 0x1ee   : > { %2307 = vrot.lane.b32.xlu1 %v1853_v32, %s6083_s18  ;;  %2249 = vrot.lane.b32.xlu0 %v1824_v33, %s6083_s18 }
 0x1f0   : > { %v2126_v39 = vpop.permute.xlu0 %2125  ;;  %v2184_v40 = vpop.permute.xlu1 %2183 }
 0x1f1   : > { %2633 = vst.msk [vmem:[#allocation2 + $0x78] sm:$0xff] %vm2617_vm2, %v2126_v39  ;;  %2662 = vst.msk [vmem:[#allocation2 + $0x160] sm:$0xff] %vm2617_vm2, %v2184_v40  ;;  %v861_v40 = vld [vmem:[%s6149_s10 + $0x500] sm:$0xff] }
 0x1f2   : > { %2341 = vrot.lane.b32.xlu1 %v1870_v37, %s6083_s18  ;;  %2283 = vrot.lane.b32.xlu0 %v1841_v38, %s6083_s18  ;;  %v499_v37 = vld [vmem:[%s6177_s14 + $0x4a0] sm:$0xff] }
 0x1f3   : > { %674 = vst.msk [vmem:[#allocation2 + $0x4a0] sm:$0xff] %vm525_vm0, %v499_v37  ;;  %v1910_v37 = vld [vmem:[%s6729_s17 + $0x518] sm:$0xff] }
 0x1f4   : > { %v2218_v43 = vpop.permute.xlu0 %2217  ;;  %v2256_v44 = vpop.permute.xlu1 %2255 }
 0x1f5   : > { %2679 = vst.msk [vmem:[#allocation2 + $0x1e8] sm:$0xff] %vm2617_vm2, %v2218_v43  ;;  %2698 = vst.msk [vmem:[#allocation2 + $0x280] sm:$0xff] %vm2617_vm2, %v2256_v44  ;;  %v1894_v44 = vld [vmem:[%s6729_s17 + $0x498] sm:$0xff] }
 0x1f6   : > { %2309 = vrot.lane.b32.xlu1 %v1854_v41, %s6083_s18  ;;  %2251 = vrot.lane.b32.xlu0 %v1825_v42, %s6083_s18  ;;  %v832_v41 = vld [vmem:[%s6149_s10 + $0x418] sm:$0xff] }
 0x1f8   : > { %v2186_v48 = vpop.permute.xlu0 %2185  ;;  %v2224_v49 = vpop.permute.xlu1 %2223 }
 0x1f9   : > { %2663 = vst.msk [vmem:[#allocation2 + $0x168] sm:$0xff] %vm2617_vm2, %v2186_v48  ;;  %2682 = vst.msk [vmem:[#allocation2 + $0x200] sm:$0xff] %vm2617_vm2, %v2224_v49  ;;  %v483_v49 = vld [vmem:[%s6177_s14 + $0x420] sm:$0xff] }
 0x1fa   : > { %2285 = vrot.lane.b32.xlu1 %v1842_v46, %s6083_s18  ;;  %1337 = vrot.lane.b32.xlu0 %v845_v47, %s6082_s11  ;;  %v512_v46 = vld [vmem:[%s6177_s14 + $0x508] sm:$0xff]  ;;  %658 = vst.msk [vmem:[#allocation2 + $0x420] sm:$0xff] %vm525_vm0, %v483_v49 }
 0x1fb   : > { %687 = vst.msk [vmem:[#allocation2 + $0x508] sm:$0xff] %vm525_vm0, %v512_v46  ;;  %v1882_v46 = vld [vmem:[%s6729_s17 + $0x438] sm:$0xff] }
 0x1fc   : > { %v2220_v52 = vpop.permute.xlu0 %2219  ;;  %v2258_v53 = vpop.permute.xlu1 %2257 }
 0x1fd   : > { %2680 = vst.msk [vmem:[#allocation2 + $0x1f0] sm:$0xff] %vm2617_vm2, %v2220_v52  ;;  %2699 = vst.msk [vmem:[#allocation2 + $0x288] sm:$0xff] %vm2617_vm2, %v2258_v53  ;;  %v500_v52 = vld [vmem:[%s6177_s14 + $0x4a8] sm:$0xff] }
 0x1fe   : > { %1305 = vrot.lane.b32.xlu1 %v829_v50, %s6082_s11  ;;  %2343 = vrot.lane.b32.xlu0 %v1871_v51, %s6083_s18  ;;  %v1878_v50 = vld [vmem:[%s6729_s17 + $0x418] sm:$0xff]  ;;  %v849_v51 = vld [vmem:[%s6149_s10 + $0x4a0] sm:$0xff]  ;;  %675 = vst.msk [vmem:[#allocation2 + $0x4a8] sm:$0xff] %vm525_vm0, %v500_v52 }
 0x1ff   : > { %v1911_v52 = vld [vmem:[%s6729_s17 + $0x520] sm:$0xff] }
 0x200   : > { %v2188_v58 = vpop.permute.xlu0 %2187  ;;  %v2226_v59 = vpop.permute.xlu1 %2225 }
 0x201   : > { %2664 = vst.msk [vmem:[#allocation2 + $0x170] sm:$0xff] %vm2617_vm2, %v2188_v58  ;;  %2683 = vst.msk [vmem:[#allocation2 + $0x208] sm:$0xff] %vm2617_vm2, %v2226_v59  ;;  %v1895_v59 = vld [vmem:[%s6729_s17 + $0x4a0] sm:$0xff] }
 0x202   : > { %2311 = vrot.lane.b32.xlu1 %v1855_v55, %s6083_s18  ;;  %2253 = vrot.lane.b32.xlu0 %v1826_v56, %s6083_s18  ;;  %v833_v55 = vld [vmem:[%s6149_s10 + $0x420] sm:$0xff] }
 0x203   : > { %v1907_v56 = vld [vmem:[%s6729_s17 + $0x500] sm:$0xff] }
 0x204   : > { %v2222_v62 = vpop.permute.xlu0 %2221  ;;  %v2260_v63 = vpop.permute.xlu1 %2259 }
 0x205   : > { %2681 = vst.msk [vmem:[#allocation2 + $0x1f8] sm:$0xff] %vm2617_vm2, %v2222_v62  ;;  %2700 = vst.msk [vmem:[#allocation2 + $0x290] sm:$0xff] %vm2617_vm2, %v2260_v63 }
 0x206   : > { %1339 = vrot.lane.b32.xlu1 %v846_v60, %s6082_s11  ;;  %2383 = vrot.lane.b32.xlu0 %v1891_v61, %s6083_s18  ;;  %v862_v60 = vld [vmem:[%s6149_s10 + $0x508] sm:$0xff]  ;;  %v513_v61 = vld [vmem:[%s6177_s14 + $0x510] sm:$0xff] }
 0x207   : > { %688 = vst.msk [vmem:[#allocation2 + $0x510] sm:$0xff] %vm525_vm0, %v513_v61  ;;  %v1883_v61 = vld [vmem:[%s6729_s17 + $0x440] sm:$0xff] }
 0x208   : > { %v2190_v4 = vpop.permute.xlu0 %2189  ;;  %v2228_v5 = vpop.permute.xlu1 %2227 }
 0x209   : > { %2665 = vst.msk [vmem:[#allocation2 + $0x178] sm:$0xff] %vm2617_vm2, %v2190_v4  ;;  %2684 = vst.msk [vmem:[#allocation2 + $0x210] sm:$0xff] %vm2617_vm2, %v2228_v5 }
 0x20a   : > { %2351 = vrot.lane.b32.xlu1 %v1875_v1, %s6083_s18  ;;  %2345 = vrot.lane.b32.xlu0 %v1872_v2, %s6083_s18  ;;  %v1879_v1 = vld [vmem:[%s6729_s17 + $0x420] sm:$0xff]  ;;  %v850_v2 = vld [vmem:[%s6149_s10 + $0x4a8] sm:$0xff] }
 0x20c   : > { %v2262_v8 = vpop.permute.xlu0 %2261  ;;  %v2320_v9 = vpop.permute.xlu1 %2319 }
 0x20d   : > { %2701 = vst.msk [vmem:[#allocation2 + $0x298] sm:$0xff] %vm2617_vm2, %v2262_v8  ;;  %2730 = vst.msk [vmem:[#allocation2 + $0x380] sm:$0xff] %vm2617_vm2, %v2320_v9 }
 0x20e   : > { %1307 = vrot.lane.b32.xlu1 %v830_v6, %s6082_s11  ;;  %1301 = vrot.lane.b32.xlu0 %v827_v7, %s6082_s11  ;;  %v834_v6 = vld [vmem:[%s6149_s10 + $0x428] sm:$0xff] }
 0x20f   : > { %v1908_v7 = vld [vmem:[%s6729_s17 + $0x508] sm:$0xff] }
 0x210   : > { %v2230_v13 = vpop.permute.xlu0 %2229  ;;  %v2288_v14 = vpop.permute.xlu1 %2287 }
 0x211   : > { %2685 = vst.msk [vmem:[#allocation2 + $0x218] sm:$0xff] %vm2617_vm2, %v2230_v13  ;;  %2714 = vst.msk [vmem:[#allocation2 + $0x300] sm:$0xff] %vm2617_vm2, %v2288_v14 }
 0x212   : > { %2385 = vrot.lane.b32.xlu1 %v1892_v10, %s6083_s18  ;;  %2313 = vrot.lane.b32.xlu0 %v1856_v11, %s6083_s18  ;;  %v1896_v10 = vld [vmem:[%s6729_s17 + $0x4a8] sm:$0xff]  ;;  %v863_v11 = vld [vmem:[%s6149_s10 + $0x510] sm:$0xff] }
 0x214   : > { %v2264_v18 = vpop.permute.xlu0 %2263  ;;  %v2322_v19 = vpop.permute.xlu1 %2321 }
 0x215   : > { %2702 = vst.msk [vmem:[#allocation2 + $0x2a0] sm:$0xff] %vm2617_vm2, %v2264_v18  ;;  %2731 = vst.msk [vmem:[#allocation2 + $0x388] sm:$0xff] %vm2617_vm2, %v2322_v19  ;;  %v502_v18 = vld [vmem:[%s6177_s14 + $0x4b8] sm:$0xff] }
 0x216   : > { %2347 = vrot.lane.b32.xlu1 %v1873_v16, %s6083_s18  ;;  %1341 = vrot.lane.b32.xlu0 %v847_v17, %s6082_s11  ;;  %v1880_v16 = vld [vmem:[%s6729_s17 + $0x428] sm:$0xff]  ;;  %v851_v17 = vld [vmem:[%s6149_s10 + $0x4b0] sm:$0xff]  ;;  %677 = vst.msk [vmem:[#allocation2 + $0x4b8] sm:$0xff] %vm525_vm0, %v502_v18 }
 0x217   : > { %v1913_v18 = vld [vmem:[%s6729_s17 + $0x530] sm:$0xff] }
 0x218   : > { %v2232_v22 = vpop.permute.xlu0 %2231  ;;  %v2290_v23 = vpop.permute.xlu1 %2289 }
 0x219   : > { %2686 = vst.msk [vmem:[#allocation2 + $0x220] sm:$0xff] %vm2617_vm2, %v2232_v22  ;;  %2715 = vst.msk [vmem:[#allocation2 + $0x308] sm:$0xff] %vm2617_vm2, %v2290_v23  ;;  %v1909_v22 = vld [vmem:[%s6729_s17 + $0x510] sm:$0xff] }
 0x21a   : > { %1303 = vrot.lane.b32.xlu1 %v828_v20, %s6082_s11  ;;  %2353 = vrot.lane.b32.xlu0 %v1876_v21, %s6083_s18  ;;  %v835_v21 = vld [vmem:[%s6149_s10 + $0x430] sm:$0xff] }
 0x21c   : > { %v2266_v28 = vpop.permute.xlu0 %2265  ;;  %v2324_v29 = vpop.permute.xlu1 %2323 }
 0x21d   : > { %2703 = vst.msk [vmem:[#allocation2 + $0x2a8] sm:$0xff] %vm2617_vm2, %v2266_v28  ;;  %2732 = vst.msk [vmem:[#allocation2 + $0x390] sm:$0xff] %vm2617_vm2, %v2324_v29 }
 0x21e   : > { %2315 = vrot.lane.b32.xlu1 %v1857_v25, %s6083_s18  ;;  %1309 = vrot.lane.b32.xlu0 %v831_v26, %s6082_s11  ;;  %v1897_v25 = vld [vmem:[%s6729_s17 + $0x4b0] sm:$0xff]  ;;  %v864_v26 = vld [vmem:[%s6149_s10 + $0x518] sm:$0xff] }
 0x220   : > { %v2234_v32 = vpop.permute.xlu0 %2233  ;;  %v2292_v33 = vpop.permute.xlu1 %2291 }
 0x221   : > { %2687 = vst.msk [vmem:[#allocation2 + $0x228] sm:$0xff] %vm2617_vm2, %v2234_v32  ;;  %2716 = vst.msk [vmem:[#allocation2 + $0x310] sm:$0xff] %vm2617_vm2, %v2292_v33  ;;  %v852_v32 = vld [vmem:[%s6149_s10 + $0x4b8] sm:$0xff]  ;;  %v503_v33 = vld [vmem:[%s6177_s14 + $0x4c0] sm:$0xff] }
 0x222   : > { %1343 = vrot.lane.b32.xlu1 %v848_v30, %s6082_s11  ;;  %2387 = vrot.lane.b32.xlu0 %v1893_v31, %s6083_s18  ;;  %v486_v30 = vld [vmem:[%s6177_s14 + $0x438] sm:$0xff]  ;;  %v1881_v31 = vld [vmem:[%s6729_s17 + $0x430] sm:$0xff]  ;;  %678 = vst.msk [vmem:[#allocation2 + $0x4c0] sm:$0xff] %vm525_vm0, %v503_v33 }
 0x223   : > { %661 = vst.msk [vmem:[#allocation2 + $0x438] sm:$0xff] %vm525_vm0, %v486_v30  ;;  %v1914_v33 = vld [vmem:[%s6729_s17 + $0x538] sm:$0xff] }
 0x224   : > { %v2268_v38 = vpop.permute.xlu0 %2267  ;;  %v2326_v39 = vpop.permute.xlu1 %2325 }
 0x225   : > { %2704 = vst.msk [vmem:[#allocation2 + $0x2b0] sm:$0xff] %vm2617_vm2, %v2268_v38  ;;  %2733 = vst.msk [vmem:[#allocation2 + $0x398] sm:$0xff] %vm2617_vm2, %v2326_v39 }
 0x226   : > { %2355 = vrot.lane.b32.xlu1 %v1877_v35, %s6083_s18  ;;  %2349 = vrot.lane.b32.xlu0 %v1874_v36, %s6083_s18  ;;  %v836_v36 = vld [vmem:[%s6149_s10 + $0x438] sm:$0xff] }
 0x228   : > { %v2236_v42 = vpop.permute.xlu0 %2235  ;;  %v2294_v43 = vpop.permute.xlu1 %2293 }
 0x229   : > { %2688 = vst.msk [vmem:[#allocation2 + $0x230] sm:$0xff] %vm2617_vm2, %v2236_v42  ;;  %2717 = vst.msk [vmem:[#allocation2 + $0x318] sm:$0xff] %vm2617_vm2, %v2294_v43  ;;  %v516_v42 = vld [vmem:[%s6177_s14 + $0x528] sm:$0xff] }
 0x22a   : > { %1369 = vrot.lane.b32.xlu1 %v861_v40, %s6082_s11  ;;  %1311 = vrot.lane.b32.xlu0 %v832_v41, %s6082_s11  ;;  %v1898_v40 = vld [vmem:[%s6729_s17 + $0x4b8] sm:$0xff]  ;;  %v865_v41 = vld [vmem:[%s6149_s10 + $0x520] sm:$0xff]  ;;  %691 = vst.msk [vmem:[#allocation2 + $0x528] sm:$0xff] %vm525_vm0, %v516_v42 }
 0x22b   : > { %v1886_v42 = vld [vmem:[%s6729_s17 + $0x458] sm:$0xff] }
 0x22c   : > { %v2270_v47 = vpop.permute.xlu0 %2269  ;;  %v2328_v48 = vpop.permute.xlu1 %2327 }
 0x22d   : > { %2705 = vst.msk [vmem:[#allocation2 + $0x2b8] sm:$0xff] %vm2617_vm2, %v2270_v47  ;;  %2734 = vst.msk [vmem:[#allocation2 + $0x3a0] sm:$0xff] %vm2617_vm2, %v2328_v48  ;;  %v853_v47 = vld [vmem:[%s6149_s10 + $0x4c0] sm:$0xff]  ;;  %v504_v48 = vld [vmem:[%s6177_s14 + $0x4c8] sm:$0xff] }
 0x22e   : > { %2389 = vrot.lane.b32.xlu1 %v1894_v44, %s6083_s18  ;;  %2317 = vrot.lane.b32.xlu0 %v1858_v45, %s6083_s18  ;;  %v487_v45 = vld [vmem:[%s6177_s14 + $0x440] sm:$0xff]  ;;  %679 = vst.msk [vmem:[#allocation2 + $0x4c8] sm:$0xff] %vm525_vm0, %v504_v48 }
 0x22f   : > { %662 = vst.msk [vmem:[#allocation2 + $0x440] sm:$0xff] %vm525_vm0, %v487_v45  ;;  %v1915_v48 = vld [vmem:[%s6729_s17 + $0x540] sm:$0xff] }
 0x230   : > { %v2238_v53 = vpop.permute.xlu0 %2237  ;;  %v2296_v54 = vpop.permute.xlu1 %2295 }
 0x231   : > { %2689 = vst.msk [vmem:[#allocation2 + $0x238] sm:$0xff] %vm2617_vm2, %v2238_v53  ;;  %2718 = vst.msk [vmem:[#allocation2 + $0x320] sm:$0xff] %vm2617_vm2, %v2296_v54 }
 0x232   : > { %2357 = vrot.lane.b32.xlu1 %v1878_v50, %s6083_s18  ;;  %1345 = vrot.lane.b32.xlu0 %v849_v51, %s6082_s11  ;;  %v837_v51 = vld [vmem:[%s6149_s10 + $0x440] sm:$0xff] }
 0x234   : > { %v2272_v57 = vpop.permute.xlu0 %2271  ;;  %v2330_v58 = vpop.permute.xlu1 %2329 }
 0x235   : > { %2706 = vst.msk [vmem:[#allocation2 + $0x2c0] sm:$0xff] %vm2617_vm2, %v2272_v57  ;;  %2735 = vst.msk [vmem:[#allocation2 + $0x3a8] sm:$0xff] %vm2617_vm2, %v2330_v58  ;;  %v517_v57 = vld [vmem:[%s6177_s14 + $0x530] sm:$0xff] }
 0x236   : > { %1313 = vrot.lane.b32.xlu1 %v833_v55, %s6082_s11  ;;  %2415 = vrot.lane.b32.xlu0 %v1907_v56, %s6083_s18  ;;  %v1899_v55 = vld [vmem:[%s6729_s17 + $0x4c0] sm:$0xff]  ;;  %v866_v56 = vld [vmem:[%s6149_s10 + $0x528] sm:$0xff]  ;;  %692 = vst.msk [vmem:[#allocation2 + $0x530] sm:$0xff] %vm525_vm0, %v517_v57 }
 0x237   : > { %v1887_v57 = vld [vmem:[%s6729_s17 + $0x460] sm:$0xff] }
 0x238   : > { %v2240_v62 = vpop.permute.xlu0 %2239  ;;  %v2298_v63 = vpop.permute.xlu1 %2297 }
 0x239   : > { %2690 = vst.msk [vmem:[#allocation2 + $0x240] sm:$0xff] %vm2617_vm2, %v2240_v62  ;;  %2719 = vst.msk [vmem:[#allocation2 + $0x328] sm:$0xff] %vm2617_vm2, %v2298_v63  ;;  %v854_v62 = vld [vmem:[%s6149_s10 + $0x4c8] sm:$0xff]  ;;  %v505_v63 = vld [vmem:[%s6177_s14 + $0x4d0] sm:$0xff] }
 0x23a   : > { %2391 = vrot.lane.b32.xlu1 %v1895_v59, %s6083_s18  ;;  %1371 = vrot.lane.b32.xlu0 %v862_v60, %s6082_s11  ;;  %v488_v60 = vld [vmem:[%s6177_s14 + $0x448] sm:$0xff]  ;;  %680 = vst.msk [vmem:[#allocation2 + $0x4d0] sm:$0xff] %vm525_vm0, %v505_v63 }
 0x23b   : > { %663 = vst.msk [vmem:[#allocation2 + $0x448] sm:$0xff] %vm525_vm0, %v488_v60  ;;  %v1916_v63 = vld [vmem:[%s6729_s17 + $0x548] sm:$0xff] }
 0x23c   : > { %v2274_v4 = vpop.permute.xlu0 %2273  ;;  %v2332_v5 = vpop.permute.xlu1 %2331 }
 0x23d   : > { %2707 = vst.msk [vmem:[#allocation2 + $0x2c8] sm:$0xff] %vm2617_vm2, %v2274_v4  ;;  %2736 = vst.msk [vmem:[#allocation2 + $0x3b0] sm:$0xff] %vm2617_vm2, %v2332_v5 }
 0x23e   : > { %2359 = vrot.lane.b32.xlu1 %v1879_v1, %s6083_s18  ;;  %1347 = vrot.lane.b32.xlu0 %v850_v2, %s6082_s11  ;;  %v838_v2 = vld [vmem:[%s6149_s10 + $0x448] sm:$0xff] }
 0x240   : > { %v2242_v8 = vpop.permute.xlu0 %2241  ;;  %v2300_v9 = vpop.permute.xlu1 %2299 }
 0x241   : > { %2691 = vst.msk [vmem:[#allocation2 + $0x248] sm:$0xff] %vm2617_vm2, %v2242_v8  ;;  %2720 = vst.msk [vmem:[#allocation2 + $0x330] sm:$0xff] %vm2617_vm2, %v2300_v9  ;;  %v518_v8 = vld [vmem:[%s6177_s14 + $0x538] sm:$0xff] }
 0x242   : > { %1315 = vrot.lane.b32.xlu1 %v834_v6, %s6082_s11  ;;  %2417 = vrot.lane.b32.xlu0 %v1908_v7, %s6083_s18  ;;  %v1900_v6 = vld [vmem:[%s6729_s17 + $0x4c8] sm:$0xff]  ;;  %v867_v7 = vld [vmem:[%s6149_s10 + $0x530] sm:$0xff]  ;;  %693 = vst.msk [vmem:[#allocation2 + $0x538] sm:$0xff] %vm525_vm0, %v518_v8 }
 0x243   : > { %v1888_v8 = vld [vmem:[%s6729_s17 + $0x468] sm:$0xff] }
 0x244   : > { %v2276_v13 = vpop.permute.xlu0 %2275  ;;  %v2334_v14 = vpop.permute.xlu1 %2333 }
 0x245   : > { %2708 = vst.msk [vmem:[#allocation2 + $0x2d0] sm:$0xff] %vm2617_vm2, %v2276_v13  ;;  %2737 = vst.msk [vmem:[#allocation2 + $0x3b8] sm:$0xff] %vm2617_vm2, %v2334_v14  ;;  %v855_v13 = vld [vmem:[%s6149_s10 + $0x4d0] sm:$0xff]  ;;  %v506_v14 = vld [vmem:[%s6177_s14 + $0x4d8] sm:$0xff] }
 0x246   : > { %2393 = vrot.lane.b32.xlu1 %v1896_v10, %s6083_s18  ;;  %1373 = vrot.lane.b32.xlu0 %v863_v11, %s6082_s11  ;;  %v489_v11 = vld [vmem:[%s6177_s14 + $0x450] sm:$0xff]  ;;  %681 = vst.msk [vmem:[#allocation2 + $0x4d8] sm:$0xff] %vm525_vm0, %v506_v14 }
 0x247   : > { %664 = vst.msk [vmem:[#allocation2 + $0x450] sm:$0xff] %vm525_vm0, %v489_v11  ;;  %v1917_v14 = vld [vmem:[%s6729_s17 + $0x550] sm:$0xff] }
 0x248   : > { %v2244_v19 = vpop.permute.xlu0 %2243  ;;  %v2302_v20 = vpop.permute.xlu1 %2301 }
 0x249   : > { %2692 = vst.msk [vmem:[#allocation2 + $0x250] sm:$0xff] %vm2617_vm2, %v2244_v19  ;;  %2721 = vst.msk [vmem:[#allocation2 + $0x338] sm:$0xff] %vm2617_vm2, %v2302_v20 }
 0x24a   : > { %2361 = vrot.lane.b32.xlu1 %v1880_v16, %s6083_s18  ;;  %1349 = vrot.lane.b32.xlu0 %v851_v17, %s6082_s11  ;;  %v839_v17 = vld [vmem:[%s6149_s10 + $0x450] sm:$0xff] }
 0x24c   : > { %v2278_v23 = vpop.permute.xlu0 %2277  ;;  %v2336_v24 = vpop.permute.xlu1 %2335 }
 0x24d   : > { %2709 = vst.msk [vmem:[#allocation2 + $0x2d8] sm:$0xff] %vm2617_vm2, %v2278_v23  ;;  %2738 = vst.msk [vmem:[#allocation2 + $0x3c0] sm:$0xff] %vm2617_vm2, %v2336_v24  ;;  %v519_v23 = vld [vmem:[%s6177_s14 + $0x540] sm:$0xff] }
 0x24e   : > { %1317 = vrot.lane.b32.xlu1 %v835_v21, %s6082_s11  ;;  %2419 = vrot.lane.b32.xlu0 %v1909_v22, %s6083_s18  ;;  %v1901_v21 = vld [vmem:[%s6729_s17 + $0x4d0] sm:$0xff]  ;;  %v868_v22 = vld [vmem:[%s6149_s10 + $0x538] sm:$0xff]  ;;  %694 = vst.msk [vmem:[#allocation2 + $0x540] sm:$0xff] %vm525_vm0, %v519_v23 }
 0x24f   : > { %v1889_v23 = vld [vmem:[%s6729_s17 + $0x470] sm:$0xff] }
 0x250   : > { %v2246_v28 = vpop.permute.xlu0 %2245  ;;  %v2304_v29 = vpop.permute.xlu1 %2303 }
 0x251   : > { %2693 = vst.msk [vmem:[#allocation2 + $0x258] sm:$0xff] %vm2617_vm2, %v2246_v28  ;;  %2722 = vst.msk [vmem:[#allocation2 + $0x340] sm:$0xff] %vm2617_vm2, %v2304_v29  ;;  %v856_v28 = vld [vmem:[%s6149_s10 + $0x4d8] sm:$0xff]  ;;  %v507_v29 = vld [vmem:[%s6177_s14 + $0x4e0] sm:$0xff] }
 0x252   : > { %2395 = vrot.lane.b32.xlu1 %v1897_v25, %s6083_s18  ;;  %1375 = vrot.lane.b32.xlu0 %v864_v26, %s6082_s11  ;;  %v490_v26 = vld [vmem:[%s6177_s14 + $0x458] sm:$0xff]  ;;  %682 = vst.msk [vmem:[#allocation2 + $0x4e0] sm:$0xff] %vm525_vm0, %v507_v29  ;;  %v524_v29 = vld [vmem:[%s6177_s14 + $0x568] sm:$0x3] }
 0x253   : > { %665 = vst.msk [vmem:[#allocation2 + $0x458] sm:$0xff] %vm525_vm0, %v490_v26 }
 0x254   : > { %v2280_v34 = vpop.permute.xlu0 %2279  ;;  %v2338_v35 = vpop.permute.xlu1 %2337  ;;  %700 = vst.msk [vmem:[#allocation2 + $0x568] sm:$0x3] %vm699_vm3, %v524_v29  ;;  %v2818_v29 = vld [vmem:[#allocation2 + $0xc8] sm:$0xff] }
 0x255   : > { %2710 = vst.msk [vmem:[#allocation2 + $0x2e0] sm:$0xff] %vm2617_vm2, %v2280_v34  ;;  %2739 = vst.msk [vmem:[#allocation2 + $0x3c8] sm:$0xff] %vm2617_vm2, %v2338_v35 }
 0x256   : > { %2363 = vrot.lane.b32.xlu1 %v1881_v31, %s6083_s18  ;;  %1351 = vrot.lane.b32.xlu0 %v852_v32, %s6082_s11  ;;  %v840_v32 = vld [vmem:[%s6149_s10 + $0x458] sm:$0xff] }
 0x258   : > { %v2248_v38 = vpop.permute.xlu0 %2247  ;;  %v2306_v39 = vpop.permute.xlu1 %2305 }
 0x259   : > { %2694 = vst.msk [vmem:[#allocation2 + $0x260] sm:$0xff] %vm2617_vm2, %v2248_v38  ;;  %2723 = vst.msk [vmem:[#allocation2 + $0x348] sm:$0xff] %vm2617_vm2, %v2306_v39  ;;  %v520_v38 = vld [vmem:[%s6177_s14 + $0x548] sm:$0xff] }
 0x25a   : > { %1319 = vrot.lane.b32.xlu1 %v836_v36, %s6082_s11  ;;  %2421 = vrot.lane.b32.xlu0 %v1910_v37, %s6083_s18  ;;  %v1902_v36 = vld [vmem:[%s6729_s17 + $0x4d8] sm:$0xff]  ;;  %v869_v37 = vld [vmem:[%s6149_s10 + $0x540] sm:$0xff]  ;;  %695 = vst.msk [vmem:[#allocation2 + $0x548] sm:$0xff] %vm525_vm0, %v520_v38 }
 0x25c   : > { %v2282_v43 = vpop.permute.xlu0 %2281  ;;  %v2340_v44 = vpop.permute.xlu1 %2339 }
 0x25d   : > { %2711 = vst.msk [vmem:[#allocation2 + $0x2e8] sm:$0xff] %vm2617_vm2, %v2282_v43  ;;  %2740 = vst.msk [vmem:[#allocation2 + $0x3d0] sm:$0xff] %vm2617_vm2, %v2340_v44  ;;  %v857_v43 = vld [vmem:[%s6149_s10 + $0x4e0] sm:$0xff]  ;;  %v508_v44 = vld [vmem:[%s6177_s14 + $0x4e8] sm:$0xff] }
 0x25e   : > { %2397 = vrot.lane.b32.xlu1 %v1898_v40, %s6083_s18  ;;  %1377 = vrot.lane.b32.xlu0 %v865_v41, %s6082_s11  ;;  %v491_v41 = vld [vmem:[%s6177_s14 + $0x460] sm:$0xff]  ;;  %683 = vst.msk [vmem:[#allocation2 + $0x4e8] sm:$0xff] %vm525_vm0, %v508_v44 }
 0x25f   : > { %666 = vst.msk [vmem:[#allocation2 + $0x460] sm:$0xff] %vm525_vm0, %v491_v41  ;;  %v874_v41 = vld [vmem:[%s6149_s10 + $0x568] sm:$0x3] }
 0x260   : > { %v2250_v49 = vpop.permute.xlu0 %2249  ;;  %v2308_v50 = vpop.permute.xlu1 %2307 }
 0x261   : > { %2695 = vst.msk [vmem:[#allocation2 + $0x268] sm:$0xff] %vm2617_vm2, %v2250_v49  ;;  %2724 = vst.msk [vmem:[#allocation2 + $0x350] sm:$0xff] %vm2617_vm2, %v2308_v50 }
 0x262   : > { %2365 = vrot.lane.b32.xlu1 %v1882_v46, %s6083_s18  ;;  %1353 = vrot.lane.b32.xlu0 %v853_v47, %s6082_s11  ;;  %v841_v47 = vld [vmem:[%s6149_s10 + $0x460] sm:$0xff] }
 0x264   : > { %v2284_v53 = vpop.permute.xlu0 %2283  ;;  %v2342_v54 = vpop.permute.xlu1 %2341 }
 0x265   : > { %2712 = vst.msk [vmem:[#allocation2 + $0x2f0] sm:$0xff] %vm2617_vm2, %v2284_v53  ;;  %2741 = vst.msk [vmem:[#allocation2 + $0x3d8] sm:$0xff] %vm2617_vm2, %v2342_v54  ;;  %v521_v53 = vld [vmem:[%s6177_s14 + $0x550] sm:$0xff] }
 0x266   : > { %1321 = vrot.lane.b32.xlu1 %v837_v51, %s6082_s11  ;;  %2423 = vrot.lane.b32.xlu0 %v1911_v52, %s6083_s18  ;;  %v1903_v51 = vld [vmem:[%s6729_s17 + $0x4e0] sm:$0xff]  ;;  %v870_v52 = vld [vmem:[%s6149_s10 + $0x548] sm:$0xff]  ;;  %696 = vst.msk [vmem:[#allocation2 + $0x550] sm:$0xff] %vm525_vm0, %v521_v53 }
 0x268   : > { %v2252_v58 = vpop.permute.xlu0 %2251  ;;  %v2310_v59 = vpop.permute.xlu1 %2309 }
 0x269   : > { %2696 = vst.msk [vmem:[#allocation2 + $0x270] sm:$0xff] %vm2617_vm2, %v2252_v58  ;;  %2725 = vst.msk [vmem:[#allocation2 + $0x358] sm:$0xff] %vm2617_vm2, %v2310_v59  ;;  %v858_v58 = vld [vmem:[%s6149_s10 + $0x4e8] sm:$0xff]  ;;  %v509_v59 = vld [vmem:[%s6177_s14 + $0x4f0] sm:$0xff] }
 0x26a   : > { %2399 = vrot.lane.b32.xlu1 %v1899_v55, %s6083_s18  ;;  %1379 = vrot.lane.b32.xlu0 %v866_v56, %s6082_s11  ;;  %v492_v56 = vld [vmem:[%s6177_s14 + $0x468] sm:$0xff]  ;;  %684 = vst.msk [vmem:[#allocation2 + $0x4f0] sm:$0xff] %vm525_vm0, %v509_v59 }
 0x26b   : > { %667 = vst.msk [vmem:[#allocation2 + $0x468] sm:$0xff] %vm525_vm0, %v492_v56 }
 0x26c   : > { %v1338_v0 = vpop.permute.xlu0 %1337  ;;  %v2286_v1 = vpop.permute.xlu1 %2285 }
 0x26d   : > { %1716 = vst.msk [vmem:[#allocation2 + $0x480] sm:$0xff] %vm1571_vm1, %v1338_v0 }
 0x26e   : > { %2713 = vst.msk [vmem:[#allocation2 + $0x2f8] sm:$0xff] %vm2617_vm2, %v2286_v1  ;;  %2367 = vrot.lane.b32.xlu1 %v1883_v61, %s6083_s18  ;;  %1355 = vrot.lane.b32.xlu0 %v854_v62, %s6082_s11  ;;  %v842_v62 = vld [vmem:[%s6149_s10 + $0x468] sm:$0xff] }
 0x270   : > { %v2344_v4 = vpop.permute.xlu0 %2343  ;;  %v1306_v5 = vpop.permute.xlu1 %1305 }
 0x271   : > { %2742 = vst.msk [vmem:[#allocation2 + $0x3e0] sm:$0xff] %vm2617_vm2, %v2344_v4  ;;  %v522_v4 = vld [vmem:[%s6177_s14 + $0x558] sm:$0xff] }
 0x272   : > { %1700 = vst.msk [vmem:[#allocation2 + $0x400] sm:$0xff] %vm1571_vm1, %v1306_v5  ;;  %1323 = vrot.lane.b32.xlu1 %v838_v2, %s6082_s11  ;;  %2425 = vrot.lane.b32.xlu0 %v1912_v3, %s6083_s18  ;;  %v1904_v2 = vld [vmem:[%s6729_s17 + $0x4e8] sm:$0xff]  ;;  %v871_v3 = vld [vmem:[%s6149_s10 + $0x550] sm:$0xff] }
 0x273   : > { %697 = vst.msk [vmem:[#allocation2 + $0x558] sm:$0xff] %vm525_vm0, %v522_v4  ;;  %v2793_v4 = vld [vmem:[#allocation2] sm:$0xff] }
 0x274   : > { %v2254_v9 = vpop.permute.xlu0 %2253  ;;  %v2312_v10 = vpop.permute.xlu1 %2311 }
 0x275   : > { %2697 = vst.msk [vmem:[#allocation2 + $0x278] sm:$0xff] %vm2617_vm2, %v2254_v9  ;;  %2726 = vst.msk [vmem:[#allocation2 + $0x360] sm:$0xff] %vm2617_vm2, %v2312_v10  ;;  %v859_v9 = vld [vmem:[%s6149_s10 + $0x4f0] sm:$0xff]  ;;  %v510_v10 = vld [vmem:[%s6177_s14 + $0x4f8] sm:$0xff] }
 0x276   : > { %2401 = vrot.lane.b32.xlu1 %v1900_v6, %s6083_s18  ;;  %1381 = vrot.lane.b32.xlu0 %v867_v7, %s6082_s11  ;;  %v493_v7 = vld [vmem:[%s6177_s14 + $0x470] sm:$0xff]  ;;  %685 = vst.msk [vmem:[#allocation2 + $0x4f8] sm:$0xff] %vm525_vm0, %v510_v10 }
 0x277   : > { %668 = vst.msk [vmem:[#allocation2 + $0x470] sm:$0xff] %vm525_vm0, %v493_v7 }
 0x278   : > { %v2384_v15 = vpop.permute.xlu0 %2383  ;;  %v1340_v16 = vpop.permute.xlu1 %1339 }
 0x279   : > { %2762 = vst.msk [vmem:[#allocation2 + $0x480] sm:$0xff] %vm2617_vm2, %v2384_v15 }
 0x27a   : > { %1717 = vst.msk [vmem:[#allocation2 + $0x488] sm:$0xff] %vm1571_vm1, %v1340_v16  ;;  %2369 = vrot.lane.b32.xlu1 %v1884_v12, %s6083_s18  ;;  %1357 = vrot.lane.b32.xlu0 %v855_v13, %s6082_s11  ;;  %v843_v13 = vld [vmem:[%s6149_s10 + $0x470] sm:$0xff] }
 0x27c   : > { %v2346_v19 = vpop.permute.xlu0 %2345  ;;  %v2352_v20 = vpop.permute.xlu1 %2351 }
 0x27d   : > { %2743 = vst.msk [vmem:[#allocation2 + $0x3e8] sm:$0xff] %vm2617_vm2, %v2346_v19  ;;  %2746 = vst.msk [vmem:[#allocation2 + $0x400] sm:$0xff] %vm2617_vm2, %v2352_v20  ;;  %v523_v19 = vld [vmem:[%s6177_s14 + $0x560] sm:$0xff] }
 0x27e   : > { %1325 = vrot.lane.b32.xlu1 %v839_v17, %s6082_s11  ;;  %2427 = vrot.lane.b32.xlu0 %v1913_v18, %s6083_s18  ;;  %v1905_v17 = vld [vmem:[%s6729_s17 + $0x4f0] sm:$0xff]  ;;  %v872_v18 = vld [vmem:[%s6149_s10 + $0x558] sm:$0xff]  ;;  %698 = vst.msk [vmem:[#allocation2 + $0x560] sm:$0xff] %vm525_vm0, %v523_v19 }
 0x280   : > { %v1302_v24 = vpop.permute.xlu0 %1301  ;;  %v1308_v25 = vpop.permute.xlu1 %1307 }
 0x281   : > { %1698 = vst.msk [vmem:[#allocation2 + $0x3f0] sm:$0xff] %vm1571_vm1, %v1302_v24  ;;  %1701 = vst.msk [vmem:[#allocation2 + $0x408] sm:$0xff] %vm1571_vm1, %v1308_v25  ;;  %v860_v24 = vld [vmem:[%s6149_s10 + $0x4f8] sm:$0xff] }
 0x282   : > { %2403 = vrot.lane.b32.xlu1 %v1901_v21, %s6083_s18  ;;  %1383 = vrot.lane.b32.xlu0 %v868_v22, %s6082_s11  ;;  %v494_v22 = vld [vmem:[%s6177_s14 + $0x478] sm:$0xff] }
 0x283   : > { %669 = vst.msk [vmem:[#allocation2 + $0x478] sm:$0xff] %vm525_vm0, %v494_v22 }
 0x284   : > { %v2314_v30 = vpop.permute.xlu0 %2313  ;;  %v2386_v31 = vpop.permute.xlu1 %2385 }
 0x285   : > { %2727 = vst.msk [vmem:[#allocation2 + $0x368] sm:$0xff] %vm2617_vm2, %v2314_v30  ;;  %2763 = vst.msk [vmem:[#allocation2 + $0x488] sm:$0xff] %vm2617_vm2, %v2386_v31 }
 0x286   : > { %2371 = vrot.lane.b32.xlu1 %v1885_v27, %s6083_s18  ;;  %1359 = vrot.lane.b32.xlu0 %v856_v28, %s6082_s11  ;;  %v844_v27 = vld [vmem:[%s6149_s10 + $0x478] sm:$0xff] }
 0x287   : > { %v1918_v28 = vld [vmem:[%s6729_s17 + $0x558] sm:$0xff] }
 0x288   : > { %v1342_v34 = vpop.permute.xlu0 %1341  ;;  %v2348_v35 = vpop.permute.xlu1 %2347 }
 0x289   : > { %1718 = vst.msk [vmem:[#allocation2 + $0x490] sm:$0xff] %vm1571_vm1, %v1342_v34 }
 0x28a   : > { %2744 = vst.msk [vmem:[#allocation2 + $0x3f0] sm:$0xff] %vm2617_vm2, %v2348_v35  ;;  %1327 = vrot.lane.b32.xlu1 %v840_v32, %s6082_s11  ;;  %2429 = vrot.lane.b32.xlu0 %v1914_v33, %s6083_s18  ;;  %v1906_v32 = vld [vmem:[%s6729_s17 + $0x4f8] sm:$0xff]  ;;  %v873_v33 = vld [vmem:[%s6149_s10 + $0x560] sm:$0xff] }
 0x28c   : > { %v2354_v39 = vpop.permute.xlu0 %2353  ;;  %v1304_v40 = vpop.permute.xlu1 %1303 }
 0x28d   : > { %2747 = vst.msk [vmem:[#allocation2 + $0x408] sm:$0xff] %vm2617_vm2, %v2354_v39 }
 0x28e   : > { %1699 = vst.msk [vmem:[#allocation2 + $0x3f8] sm:$0xff] %vm1571_vm1, %v1304_v40  ;;  %2405 = vrot.lane.b32.xlu1 %v1902_v36, %s6083_s18  ;;  %1385 = vrot.lane.b32.xlu0 %v869_v37, %s6082_s11  ;;  %v1919_v36 = vld [vmem:[%s6729_s17 + $0x560] sm:$0xff]  ;;  %v1890_v37 = vld [vmem:[%s6729_s17 + $0x478] sm:$0xff] }
 0x28f   : > { %v1920_v40 = vld [vmem:[%s6729_s17 + $0x568] sm:$0x3] }
 0x290   : > { %v1310_v45 = vpop.permute.xlu0 %1309  ;;  %v2316_v46 = vpop.permute.xlu1 %2315 }
 0x291   : > { %1702 = vst.msk [vmem:[#allocation2 + $0x410] sm:$0xff] %vm1571_vm1, %v1310_v45 }
 0x292   : > { %2728 = vst.msk [vmem:[#allocation2 + $0x370] sm:$0xff] %vm2617_vm2, %v2316_v46  ;;  %2373 = vrot.lane.b32.xlu1 %v1886_v42, %s6083_s18  ;;  %1361 = vrot.lane.b32.xlu0 %v857_v43, %s6082_s11 }
 0x294   : > { %v2388_v49 = vpop.permute.xlu0 %2387  ;;  %v1344_v50 = vpop.permute.xlu1 %1343 }
 0x295   : > { %2764 = vst.msk [vmem:[#allocation2 + $0x490] sm:$0xff] %vm2617_vm2, %v2388_v49 }
 0x296   : > { %1719 = vst.msk [vmem:[#allocation2 + $0x498] sm:$0xff] %vm1571_vm1, %v1344_v50  ;;  %1329 = vrot.lane.b32.xlu1 %v841_v47, %s6082_s11  ;;  %2431 = vrot.lane.b32.xlu0 %v1915_v48, %s6083_s18 }
 0x298   : > { %v2350_v54 = vpop.permute.xlu0 %2349  ;;  %v2356_v55 = vpop.permute.xlu1 %2355 }
 0x299   : > { %2745 = vst.msk [vmem:[#allocation2 + $0x3f8] sm:$0xff] %vm2617_vm2, %v2350_v54  ;;  %2748 = vst.msk [vmem:[#allocation2 + $0x410] sm:$0xff] %vm2617_vm2, %v2356_v55 }
 0x29a   : > { %2407 = vrot.lane.b32.xlu1 %v1903_v51, %s6083_s18  ;;  %1387 = vrot.lane.b32.xlu0 %v870_v52, %s6082_s11 }
 0x29c   : > { %v1312_v60 = vpop.permute.xlu0 %1311  ;;  %v1370_v61 = vpop.permute.xlu1 %1369 }
 0x29d   : > { %1703 = vst.msk [vmem:[#allocation2 + $0x418] sm:$0xff] %vm1571_vm1, %v1312_v60  ;;  %1732 = vst.msk [vmem:[#allocation2 + $0x500] sm:$0xff] %vm1571_vm1, %v1370_v61  ;;  %v2810_v61 = vld [vmem:[#allocation2 + $0x88] sm:$0xff] }
 0x29e   : > { %2375 = vrot.lane.b32.xlu1 %v1887_v57, %s6083_s18  ;;  %1363 = vrot.lane.b32.xlu0 %v858_v58, %s6082_s11  ;;  %v2809_v58 = vld [vmem:[#allocation2 + $0x80] sm:$0xff] }
 0x2a0   : > { %v2318_v0 = vpop.permute.xlu0 %2317  ;;  %v2390_v1 = vpop.permute.xlu1 %2389 }
 0x2a1   : > { %2729 = vst.msk [vmem:[#allocation2 + $0x378] sm:$0xff] %vm2617_vm2, %v2318_v0  ;;  %2765 = vst.msk [vmem:[#allocation2 + $0x498] sm:$0xff] %vm2617_vm2, %v2390_v1  ;;  %v8741_v0 = vmov 0.0   ;;  %v2811_v1 = vld [vmem:[#allocation2 + $0x90] sm:$0xff] }
 0x2a2   : > { %1331 = vrot.lane.b32.xlu1 %v842_v62, %s6082_s11  ;;  %2433 = vrot.lane.b32.xlu0 %v1916_v63, %s6083_s18  ;;  %347 = vst.msk [vmem:[#allocation2 + $0x56a] sm:$0xff] %vm346_vm4, %v8741_v0  ;;  %348 = vst.msk [vmem:[#allocation2 + $0x572] sm:$0xff] %vm346_vm4, %v8741_v0 }
 0x2a3   : > { %350 = vst.msk [vmem:[#allocation2 + $0x57a] sm:$0x3f] %vm349_vm7, %v8741_v0 }
 0x2a4   : > { %v1346_v5 = vpop.permute.xlu0 %1345  ;;  %v2358_v6 = vpop.permute.xlu1 %2357 }
 0x2a5   : > { %1720 = vst.msk [vmem:[#allocation2 + $0x4a0] sm:$0xff] %vm1571_vm1, %v1346_v5  ;;  %v2812_v5 = vld [vmem:[#allocation2 + $0x98] sm:$0xff] }
 0x2a6   : > { %2749 = vst.msk [vmem:[#allocation2 + $0x418] sm:$0xff] %vm2617_vm2, %v2358_v6  ;;  %2409 = vrot.lane.b32.xlu1 %v1904_v2, %s6083_s18  ;;  %1389 = vrot.lane.b32.xlu0 %v871_v3, %s6082_s11 }
 0x2a8   : > { %v2416_v11 = vpop.permute.xlu0 %2415  ;;  %v1314_v12 = vpop.permute.xlu1 %1313 }
 0x2a9   : > { %2778 = vst.msk [vmem:[#allocation2 + $0x500] sm:$0xff] %vm2617_vm2, %v2416_v11 }
 0x2aa   : > { %1704 = vst.msk [vmem:[#allocation2 + $0x420] sm:$0xff] %vm1571_vm1, %v1314_v12  ;;  %2377 = vrot.lane.b32.xlu1 %v1888_v8, %s6083_s18  ;;  %1365 = vrot.lane.b32.xlu0 %v859_v9, %s6082_s11  ;;  %v2794_v8 = vld [vmem:[#allocation2 + $0x8] sm:$0xff]  ;;  %v2813_v9 = vld [vmem:[#allocation2 + $0xa0] sm:$0xff]  ;;  %v2795_v12 = vld [vmem:[#allocation2 + $0x10] sm:$0xff] }
 0x2ac   : > { %v1372_v15 = vpop.permute.xlu0 %1371  ;;  %v2392_v16 = vpop.permute.xlu1 %2391 }
 0x2ad   : > { %1733 = vst.msk [vmem:[#allocation2 + $0x508] sm:$0xff] %vm1571_vm1, %v1372_v15 }
 0x2ae   : > { %2766 = vst.msk [vmem:[#allocation2 + $0x4a0] sm:$0xff] %vm2617_vm2, %v2392_v16  ;;  %1333 = vrot.lane.b32.xlu1 %v843_v13, %s6082_s11  ;;  %2435 = vrot.lane.b32.xlu0 %v1917_v14, %s6083_s18  ;;  %v2814_v13 = vld [vmem:[#allocation2 + $0xa8] sm:$0xff]  ;;  %v2796_v16 = vld [vmem:[#allocation2 + $0x18] sm:$0xff] }
 0x2b0   : > { %v1348_v20 = vpop.permute.xlu0 %1347  ;;  %v2360_v21 = vpop.permute.xlu1 %2359 }
 0x2b1   : > { %1721 = vst.msk [vmem:[#allocation2 + $0x4a8] sm:$0xff] %vm1571_vm1, %v1348_v20  ;;  %v2797_v20 = vld [vmem:[#allocation2 + $0x20] sm:$0xff] }
 0x2b2   : > { %2750 = vst.msk [vmem:[#allocation2 + $0x420] sm:$0xff] %vm2617_vm2, %v2360_v21  ;;  %2411 = vrot.lane.b32.xlu1 %v1905_v17, %s6083_s18  ;;  %1391 = vrot.lane.b32.xlu0 %v872_v18, %s6082_s11  ;;  %v2815_v17 = vld [vmem:[#allocation2 + $0xb0] sm:$0xff]  ;;  %v2816_v21 = vld [vmem:[#allocation2 + $0xb8] sm:$0xff] }
 0x2b4   : > { %v2418_v25 = vpop.permute.xlu0 %2417  ;;  %v1316_v26 = vpop.permute.xlu1 %1315 }
 0x2b5   : > { %2779 = vst.msk [vmem:[#allocation2 + $0x508] sm:$0xff] %vm2617_vm2, %v2418_v25  ;;  %v2817_v25 = vld [vmem:[#allocation2 + $0xc0] sm:$0xff] }
 0x2b6   : > { %1705 = vst.msk [vmem:[#allocation2 + $0x428] sm:$0xff] %vm1571_vm1, %v1316_v26  ;;  %2379 = vrot.lane.b32.xlu1 %v1889_v23, %s6083_s18  ;;  %1367 = vrot.lane.b32.xlu0 %v860_v24, %s6082_s11  ;;  %v2798_v24 = vld [vmem:[#allocation2 + $0x28] sm:$0xff] }
 0x2b8   : > { %v1374_v30 = vpop.permute.xlu0 %1373  ;;  %v2394_v31 = vpop.permute.xlu1 %2393 }
 0x2b9   : > { %1734 = vst.msk [vmem:[#allocation2 + $0x510] sm:$0xff] %vm1571_vm1, %v1374_v30 }
 0x2ba   : > { %2767 = vst.msk [vmem:[#allocation2 + $0x4a8] sm:$0xff] %vm2617_vm2, %v2394_v31  ;;  %1335 = vrot.lane.b32.xlu1 %v844_v27, %s6082_s11  ;;  %2437 = vrot.lane.b32.xlu0 %v1918_v28, %s6083_s18  ;;  %v2799_v28 = vld [vmem:[#allocation2 + $0x30] sm:$0xff] }
 0x2bc   : > { %v1350_v34 = vpop.permute.xlu0 %1349  ;;  %v2362_v35 = vpop.permute.xlu1 %2361 }
 0x2bd   : > { %1722 = vst.msk [vmem:[#allocation2 + $0x4b0] sm:$0xff] %vm1571_vm1, %v1350_v34 }
 0x2be   : > { %2751 = vst.msk [vmem:[#allocation2 + $0x428] sm:$0xff] %vm2617_vm2, %v2362_v35  ;;  %2413 = vrot.lane.b32.xlu1 %v1906_v32, %s6083_s18  ;;  %1393 = vrot.lane.b32.xlu0 %v873_v33, %s6082_s11  ;;  %v2800_v32 = vld [vmem:[#allocation2 + $0x38] sm:$0xff]  ;;  %v2819_v33 = vld [vmem:[#allocation2 + $0xd0] sm:$0xff] }
 0x2c0   : > { %v2420_v38 = vpop.permute.xlu0 %2419  ;;  %v1318_v39 = vpop.permute.xlu1 %1317 }
 0x2c1   : > { %2780 = vst.msk [vmem:[#allocation2 + $0x510] sm:$0xff] %vm2617_vm2, %v2420_v38 }
 0x2c2   : > { %1706 = vst.msk [vmem:[#allocation2 + $0x430] sm:$0xff] %vm1571_vm1, %v1318_v39  ;;  %2439 = vrot.lane.b32.xlu1 %v1919_v36, %s6083_s18  ;;  %2381 = vrot.lane.b32.xlu0 %v1890_v37, %s6083_s18  ;;  %v2801_v36 = vld [vmem:[#allocation2 + $0x40] sm:$0xff]  ;;  %v2820_v37 = vld [vmem:[#allocation2 + $0xd8] sm:$0xff] }
 0x2c4   : > { %v1376_v42 = vpop.permute.xlu0 %1375  ;;  %v2396_v43 = vpop.permute.xlu1 %2395 }
 0x2c5   : > { %1735 = vst.msk [vmem:[#allocation2 + $0x518] sm:$0xff] %vm1571_vm1, %v1376_v42 }
 0x2c6   : > { %2768 = vst.msk [vmem:[#allocation2 + $0x4b0] sm:$0xff] %vm2617_vm2, %v2396_v43  ;;  %2441 = vrot.lane.b32.xlu1 %v1920_v40, %s6083_s18  ;;  %1395 = vrot.lane.b32.xlu0 %v874_v41, %s6082_s11  ;;  %v2802_v40 = vld [vmem:[#allocation2 + $0x48] sm:$0xff]  ;;  %v2821_v41 = vld [vmem:[#allocation2 + $0xe0] sm:$0xff] }
 0x2c8   : > { %v1352_v44 = vpop.permute.xlu0 %1351  ;;  %v2364_v45 = vpop.permute.xlu1 %2363 }
 0x2c9   : > { %1723 = vst.msk [vmem:[#allocation2 + $0x4b8] sm:$0xff] %vm1571_vm1, %v1352_v44  ;;  %v2803_v44 = vld [vmem:[#allocation2 + $0x50] sm:$0xff] }
 0x2ca   : > { %2752 = vst.msk [vmem:[#allocation2 + $0x430] sm:$0xff] %vm2617_vm2, %v2364_v45  ;;  %v2822_v45 = vld [vmem:[#allocation2 + $0xe8] sm:$0xff] }
 0x2cc   : > { %v2422_v46 = vpop.permute.xlu0 %2421  ;;  %v1320_v47 = vpop.permute.xlu1 %1319 }
 0x2cd   : > { %2781 = vst.msk [vmem:[#allocation2 + $0x518] sm:$0xff] %vm2617_vm2, %v2422_v46 }
 0x2ce   : > { %1707 = vst.msk [vmem:[#allocation2 + $0x438] sm:$0xff] %vm1571_vm1, %v1320_v47 }
 0x2d0   : > { %v1378_v48 = vpop.permute.xlu0 %1377  ;;  %v2398_v49 = vpop.permute.xlu1 %2397 }
 0x2d1   : > { %1736 = vst.msk [vmem:[#allocation2 + $0x520] sm:$0xff] %vm1571_vm1, %v1378_v48  ;;  %v2804_v48 = vld [vmem:[#allocation2 + $0x58] sm:$0xff] }
 0x2d2   : > { %2769 = vst.msk [vmem:[#allocation2 + $0x4b8] sm:$0xff] %vm2617_vm2, %v2398_v49  ;;  %v2823_v49 = vld [vmem:[#allocation2 + $0xf0] sm:$0xff] }
 0x2d4   : > { %v1354_v50 = vpop.permute.xlu0 %1353  ;;  %v2366_v51 = vpop.permute.xlu1 %2365 }
 0x2d5   : > { %1724 = vst.msk [vmem:[#allocation2 + $0x4c0] sm:$0xff] %vm1571_vm1, %v1354_v50 }
 0x2d6   : > { %2753 = vst.msk [vmem:[#allocation2 + $0x438] sm:$0xff] %vm2617_vm2, %v2366_v51 }
 0x2d8   : > { %v2424_v52 = vpop.permute.xlu0 %2423  ;;  %v1322_v53 = vpop.permute.xlu1 %1321 }
 0x2d9   : > { %2782 = vst.msk [vmem:[#allocation2 + $0x520] sm:$0xff] %vm2617_vm2, %v2424_v52  ;;  %v2805_v52 = vld [vmem:[#allocation2 + $0x60] sm:$0xff] }
 0x2da   : > { %1708 = vst.msk [vmem:[#allocation2 + $0x440] sm:$0xff] %vm1571_vm1, %v1322_v53  ;;  %v2824_v53 = vld [vmem:[#allocation2 + $0xf8] sm:$0xff] }
 0x2dc   : > { %v1380_v54 = vpop.permute.xlu0 %1379  ;;  %v2400_v55 = vpop.permute.xlu1 %2399 }
 0x2dd   : > { %1737 = vst.msk [vmem:[#allocation2 + $0x528] sm:$0xff] %vm1571_vm1, %v1380_v54 }
 0x2de   : > { %2770 = vst.msk [vmem:[#allocation2 + $0x4c0] sm:$0xff] %vm2617_vm2, %v2400_v55 }
 0x2e0   : > { %v1356_v56 = vpop.permute.xlu0 %1355  ;;  %v2368_v57 = vpop.permute.xlu1 %2367 }
 0x2e1   : > { %1725 = vst.msk [vmem:[#allocation2 + $0x4c8] sm:$0xff] %vm1571_vm1, %v1356_v56  ;;  %v2806_v56 = vld [vmem:[#allocation2 + $0x68] sm:$0xff] }
 0x2e2   : > { %2754 = vst.msk [vmem:[#allocation2 + $0x440] sm:$0xff] %vm2617_vm2, %v2368_v57  ;;  %v2841_v57 = vld [vmem:[#allocation2 + $0x180] sm:$0xff] }
 0x2e4   : > { %v2426_v59 = vpop.permute.xlu0 %2425  ;;  %3001 = vxpose.xlu0.b32.start [1/16] (narrow) %v2809_v58, 24  ;;  %v1324_v60 = vpop.permute.xlu1 %1323 }
 0x2e5   : > { %2783 = vst.msk [vmem:[#allocation2 + $0x528] sm:$0xff] %vm2617_vm2, %v2426_v59 }
 0x2e6   : > { %1709 = vst.msk [vmem:[#allocation2 + $0x448] sm:$0xff] %vm1571_vm1, %v1324_v60  ;;  %v2807_v60 = vld [vmem:[#allocation2 + $0x70] sm:$0xff] }
 0x2e8   : > { %v1382_v62 = vpop.permute.xlu0 %1381  ;;  %3002 = vxpose.xlu0.b32.cont [2/16] (narrow) %v2810_v61, 24  ;;  %v2402_v63 = vpop.permute.xlu1 %2401  ;;  %v2842_v61 = vld [vmem:[#allocation2 + $0x188] sm:$0xff] }
 0x2e9   : > { %1738 = vst.msk [vmem:[#allocation2 + $0x530] sm:$0xff] %vm1571_vm1, %v1382_v62 }
 0x2ea   : > { %2771 = vst.msk [vmem:[#allocation2 + $0x4c8] sm:$0xff] %vm2617_vm2, %v2402_v63 }
 0x2ec   : > { %v1358_v2 = vpop.permute.xlu0 %1357  ;;  %3003 = vxpose.xlu0.b32.cont [3/16] (narrow) %v2811_v1, 24  ;;  %v2370_v3 = vpop.permute.xlu1 %2369  ;;  %v2808_v1 = vld [vmem:[#allocation2 + $0x78] sm:$0xff] }
 0x2ed   : > { %1726 = vst.msk [vmem:[#allocation2 + $0x4d0] sm:$0xff] %vm1571_vm1, %v1358_v2  ;;  %v2843_v2 = vld [vmem:[#allocation2 + $0x190] sm:$0xff] }
 0x2ee   : > { %2755 = vst.msk [vmem:[#allocation2 + $0x448] sm:$0xff] %vm2617_vm2, %v2370_v3 }
 0x2ef   : > { %2969 = vxpose.xlu1.b32.start [1/16] (narrow) %v2793_v4, 24 }
 0x2f0   : > { %v2428_v6 = vpop.permute.xlu0 %2427  ;;  %3004 = vxpose.xlu0.b32.cont [4/16] (narrow) %v2812_v5, 24  ;;  %v1326_v7 = vpop.permute.xlu1 %1325  ;;  %v2825_v5 = vld [vmem:[#allocation2 + $0x100] sm:$0xff] }
 0x2f1   : > { %2784 = vst.msk [vmem:[#allocation2 + $0x530] sm:$0xff] %vm2617_vm2, %v2428_v6  ;;  %v2844_v6 = vld [vmem:[#allocation2 + $0x198] sm:$0xff] }
 0x2f2   : > { %1710 = vst.msk [vmem:[#allocation2 + $0x450] sm:$0xff] %vm1571_vm1, %v1326_v7 }
 0x2f3   : > { %2970 = vxpose.xlu1.b32.cont [2/16] (narrow) %v2794_v8, 24 }
 0x2f4   : > { %v1384_v10 = vpop.permute.xlu0 %1383  ;;  %3005 = vxpose.xlu0.b32.cont [5/16] (narrow) %v2813_v9, 24  ;;  %v2404_v11 = vpop.permute.xlu1 %2403  ;;  %v2826_v9 = vld [vmem:[#allocation2 + $0x108] sm:$0xff] }
 0x2f5   : > { %1739 = vst.msk [vmem:[#allocation2 + $0x538] sm:$0xff] %vm1571_vm1, %v1384_v10  ;;  %v2845_v10 = vld [vmem:[#allocation2 + $0x1a0] sm:$0xff] }
 0x2f6   : > { %2772 = vst.msk [vmem:[#allocation2 + $0x4d0] sm:$0xff] %vm2617_vm2, %v2404_v11 }
 0x2f7   : > { %2971 = vxpose.xlu1.b32.cont [3/16] (narrow) %v2795_v12, 24 }
 0x2f8   : > { %v1360_v14 = vpop.permute.xlu0 %1359  ;;  %3006 = vxpose.xlu0.b32.cont [6/16] (narrow) %v2814_v13, 24  ;;  %v2372_v15 = vpop.permute.xlu1 %2371  ;;  %v2827_v13 = vld [vmem:[#allocation2 + $0x110] sm:$0xff] }
 0x2f9   : > { %1727 = vst.msk [vmem:[#allocation2 + $0x4d8] sm:$0xff] %vm1571_vm1, %v1360_v14  ;;  %v2846_v14 = vld [vmem:[#allocation2 + $0x1a8] sm:$0xff] }
 0x2fa   : > { %2756 = vst.msk [vmem:[#allocation2 + $0x450] sm:$0xff] %vm2617_vm2, %v2372_v15 }
 0x2fb   : > { %2972 = vxpose.xlu1.b32.cont [4/16] (narrow) %v2796_v16, 24 }
 0x2fc   : > { %v2430_v18 = vpop.permute.xlu0 %2429  ;;  %3007 = vxpose.xlu0.b32.cont [7/16] (narrow) %v2815_v17, 24  ;;  %v1328_v19 = vpop.permute.xlu1 %1327  ;;  %v2828_v17 = vld [vmem:[#allocation2 + $0x118] sm:$0xff] }
 0x2fd   : > { %2785 = vst.msk [vmem:[#allocation2 + $0x538] sm:$0xff] %vm2617_vm2, %v2430_v18  ;;  %v2847_v18 = vld [vmem:[#allocation2 + $0x1b0] sm:$0xff] }
 0x2fe   : > { %1711 = vst.msk [vmem:[#allocation2 + $0x458] sm:$0xff] %vm1571_vm1, %v1328_v19  ;;  %v2829_v19 = vld [vmem:[#allocation2 + $0x120] sm:$0xff] }
 0x2ff   : > { %2973 = vxpose.xlu1.b32.cont [5/16] (narrow) %v2797_v20, 24  ;;  %v2848_v20 = vld [vmem:[#allocation2 + $0x1b8] sm:$0xff] }
 0x300   : > { %v1386_v22 = vpop.permute.xlu0 %1385  ;;  %3008 = vxpose.xlu0.b32.cont [8/16] (narrow) %v2816_v21, 24  ;;  %v2406_v23 = vpop.permute.xlu1 %2405  ;;  %v2830_v21 = vld [vmem:[#allocation2 + $0x128] sm:$0xff] }
 0x301   : > { %1740 = vst.msk [vmem:[#allocation2 + $0x540] sm:$0xff] %vm1571_vm1, %v1386_v22  ;;  %v2849_v22 = vld [vmem:[#allocation2 + $0x1c0] sm:$0xff] }
 0x302   : > { %2773 = vst.msk [vmem:[#allocation2 + $0x4d8] sm:$0xff] %vm2617_vm2, %v2406_v23  ;;  %v2831_v23 = vld [vmem:[#allocation2 + $0x130] sm:$0xff] }
 0x303   : > { %2974 = vxpose.xlu1.b32.cont [6/16] (narrow) %v2798_v24, 24  ;;  %v2850_v24 = vld [vmem:[#allocation2 + $0x1c8] sm:$0xff] }
 0x304   : > { %v1362_v26 = vpop.permute.xlu0 %1361  ;;  %3009 = vxpose.xlu0.b32.cont [9/16] (narrow) %v2817_v25, 24  ;;  %v2374_v27 = vpop.permute.xlu1 %2373  ;;  %v2832_v25 = vld [vmem:[#allocation2 + $0x138] sm:$0xff] }
 0x305   : > { %1728 = vst.msk [vmem:[#allocation2 + $0x4e0] sm:$0xff] %vm1571_vm1, %v1362_v26  ;;  %v2851_v26 = vld [vmem:[#allocation2 + $0x1d0] sm:$0xff] }
 0x306   : > { %2757 = vst.msk [vmem:[#allocation2 + $0x458] sm:$0xff] %vm2617_vm2, %v2374_v27  ;;  %v2833_v27 = vld [vmem:[#allocation2 + $0x140] sm:$0xff] }
 0x307   : > { %2975 = vxpose.xlu1.b32.cont [7/16] (narrow) %v2799_v28, 24  ;;  %v2852_v28 = vld [vmem:[#allocation2 + $0x1d8] sm:$0xff] }
 0x308   : > { %v2432_v30 = vpop.permute.xlu0 %2431  ;;  %3010 = vxpose.xlu0.b32.cont [10/16] (narrow) %v2818_v29, 24  ;;  %v1330_v31 = vpop.permute.xlu1 %1329  ;;  %v2834_v29 = vld [vmem:[#allocation2 + $0x148] sm:$0xff] }
 0x309   : > { %2786 = vst.msk [vmem:[#allocation2 + $0x540] sm:$0xff] %vm2617_vm2, %v2432_v30  ;;  %v2853_v30 = vld [vmem:[#allocation2 + $0x1e0] sm:$0xff] }
 0x30a   : > { %1712 = vst.msk [vmem:[#allocation2 + $0x460] sm:$0xff] %vm1571_vm1, %v1330_v31  ;;  %v2835_v31 = vld [vmem:[#allocation2 + $0x150] sm:$0xff] }
 0x30b   : > { %2976 = vxpose.xlu1.b32.cont [8/16] (narrow) %v2800_v32, 24  ;;  %v2854_v32 = vld [vmem:[#allocation2 + $0x1e8] sm:$0xff] }
 0x30c   : > { %v1388_v34 = vpop.permute.xlu0 %1387  ;;  %3011 = vxpose.xlu0.b32.cont [11/16] (narrow) %v2819_v33, 24  ;;  %v2408_v35 = vpop.permute.xlu1 %2407  ;;  %v2836_v33 = vld [vmem:[#allocation2 + $0x158] sm:$0xff] }
 0x30d   : > { %1741 = vst.msk [vmem:[#allocation2 + $0x548] sm:$0xff] %vm1571_vm1, %v1388_v34  ;;  %v2855_v34 = vld [vmem:[#allocation2 + $0x1f0] sm:$0xff] }
 0x30e   : > { %2774 = vst.msk [vmem:[#allocation2 + $0x4e0] sm:$0xff] %vm2617_vm2, %v2408_v35  ;;  %v2837_v35 = vld [vmem:[#allocation2 + $0x160] sm:$0xff] }
 0x30f   : > { %2977 = vxpose.xlu1.b32.cont [9/16] (narrow) %v2801_v36, 24  ;;  %v2856_v36 = vld [vmem:[#allocation2 + $0x1f8] sm:$0xff] }
 0x310   : > { %v1364_v38 = vpop.permute.xlu0 %1363  ;;  %3012 = vxpose.xlu0.b32.cont [12/16] (narrow) %v2820_v37, 24  ;;  %v2376_v39 = vpop.permute.xlu1 %2375  ;;  %v2838_v37 = vld [vmem:[#allocation2 + $0x168] sm:$0xff] }
 0x311   : > { %1729 = vst.msk [vmem:[#allocation2 + $0x4e8] sm:$0xff] %vm1571_vm1, %v1364_v38  ;;  %v2873_v38 = vld [vmem:[#allocation2 + $0x280] sm:$0xff] }
 0x312   : > { %2758 = vst.msk [vmem:[#allocation2 + $0x460] sm:$0xff] %vm2617_vm2, %v2376_v39  ;;  %v2839_v39 = vld [vmem:[#allocation2 + $0x170] sm:$0xff] }
 0x313   : > { %2978 = vxpose.xlu1.b32.cont [10/16] (narrow) %v2802_v40, 24  ;;  %v2874_v40 = vld [vmem:[#allocation2 + $0x288] sm:$0xff] }
 0x314   : > { %v2434_v42 = vpop.permute.xlu0 %2433  ;;  %3013 = vxpose.xlu0.b32.cont [13/16] (narrow) %v2821_v41, 24  ;;  %v1332_v43 = vpop.permute.xlu1 %1331  ;;  %v2840_v41 = vld [vmem:[#allocation2 + $0x178] sm:$0xff] }
 0x315   : > { %2787 = vst.msk [vmem:[#allocation2 + $0x548] sm:$0xff] %vm2617_vm2, %v2434_v42  ;;  %v2875_v42 = vld [vmem:[#allocation2 + $0x290] sm:$0xff] }
 0x316   : > { %1713 = vst.msk [vmem:[#allocation2 + $0x468] sm:$0xff] %vm1571_vm1, %v1332_v43  ;;  %v2857_v43 = vld [vmem:[#allocation2 + $0x200] sm:$0xff] }
 0x317   : > { %2979 = vxpose.xlu1.b32.cont [11/16] (narrow) %v2803_v44, 24  ;;  %v2876_v44 = vld [vmem:[#allocation2 + $0x298] sm:$0xff] }
 0x318   : > { %v1390_v46 = vpop.permute.xlu0 %1389  ;;  %3014 = vxpose.xlu0.b32.cont [14/16] (narrow) %v2822_v45, 24  ;;  %v2410_v47 = vpop.permute.xlu1 %2409  ;;  %v2858_v45 = vld [vmem:[#allocation2 + $0x208] sm:$0xff] }
 0x319   : > { %1742 = vst.msk [vmem:[#allocation2 + $0x550] sm:$0xff] %vm1571_vm1, %v1390_v46  ;;  %v2877_v46 = vld [vmem:[#allocation2 + $0x2a0] sm:$0xff] }
 0x31a   : > { %2775 = vst.msk [vmem:[#allocation2 + $0x4e8] sm:$0xff] %vm2617_vm2, %v2410_v47  ;;  %v2859_v47 = vld [vmem:[#allocation2 + $0x210] sm:$0xff] }
 0x31b   : > { %2980 = vxpose.xlu1.b32.cont [12/16] (narrow) %v2804_v48, 24  ;;  %v2878_v48 = vld [vmem:[#allocation2 + $0x2a8] sm:$0xff] }
 0x31c   : > { %v1366_v50 = vpop.permute.xlu0 %1365  ;;  %3015 = vxpose.xlu0.b32.cont [15/16] (narrow) %v2823_v49, 24  ;;  %v2378_v51 = vpop.permute.xlu1 %2377  ;;  %v2860_v49 = vld [vmem:[#allocation2 + $0x218] sm:$0xff] }
 0x31d   : > { %1730 = vst.msk [vmem:[#allocation2 + $0x4f0] sm:$0xff] %vm1571_vm1, %v1366_v50  ;;  %v2879_v50 = vld [vmem:[#allocation2 + $0x2b0] sm:$0xff] }
 0x31e   : > { %2759 = vst.msk [vmem:[#allocation2 + $0x468] sm:$0xff] %vm2617_vm2, %v2378_v51  ;;  %v3384_v51 = vld [vmem:[%s8735_s3 + $0x1f8] sm:$0xff] }
 0x31f   : > { %2981 = vxpose.xlu1.b32.cont [13/16] (narrow) %v2805_v52, 24  ;;  %v3368_v52 = vld [vmem:[%s8735_s3 + $0x178] sm:$0xff]  ;;  %5770 = vmatprep.subr.mxu1 %v3384_v51  ;;  %v3370_v51 = vld [vmem:[%s8735_s3 + $0x188] sm:$0xff] }
 0x320   : > { %v2436_v54 = vpop.permute.xlu0 %2435  ;;  %3016 = vxpose.xlu0.b32.end [16/16] (narrow) %v2824_v53, 24  ;;  %v1334_v55 = vpop.permute.xlu1 %1333  ;;  %v3383_v53 = vld [vmem:[%s8735_s3 + $0x1f0] sm:$0xff]  ;;  %5771 = vmatpush3.msra.mxu1 %v3368_v52  ;;  %v3329_v52 = vld [vmem:[%s8735_s3 + $0x40] sm:$0xff] }
 0x321   : > { %2788 = vst.msk [vmem:[#allocation2 + $0x550] sm:$0xff] %vm2617_vm2, %v2436_v54  ;;  %v2861_v54 = vld [vmem:[#allocation2 + $0x220] sm:$0xff]  ;;  %5772 = vmatprep.subr.mxu1 %v3383_v53  ;;  %v3354_v53 = vld [vmem:[%s8735_s3 + $0x108] sm:$0xff] }
 0x322   : > { %1714 = vst.msk [vmem:[#allocation2 + $0x470] sm:$0xff] %vm1571_vm1, %v1334_v55  ;;  %v2880_v55 = vld [vmem:[#allocation2 + $0x2b8] sm:$0xff] }
 0x323   : > { %2982 = vxpose.xlu1.b32.cont [14/16] (narrow) %v2806_v56, 24  ;;  %v3367_v56 = vld [vmem:[%s8735_s3 + $0x170] sm:$0xff] }
 0x324   : > { %v1392_v58 = vpop.permute.xlu0 %1391  ;;  %3065 = vxpose.xlu0.b32.start [1/16] (narrow) %v2841_v57, 24  ;;  %v2412_v59 = vpop.permute.xlu1 %2411  ;;  %5773 = vmatpush3.msra.mxu1 %v3367_v56  ;;  %v3382_v57 = vld [vmem:[%s8735_s3 + $0x1e8] sm:$0xff]  ;;  %v3369_v56 = vld [vmem:[%s8735_s3 + $0x180] sm:$0xff] }
 0x325   : > { %1743 = vst.msk [vmem:[#allocation2 + $0x558] sm:$0xff] %vm1571_vm1, %v1392_v58  ;;  %v3366_v58 = vld [vmem:[%s8735_s3 + $0x168] sm:$0xff]  ;;  %5774 = vmatprep.subr.mxu1 %v3382_v57  ;;  %v3328_v57 = vld [vmem:[%s8735_s3 + $0x38] sm:$0xff] }
 0x326   : > { %2776 = vst.msk [vmem:[#allocation2 + $0x4f0] sm:$0xff] %vm2617_vm2, %v2412_v59  ;;  %v3381_v59 = vld [vmem:[%s8735_s3 + $0x1e0] sm:$0xff]  ;;  %5775 = vmatpush3.msra.mxu1 %v3366_v58  ;;  %v2888_v58 = vld [vmem:[#allocation2 + $0x2f8] sm:$0xff] }
 0x327   : > { %2983 = vxpose.xlu1.b32.cont [15/16] (narrow) %v2807_v60, 24  ;;  %v2862_v60 = vld [vmem:[#allocation2 + $0x228] sm:$0xff]  ;;  %5776 = vmatprep.subr.mxu1 %v3381_v59 }
 0x328   : > { %v1368_v62 = vpop.permute.xlu0 %1367  ;;  %3066 = vxpose.xlu0.b32.cont [2/16] (narrow) %v2842_v61, 24  ;;  %v2380_v63 = vpop.permute.xlu1 %2379  ;;  %v2881_v61 = vld [vmem:[#allocation2 + $0x2c0] sm:$0xff] }
 0x329   : > { %1731 = vst.msk [vmem:[#allocation2 + $0x4f8] sm:$0xff] %vm1571_vm1, %v1368_v62  ;;  %v3365_v62 = vld [vmem:[%s8735_s3 + $0x160] sm:$0xff] }
 0x32a   : > { %2760 = vst.msk [vmem:[#allocation2 + $0x470] sm:$0xff] %vm2617_vm2, %v2380_v63  ;;  %5777 = vmatpush3.msra.mxu1 %v3365_v62  ;;  %v3380_v63 = vld [vmem:[%s8735_s3 + $0x1d8] sm:$0xff] }
 0x32b   : > { %2984 = vxpose.xlu1.b32.end [16/16] (narrow) %v2808_v1, 24  ;;  %v3364_v1 = vld [vmem:[%s8735_s3 + $0x158] sm:$0xff]  ;;  %5778 = vmatprep.subr.mxu1 %v3380_v63 }
 0x32c   : > { %v2438_v3 = vpop.permute.xlu0 %2437  ;;  %3067 = vxpose.xlu0.b32.cont [3/16] (narrow) %v2843_v2, 24  ;;  %v1336_v4 = vpop.permute.xlu1 %1335  ;;  %v3379_v2 = vld [vmem:[%s8735_s3 + $0x1d0] sm:$0xff]  ;;  %5779 = vmatpush3.msra.mxu1 %v3364_v1  ;;  %v3448_v63 = vld [vmem:[%s8735_s3 + $0x3f8] sm:$0xff]  ;;  %v2870_v1 = vld [vmem:[#allocation2 + $0x268] sm:$0xff] }
 0x32d   : > { %2789 = vst.msk [vmem:[#allocation2 + $0x558] sm:$0xff] %vm2617_vm2, %v2438_v3  ;;  %v2863_v3 = vld [vmem:[#allocation2 + $0x230] sm:$0xff]  ;;  %5780 = vmatprep.subr.mxu1 %v3379_v2 }
 0x32e   : > { %1715 = vst.msk [vmem:[#allocation2 + $0x478] sm:$0xff] %vm1571_vm1, %v1336_v4  ;;  %v2882_v4 = vld [vmem:[#allocation2 + $0x2c8] sm:$0xff]  ;;  %v3327_v2 = vld [vmem:[%s8735_s3 + $0x30] sm:$0xff] }
 0x32f   : > { %3033 = vxpose.xlu1.b32.start [1/16] (narrow) %v2825_v5, 24  ;;  %v3363_v5 = vld [vmem:[%s8735_s3 + $0x150] sm:$0xff] }
 0x330   : > { %v1394_v7 = vpop.permute.xlu0 %1393  ;;  %3068 = vxpose.xlu0.b32.cont [4/16] (narrow) %v2844_v6, 24  ;;  %v2414_v8 = vpop.permute.xlu1 %2413  ;;  %5781 = vmatpush3.msra.mxu1 %v3363_v5  ;;  %v3378_v6 = vld [vmem:[%s8735_s3 + $0x1c8] sm:$0xff] }
 0x331   : > { %1744 = vst.msk [vmem:[#allocation2 + $0x560] sm:$0xff] %vm1571_vm1, %v1394_v7  ;;  %v3362_v7 = vld [vmem:[%s8735_s3 + $0x148] sm:$0xff]  ;;  %5782 = vmatprep.subr.mxu1 %v3378_v6 }
 0x332   : > { %2777 = vst.msk [vmem:[#allocation2 + $0x4f8] sm:$0xff] %vm2617_vm2, %v2414_v8  ;;  %v3352_v8 = vld [vmem:[%s8735_s3 + $0xf8] sm:$0xff]  ;;  %5783 = vmatpush3.msra.mxu1 %v3362_v7  ;;  %v3326_v5 = vld [vmem:[%s8735_s3 + $0x28] sm:$0xff]  ;;  %v3341_v7 = vld [vmem:[%s8735_s3 + $0xa0] sm:$0xff] }
 0x333   : > { %3034 = vxpose.xlu1.b32.cont [2/16] (narrow) %v2826_v9, 24  ;;  %5729 = vmatprep.subr.mxu0 %v3352_v8  ;;  %v3377_v9 = vld [vmem:[%s8735_s3 + $0x1c0] sm:$0xff]  ;;  %v2871_v8 = vld [vmem:[#allocation2 + $0x270] sm:$0xff] }
 0x334   : > { %v2382_v11 = vpop.permute.xlu0 %2381  ;;  %3069 = vxpose.xlu0.b32.cont [5/16] (narrow) %v2845_v10, 24  ;;  %v2440_v12 = vpop.permute.xlu1 %2439  ;;  %v2864_v10 = vld [vmem:[#allocation2 + $0x238] sm:$0xff]  ;;  %5784 = vmatprep.subr.mxu1 %v3377_v9  ;;  %v3325_v9 = vld [vmem:[%s8735_s3 + $0x20] sm:$0xff] }
 0x335   : > { %2761 = vst.msk [vmem:[#allocation2 + $0x478] sm:$0xff] %vm2617_vm2, %v2382_v11  ;;  %2790 = vst.msk [vmem:[#allocation2 + $0x560] sm:$0xff] %vm2617_vm2, %v2440_v12  ;;  %v2883_v11 = vld [vmem:[#allocation2 + $0x2d0] sm:$0xff]  ;;  %v3336_v12 = vld [vmem:[%s8735_s3 + $0x78] sm:$0xff] }
 0x336   : > { %5730 = vmatpush3.msra.mxu0 %v3336_v12  ;;  %v3324_v12 = vld [vmem:[%s8735_s3 + $0x18] sm:$0xff] }
 0x337   : > { %3035 = vxpose.xlu1.b32.cont [3/16] (narrow) %v2827_v13, 24  ;;  %v3361_v13 = vld [vmem:[%s8735_s3 + $0x140] sm:$0xff] }
 0x338   : > { %v1396_v15 = vpop.permute.xlu0 %1395  ;;  %3070 = vxpose.xlu0.b32.cont [6/16] (narrow) %v2846_v14, 24  ;;  %v2442_v16 = vpop.permute.xlu1 %2441  ;;  %v3351_v14 = vld [vmem:[%s8735_s3 + $0xf0] sm:$0xff]  ;;  %5785 = vmatpush3.msra.mxu1 %v3361_v13  ;;  %v2872_v13 = vld [vmem:[#allocation2 + $0x278] sm:$0xff] }
 0x339   : > { %1746 = vst.msk [vmem:[#allocation2 + $0x568] sm:$0x3] %vm1745_vm5, %v1396_v15  ;;  %v3376_v15 = vld [vmem:[%s8735_s3 + $0x1b8] sm:$0xff]  ;;  %5731 = vmatprep.subr.mxu0 %v3351_v14 }
 0x33a   : > { %2792 = vst.msk [vmem:[#allocation2 + $0x568] sm:$0x3] %vm2791_vm6, %v2442_v16  ;;  %v3335_v16 = vld [vmem:[%s8735_s3 + $0x70] sm:$0xff]  ;;  %5786 = vmatprep.subr.mxu1 %v3376_v15  ;;  %v3432_v14 = vld [vmem:[%s8735_s3 + $0x378] sm:$0xff] }
 0x33b   : > { %3036 = vxpose.xlu1.b32.cont [4/16] (narrow) %v2828_v17, 24  ;;  %v3360_v17 = vld [vmem:[%s8735_s3 + $0x138] sm:$0xff]  ;;  %5732 = vmatpush3.msra.mxu0 %v3335_v16  ;;  %v3339_v15 = vld [vmem:[%s8735_s3 + $0x90] sm:$0xff] }
 0x33c   : > { %3071 = vxpose.xlu0.b32.cont [7/16] (narrow) %v2847_v18, 24  ;;  %v3350_v18 = vld [vmem:[%s8735_s3 + $0xe8] sm:$0xff]  ;;  %5787 = vmatpush3.msra.mxu1 %v3360_v17  ;;  %v2907_v16 = vld [vmem:[#allocation2 + $0x390] sm:$0xff] }
 0x33d   : > { %5733 = vmatprep.subr.mxu0 %v3350_v18  ;;  %v3447_v18 = vld [vmem:[%s8735_s3 + $0x3f0] sm:$0xff] }
 0x33f   : > { %3037 = vxpose.xlu1.b32.cont [5/16] (narrow) %v2829_v19, 24  ;;  %v2865_v19 = vld [vmem:[#allocation2 + $0x240] sm:$0xff] }
 0x340   : > { %3072 = vxpose.xlu0.b32.cont [8/16] (narrow) %v2848_v20, 24  ;;  %v3375_v20 = vld [vmem:[%s8735_s3 + $0x1b0] sm:$0xff] }
 0x341   : > { %5788 = vmatprep.subr.mxu1 %v3375_v20  ;;  %v3431_v20 = vld [vmem:[%s8735_s3 + $0x370] sm:$0xff] }
 0x343   : > { %3038 = vxpose.xlu1.b32.cont [6/16] (narrow) %v2830_v21, 24  ;;  %v2884_v21 = vld [vmem:[#allocation2 + $0x2d8] sm:$0xff] }
 0x344   : > { %3073 = vxpose.xlu0.b32.cont [9/16] (narrow) %v2849_v22, 24  ;;  %v3334_v22 = vld [vmem:[%s8735_s3 + $0x68] sm:$0xff] }
 0x345   : > { %5734 = vmatpush3.msra.mxu0 %v3334_v22  ;;  %v2889_v22 = vld [vmem:[#allocation2 + $0x300] sm:$0xff] }
 0x347   : > { %3039 = vxpose.xlu1.b32.cont [7/16] (narrow) %v2831_v23, 24  ;;  %v3359_v23 = vld [vmem:[%s8735_s3 + $0x130] sm:$0xff] }
 0x348   : > { %3074 = vxpose.xlu0.b32.cont [10/16] (narrow) %v2850_v24, 24  ;;  %5789 = vmatpush3.msra.mxu1 %v3359_v23  ;;  %v3430_v23 = vld [vmem:[%s8735_s3 + $0x368] sm:$0xff] }
 0x34b   : > { %3040 = vxpose.xlu1.b32.cont [8/16] (narrow) %v2832_v25, 24  ;;  %v3349_v25 = vld [vmem:[%s8735_s3 + $0xe0] sm:$0xff] }
 0x34c   : > { %3075 = vxpose.xlu0.b32.cont [11/16] (narrow) %v2851_v26, 24  ;;  %v3374_v26 = vld [vmem:[%s8735_s3 + $0x1a8] sm:$0xff]  ;;  %5735 = vmatprep.subr.mxu0 %v3349_v25 }
 0x34d   : > { %5790 = vmatprep.subr.mxu1 %v3374_v26  ;;  %v3338_v25 = vld [vmem:[%s8735_s3 + $0x88] sm:$0xff]  ;;  %v2908_v26 = vld [vmem:[#allocation2 + $0x398] sm:$0xff] }
 0x34f   : > { %3041 = vxpose.xlu1.b32.cont [9/16] (narrow) %v2833_v27, 24  ;;  %v3333_v27 = vld [vmem:[%s8735_s3 + $0x60] sm:$0xff] }
 0x350   : > { %3076 = vxpose.xlu0.b32.cont [12/16] (narrow) %v2852_v28, 24  ;;  %v2866_v28 = vld [vmem:[#allocation2 + $0x248] sm:$0xff]  ;;  %5736 = vmatpush3.msra.mxu0 %v3333_v27  ;;  %v3445_v27 = vld [vmem:[%s8735_s3 + $0x3e0] sm:$0xff] }
 0x353   : > { %3042 = vxpose.xlu1.b32.cont [10/16] (narrow) %v2834_v29, 24  ;;  %v3358_v29 = vld [vmem:[%s8735_s3 + $0x128] sm:$0xff] }
 0x354   : > { %3077 = vxpose.xlu0.b32.cont [13/16] (narrow) %v2853_v30, 24  ;;  %v3348_v30 = vld [vmem:[%s8735_s3 + $0xd8] sm:$0xff]  ;;  %5791 = vmatpush3.msra.mxu1 %v3358_v29  ;;  %v3429_v29 = vld [vmem:[%s8735_s3 + $0x360] sm:$0xff] }
 0x355   : > { %5737 = vmatprep.subr.mxu0 %v3348_v30  ;;  %v3444_v30 = vld [vmem:[%s8735_s3 + $0x3d8] sm:$0xff] }
 0x357   : > { %3043 = vxpose.xlu1.b32.cont [11/16] (narrow) %v2835_v31, 24  ;;  %v2885_v31 = vld [vmem:[#allocation2 + $0x2e0] sm:$0xff] }
 0x358   : > { %3078 = vxpose.xlu0.b32.cont [14/16] (narrow) %v2854_v32, 24  ;;  %v3373_v32 = vld [vmem:[%s8735_s3 + $0x1a0] sm:$0xff] }
 0x359   : > { %5792 = vmatprep.subr.mxu1 %v3373_v32  ;;  %v3428_v32 = vld [vmem:[%s8735_s3 + $0x358] sm:$0xff] }
 0x35b   : > { %3044 = vxpose.xlu1.b32.cont [12/16] (narrow) %v2836_v33, 24  ;;  %v3332_v33 = vld [vmem:[%s8735_s3 + $0x58] sm:$0xff] }
 0x35c   : > { %3079 = vxpose.xlu0.b32.cont [15/16] (narrow) %v2855_v34, 24  ;;  %v3357_v34 = vld [vmem:[%s8735_s3 + $0x120] sm:$0xff]  ;;  %5738 = vmatpush3.msra.mxu0 %v3332_v33 }
 0x35d   : > { %5793 = vmatpush3.msra.mxu1 %v3357_v34  ;;  %v3337_v33 = vld [vmem:[%s8735_s3 + $0x80] sm:$0xff] }
 0x35e   : > { %v2909_v34 = vld [vmem:[#allocation2 + $0x3a0] sm:$0xff] }
 0x35f   : > { %3045 = vxpose.xlu1.b32.cont [13/16] (narrow) %v2837_v35, 24 }
 0x360   : > { %3080 = vxpose.xlu0.b32.end [16/16] (narrow) %v2856_v36, 24  ;;  %v7634_v24 = vpop.trf.xlu0  ;;  %v3347_v36 = vld [vmem:[%s8735_s3 + $0xd0] sm:$0xff] }
 0x361   : > { %5739 = vmatprep.subr.mxu0 %v3347_v36  ;;  %3568 = vmatprep.mubr.f32.mxu0 %v7634_v24  ;;  %v3443_v36 = vld [vmem:[%s8735_s3 + $0x3d0] sm:$0xff] }
 0x363   : > { %3046 = vxpose.xlu1.b32.cont [14/16] (narrow) %v2838_v37, 24  ;;  %v2867_v37 = vld [vmem:[#allocation2 + $0x250] sm:$0xff] }
 0x364   : > { %3129 = vxpose.xlu0.b32.start [1/16] (narrow) %v2873_v38, 24  ;;  %v7660_v35 = vpop.trf.xlu0  ;;  %v3372_v38 = vld [vmem:[%s8735_s3 + $0x198] sm:$0xff] }
 0x365   : > { %5794 = vmatprep.subr.mxu1 %v3372_v38  ;;  %v3427_v38 = vld [vmem:[%s8735_s3 + $0x350] sm:$0xff] }
 0x367   : > { %3047 = vxpose.xlu1.b32.cont [15/16] (narrow) %v2839_v39, 24  ;;  %v3331_v39 = vld [vmem:[%s8735_s3 + $0x50] sm:$0xff] }
 0x368   : > { %3130 = vxpose.xlu0.b32.cont [2/16] (narrow) %v2874_v40, 24  ;;  %v2886_v40 = vld [vmem:[#allocation2 + $0x2e8] sm:$0xff]  ;;  %5740 = vmatpush3.msra.mxu0 %v3331_v39 }
 0x369   : > { %v3442_v39 = vld [vmem:[%s8735_s3 + $0x3c8] sm:$0xff] }
 0x36b   : > { %3048 = vxpose.xlu1.b32.end [16/16] (narrow) %v2840_v41, 24  ;;  %v3356_v41 = vld [vmem:[%s8735_s3 + $0x118] sm:$0xff] }
 0x36c   : > { %3131 = vxpose.xlu0.b32.cont [3/16] (narrow) %v2875_v42, 24  ;;  %v3346_v42 = vld [vmem:[%s8735_s3 + $0xc8] sm:$0xff]  ;;  %5795 = vmatpush3.msra.mxu1 %v3356_v41 }
 0x36d   : > { %5741 = vmatprep.subr.mxu0 %v3346_v42  ;;  %v3426_v41 = vld [vmem:[%s8735_s3 + $0x348] sm:$0xff]  ;;  %v3416_v42 = vld [vmem:[%s8735_s3 + $0x2f8] sm:$0xff] }
 0x36f   : > { %3097 = vxpose.xlu1.b32.start [1/16] (narrow) %v2857_v43, 24  ;;  %v3371_v43 = vld [vmem:[%s8735_s3 + $0x190] sm:$0xff] }
 0x370   : > { %3132 = vxpose.xlu0.b32.cont [4/16] (narrow) %v2876_v44, 24  ;;  %v7680_v44 = vpop.trf.xlu1  ;;  %5796 = vmatprep.subr.mxu1 %v3371_v43  ;;  %v2910_v43 = vld [vmem:[#allocation2 + $0x3a8] sm:$0xff] }
 0x373   : > { %3098 = vxpose.xlu1.b32.cont [2/16] (narrow) %v2858_v45, 24  ;;  %v3330_v45 = vld [vmem:[%s8735_s3 + $0x48] sm:$0xff] }
 0x374   : > { %3133 = vxpose.xlu0.b32.cont [5/16] (narrow) %v2877_v46, 24  ;;  %v2868_v46 = vld [vmem:[#allocation2 + $0x258] sm:$0xff]  ;;  %5742 = vmatpush3.msra.mxu0 %v3330_v45  ;;  %v7711_v59 = vpop.trf.xlu1  ;;  %v3441_v45 = vld [vmem:[%s8735_s3 + $0x3c0] sm:$0xff] }
 0x377   : > { %3099 = vxpose.xlu1.b32.cont [3/16] (narrow) %v2859_v47, 24  ;;  %v3355_v47 = vld [vmem:[%s8735_s3 + $0x110] sm:$0xff] }
 0x378   : > { %3134 = vxpose.xlu0.b32.cont [6/16] (narrow) %v2878_v48, 24  ;;  %v7688_v48 = vpop.trf.xlu0  ;;  %5797 = vmatpush3.msra.mxu1 %v3355_v47  ;;  %v7734_v6 = vpop.trf.xlu1  ;;  %v3425_v47 = vld [vmem:[%s8735_s3 + $0x340] sm:$0xff] }
 0x379   : > { %5798 = vmatprep.subr.mxu1 %v3370_v51  ;;  %v3440_v51 = vld [vmem:[%s8735_s3 + $0x3b8] sm:$0xff] }
 0x37a   : > { %5799 = vmatpush3.msra.mxu1 %v3354_v53  ;;  %v3399_v53 = vld [vmem:[%s8735_s3 + $0x270] sm:$0xff] }
 0x37b   : > { %3100 = vxpose.xlu1.b32.cont [4/16] (narrow) %v2860_v49, 24  ;;  %v3345_v49 = vld [vmem:[%s8735_s3 + $0xc0] sm:$0xff]  ;;  %5800 = vmatprep.subr.mxu1 %v3369_v56  ;;  %v3439_v56 = vld [vmem:[%s8735_s3 + $0x3b0] sm:$0xff] }
 0x37c   : > { %3135 = vxpose.xlu0.b32.cont [7/16] (narrow) %v2879_v50, 24  ;;  %v2887_v50 = vld [vmem:[#allocation2 + $0x2f0] sm:$0xff]  ;;  %5743 = vmatprep.subr.mxu0 %v3345_v49  ;;  %v2892_v49 = vld [vmem:[#allocation2 + $0x318] sm:$0xff] }
 0x37d   : > { %5744 = vmatpush3.msra.mxu0 %v3329_v52  ;;  %v2911_v52 = vld [vmem:[#allocation2 + $0x3b0] sm:$0xff] }
 0x37f   : > { %3101 = vxpose.xlu1.b32.cont [5/16] (narrow) %v2861_v54, 24  ;;  %v3344_v54 = vld [vmem:[%s8735_s3 + $0xb8] sm:$0xff] }
 0x380   : > { %3136 = vxpose.xlu0.b32.cont [8/16] (narrow) %v2880_v55, 24  ;;  %v2869_v55 = vld [vmem:[#allocation2 + $0x260] sm:$0xff]  ;;  %5745 = vmatprep.subr.mxu0 %v3344_v54  ;;  %v3424_v54 = vld [vmem:[%s8735_s3 + $0x338] sm:$0xff] }
 0x381   : > { %5746 = vmatpush3.msra.mxu0 %v3328_v57  ;;  %v2893_v57 = vld [vmem:[#allocation2 + $0x320] sm:$0xff] }
 0x383   : > { %3102 = vxpose.xlu1.b32.cont [6/16] (narrow) %v2862_v60, 24  ;;  %v3353_v60 = vld [vmem:[%s8735_s3 + $0x100] sm:$0xff] }
 0x384   : > { %3137 = vxpose.xlu0.b32.cont [9/16] (narrow) %v2881_v61, 24  ;;  %v3343_v61 = vld [vmem:[%s8735_s3 + $0xb0] sm:$0xff]  ;;  %5801 = vmatpush3.msra.mxu1 %v3353_v60 }
 0x385   : > { %5747 = vmatprep.subr.mxu0 %v3343_v61  ;;  %5852 = vmatprep.subr.mxu1 %v3448_v63  ;;  %v3423_v60 = vld [vmem:[%s8735_s3 + $0x330] sm:$0xff]  ;;  %v2912_v61 = vld [vmem:[#allocation2 + $0x3b8] sm:$0xff]  ;;  %v3413_v63 = vld [vmem:[%s8735_s3 + $0x2e0] sm:$0xff] }
 0x386   : > { %5748 = vmatpush3.msra.mxu0 %v3327_v2  ;;  %v3397_v2 = vld [vmem:[%s8735_s3 + $0x260] sm:$0xff] }
 0x387   : > { %3103 = vxpose.xlu1.b32.cont [7/16] (narrow) %v2863_v3, 24  ;;  %v2905_v3 = vld [vmem:[#allocation2 + $0x380] sm:$0xff] }
 0x388   : > { %3138 = vxpose.xlu0.b32.cont [10/16] (narrow) %v2882_v4, 24  ;;  %v3342_v4 = vld [vmem:[%s8735_s3 + $0xa8] sm:$0xff] }
 0x389   : > { %5749 = vmatprep.subr.mxu0 %v3342_v4  ;;  %v2894_v4 = vld [vmem:[#allocation2 + $0x328] sm:$0xff] }
 0x38a   : > { %5750 = vmatpush3.msra.mxu0 %v3326_v5  ;;  %v3412_v5 = vld [vmem:[%s8735_s3 + $0x2d8] sm:$0xff] }
 0x38b   : > { %3104 = vxpose.xlu1.b32.cont [8/16] (narrow) %v2864_v10, 24  ;;  %v2906_v10 = vld [vmem:[#allocation2 + $0x388] sm:$0xff]  ;;  %5751 = vmatprep.subr.mxu0 %v3341_v7  ;;  %v3437_v7 = vld [vmem:[%s8735_s3 + $0x3a0] sm:$0xff] }
 0x38c   : > { %3139 = vxpose.xlu0.b32.cont [11/16] (narrow) %v2883_v11, 24  ;;  %v3340_v11 = vld [vmem:[%s8735_s3 + $0x98] sm:$0xff]  ;;  %5752 = vmatpush3.msra.mxu0 %v3325_v9 }
 0x38d   : > { %5753 = vmatprep.subr.mxu0 %v3340_v11  ;;  %v3396_v9 = vld [vmem:[%s8735_s3 + $0x258] sm:$0xff]  ;;  %v3411_v11 = vld [vmem:[%s8735_s3 + $0x2d0] sm:$0xff] }
 0x38e   : > { %5754 = vmatpush3.msra.mxu0 %v3324_v12  ;;  %v2895_v12 = vld [vmem:[#allocation2 + $0x330] sm:$0xff] }
 0x38f   : > { %3105 = vxpose.xlu1.b32.cont [9/16] (narrow) %v2865_v19, 24  ;;  %v3323_v19 = vld [vmem:[%s8735_s3 + $0x10] sm:$0xff]  ;;  %5755 = vmatprep.subr.mxu0 %v3339_v15  ;;  %v2914_v15 = vld [vmem:[#allocation2 + $0x3c8] sm:$0xff] }
 0x390   : > { %3140 = vxpose.xlu0.b32.cont [12/16] (narrow) %v2884_v21, 24  ;;  %v3446_v21 = vld [vmem:[%s8735_s3 + $0x3e8] sm:$0xff]  ;;  %5756 = vmatpush3.msra.mxu0 %v3323_v19 }
 0x391   : > { %5757 = vmatprep.subr.mxu0 %v3338_v25  ;;  %v3419_v25 = vld [vmem:[%s8735_s3 + $0x310] sm:$0xff] }
 0x393   : > { %3106 = vxpose.xlu1.b32.cont [10/16] (narrow) %v2866_v28, 24  ;;  %v3322_v28 = vld [vmem:[%s8735_s3 + $0x8] sm:$0xff] }
 0x394   : > { %3141 = vxpose.xlu0.b32.cont [13/16] (narrow) %v2885_v31, 24  ;;  %v2890_v31 = vld [vmem:[#allocation2 + $0x308] sm:$0xff]  ;;  %5758 = vmatpush3.msra.mxu0 %v3322_v28 }
 0x395   : > { %5759 = vmatprep.subr.mxu0 %v3337_v33  ;;  %v3434_v28 = vld [vmem:[%s8735_s3 + $0x388] sm:$0xff]  ;;  %v2916_v33 = vld [vmem:[#allocation2 + $0x3d8] sm:$0xff] }
 0x397   : > { %3107 = vxpose.xlu1.b32.cont [11/16] (narrow) %v2867_v37, 24  ;;  %v3321_v37 = vld [vmem:[%s8735_s3] sm:$0xff] }
 0x398   : > { %3142 = vxpose.xlu0.b32.cont [14/16] (narrow) %v2886_v40, 24  ;;  %v2891_v40 = vld [vmem:[#allocation2 + $0x310] sm:$0xff]  ;;  %5760 = vmatpush3.msra.mxu0 %v3321_v37  ;;  %v3433_v37 = vld [vmem:[%s8735_s3 + $0x380] sm:$0xff] }
 0x399   : > { %5811 = vmatprep.subr.mxu0 %v3416_v42  ;;  %3569 = vmatmul.mubr.f32.vlgmr.msra.gmra.mxu0 %v7680_v44  ;;  %v2917_v42 = vld [vmem:[#allocation2 + $0x3e0] sm:$0xff] }
 0x39a   : > { %3573 = vmatprep.mubr.f32.mxu0 %v7660_v35 }
 0x39b   : > { %3108 = vxpose.xlu1.b32.cont [12/16] (narrow) %v2868_v46, 24  ;;  %v3400_v46 = vld [vmem:[%s8735_s3 + $0x278] sm:$0xff] }
 0x39c   : > { %3143 = vxpose.xlu0.b32.cont [15/16] (narrow) %v2887_v50, 24  ;;  %v3415_v50 = vld [vmem:[%s8735_s3 + $0x2f0] sm:$0xff]  ;;  %5812 = vmatpush3.msra.mxu0 %v3400_v46  ;;  %v3390_v46 = vld [vmem:[%s8735_s3 + $0x228] sm:$0xff] }
 0x39d   : > { %5813 = vmatprep.subr.mxu0 %v3415_v50  ;;  %v2918_v50 = vld [vmem:[#allocation2 + $0x3e8] sm:$0xff]  ;;  %3574 = vmatmul.mubr.f32.gmra.mxu0 %v7711_v59 }
 0x39e   : > { %5814 = vmatpush3.msra.mxu0 %v3399_v53  ;;  %v3388_v53 = vld [vmem:[%s8735_s3 + $0x218] sm:$0xff]  ;;  %3578 = vmatprep.mubr.f32.mxu0 %v7688_v48 }
 0x39f   : > { %3109 = vxpose.xlu1.b32.cont [13/16] (narrow) %v2869_v55, 24  ;;  %v3414_v55 = vld [vmem:[%s8735_s3 + $0x2e8] sm:$0xff] }
 0x3a0   : > { %3144 = vxpose.xlu0.b32.end [16/16] (narrow) %v2888_v58, 24  ;;  %v7719_v62 = vpop.trf.xlu0  ;;  %v3398_v58 = vld [vmem:[%s8735_s3 + $0x268] sm:$0xff]  ;;  %5815 = vmatprep.subr.mxu0 %v3414_v55  ;;  %v3403_v55 = vld [vmem:[%s8735_s3 + $0x290] sm:$0xff] }
 0x3a1   : > { %3648 = vmatprep.mubr.f32.mxu1 %v7719_v62  ;;  %5816 = vmatpush3.msra.mxu0 %v3398_v58  ;;  %v3402_v58 = vld [vmem:[%s8735_s3 + $0x288] sm:$0xff] }
 0x3a2   : > { %5817 = vmatprep.subr.mxu0 %v3413_v63  ;;  %3579 = vmatmul.mubr.f32.gmra.mxu0 %v7734_v6  ;;  %v3401_v63 = vld [vmem:[%s8735_s3 + $0x280] sm:$0xff] }
 0x3a3   : > { %3110 = vxpose.xlu1.b32.cont [14/16] (narrow) %v2870_v1, 24  ;;  %v3438_v1 = vld [vmem:[%s8735_s3 + $0x3a8] sm:$0xff]  ;;  %5818 = vmatpush3.msra.mxu0 %v3397_v2  ;;  %v3385_v2 = vld [vmem:[%s8735_s3 + $0x200] sm:$0xff] }
 0x3a4   : > { %3193 = vxpose.xlu0.b32.start [1/16] (narrow) %v2905_v3, 24  ;;  %v3422_v3 = vld [vmem:[%s8735_s3 + $0x328] sm:$0xff]  ;;  %5819 = vmatprep.subr.mxu0 %v3412_v5 }
 0x3a5   : > { %5820 = vmatpush3.msra.mxu0 %v3396_v9  ;;  %v2902_v5 = vld [vmem:[#allocation2 + $0x368] sm:$0xff] }
 0x3a6   : > { %5821 = vmatprep.subr.mxu0 %v3411_v11  ;;  %v2938_v9 = vld [vmem:[#allocation2 + $0x488] sm:$0xff]  ;;  %v3464_v11 = vld [vmem:[%s8735_s3 + $0x478] sm:$0xff] }
 0x3a7   : > { %3111 = vxpose.xlu1.b32.cont [15/16] (narrow) %v2871_v8, 24  ;;  %v2913_v8 = vld [vmem:[#allocation2 + $0x3c0] sm:$0xff] }
 0x3a8   : > { %3194 = vxpose.xlu0.b32.cont [2/16] (narrow) %v2906_v10, 24  ;;  %v3421_v10 = vld [vmem:[%s8735_s3 + $0x320] sm:$0xff] }
 0x3ab   : > { %3112 = vxpose.xlu1.b32.end [16/16] (narrow) %v2872_v13, 24  ;;  %v7755_v17 = vpop.trf.xlu1  ;;  %v7873_v13 = vpop.trf.xlu0 }
 0x3ac   : > { %3195 = vxpose.xlu0.b32.cont [3/16] (narrow) %v2907_v16, 24  ;;  %3649 = vmatmul.mubr.f32.vlgmr.msra.gmra.mxu1 %v7755_v17  ;;  %v3395_v16 = vld [vmem:[%s8735_s3 + $0x250] sm:$0xff] }
 0x3ad   : > { %5853 = vmatpush3.msra.mxu1 %v3432_v14  ;;  %v3436_v14 = vld [vmem:[%s8735_s3 + $0x398] sm:$0xff]  ;;  %3653 = vmatprep.mubr.f32.mxu1 %v7873_v13 }
 0x3ae   : > { %5854 = vmatprep.subr.mxu1 %v3447_v18  ;;  %v3420_v18 = vld [vmem:[%s8735_s3 + $0x318] sm:$0xff]  ;;  %5822 = vmatpush3.msra.mxu0 %v3395_v16 }
 0x3af   : > { %3161 = vxpose.xlu1.b32.start [1/16] (narrow) %v2889_v22, 24  ;;  %5855 = vmatpush3.msra.mxu1 %v3431_v20  ;;  %v7885_v19 = vpop.trf.xlu1  ;;  %v3410_v20 = vld [vmem:[%s8735_s3 + $0x2c8] sm:$0xff]  ;;  %v2896_v22 = vld [vmem:[#allocation2 + $0x338] sm:$0xff] }
 0x3b0   : > { %3196 = vxpose.xlu0.b32.cont [4/16] (narrow) %v2908_v26, 24  ;;  %5856 = vmatprep.subr.mxu1 %v3446_v21  ;;  %v3435_v21 = vld [vmem:[%s8735_s3 + $0x390] sm:$0xff] }
 0x3b1   : > { %5857 = vmatpush3.msra.mxu1 %v3430_v23  ;;  %v3394_v23 = vld [vmem:[%s8735_s3 + $0x248] sm:$0xff]  ;;  %v2915_v26 = vld [vmem:[#allocation2 + $0x3d0] sm:$0xff]  ;;  %5823 = vmatprep.subr.mxu0 %v3410_v20 }
 0x3b2   : > { %5858 = vmatprep.subr.mxu1 %v3445_v27  ;;  %3654 = vmatmul.mubr.f32.gmra.mxu1 %v7885_v19  ;;  %v3409_v27 = vld [vmem:[%s8735_s3 + $0x2c0] sm:$0xff]  ;;  %v3478_v20 = vld [vmem:[%s8735_s3 + $0x4e8] sm:$0xff] }
 0x3b3   : > { %3162 = vxpose.xlu1.b32.cont [2/16] (narrow) %v2890_v31, 24  ;;  %5859 = vmatpush3.msra.mxu1 %v3429_v29  ;;  %v7906_v29 = vpop.trf.xlu0  ;;  %v3393_v31 = vld [vmem:[%s8735_s3 + $0x240] sm:$0xff] }
 0x3b4   : > { %3197 = vxpose.xlu0.b32.cont [5/16] (narrow) %v2909_v34, 24  ;;  %5860 = vmatprep.subr.mxu1 %v3444_v30  ;;  %v2897_v30 = vld [vmem:[#allocation2 + $0x340] sm:$0xff]  ;;  %v7915_v34 = vpop.trf.xlu1 }
 0x3b5   : > { %5861 = vmatpush3.msra.mxu1 %v3428_v32  ;;  %5824 = vmatpush3.msra.mxu0 %v3394_v23  ;;  %v3418_v32 = vld [vmem:[%s8735_s3 + $0x308] sm:$0xff]  ;;  %v2940_v23 = vld [vmem:[#allocation2 + $0x498] sm:$0xff] }
 0x3b6   : > { %5862 = vmatprep.subr.mxu1 %v3443_v36  ;;  %3658 = vmatprep.mubr.f32.mxu1 %v7906_v29  ;;  %v3408_v36 = vld [vmem:[%s8735_s3 + $0x2b8] sm:$0xff] }
 0x3b7   : > { %3163 = vxpose.xlu1.b32.cont [3/16] (narrow) %v2891_v40, 24  ;;  %5863 = vmatpush3.msra.mxu1 %v3427_v38  ;;  %v3392_v38 = vld [vmem:[%s8735_s3 + $0x238] sm:$0xff]  ;;  %v2898_v40 = vld [vmem:[#allocation2 + $0x348] sm:$0xff] }
 0x3b8   : > { %3198 = vxpose.xlu0.b32.cont [6/16] (narrow) %v2910_v43, 24  ;;  %5864 = vmatprep.subr.mxu1 %v3442_v39  ;;  %v3417_v39 = vld [vmem:[%s8735_s3 + $0x300] sm:$0xff]  ;;  %v3391_v43 = vld [vmem:[%s8735_s3 + $0x230] sm:$0xff] }
 0x3b9   : > { %5865 = vmatpush3.msra.mxu1 %v3426_v41  ;;  %5825 = vmatprep.subr.mxu0 %v3409_v27  ;;  %v3407_v41 = vld [vmem:[%s8735_s3 + $0x2b0] sm:$0xff]  ;;  %v3461_v27 = vld [vmem:[%s8735_s3 + $0x460] sm:$0xff] }
 0x3ba   : > { %5866 = vmatprep.subr.mxu1 %v3441_v45  ;;  %3659 = vmatmul.mubr.f32.gmra.mxu1 %v7915_v34  ;;  %v3406_v45 = vld [vmem:[%s8735_s3 + $0x2a8] sm:$0xff] }
 0x3bb   : > { %3164 = vxpose.xlu1.b32.cont [4/16] (narrow) %v2892_v49, 24  ;;  %5867 = vmatpush3.msra.mxu1 %v3425_v47  ;;  %v2899_v47 = vld [vmem:[#allocation2 + $0x350] sm:$0xff]  ;;  %v3405_v49 = vld [vmem:[%s8735_s3 + $0x2a0] sm:$0xff] }
 0x3bc   : > { %3199 = vxpose.xlu0.b32.cont [7/16] (narrow) %v2911_v52, 24  ;;  %5868 = vmatprep.subr.mxu1 %v3440_v51  ;;  %v3389_v51 = vld [vmem:[%s8735_s3 + $0x220] sm:$0xff]  ;;  %v3404_v52 = vld [vmem:[%s8735_s3 + $0x298] sm:$0xff] }
 0x3bd   : > { %5869 = vmatpush3.msra.mxu1 %v3424_v54  ;;  %5826 = vmatpush3.msra.mxu0 %v3393_v31  ;;  %v2900_v54 = vld [vmem:[#allocation2 + $0x358] sm:$0xff] }
 0x3be   : > { %5870 = vmatprep.subr.mxu1 %v3439_v56  ;;  %5827 = vmatprep.subr.mxu0 %v3408_v36  ;;  %v2919_v56 = vld [vmem:[#allocation2 + $0x3f0] sm:$0xff]  ;;  %v3460_v31 = vld [vmem:[%s8735_s3 + $0x458] sm:$0xff] }
 0x3bf   : > { %3165 = vxpose.xlu1.b32.cont [5/16] (narrow) %v2893_v57, 24  ;;  %5871 = vmatpush3.msra.mxu1 %v3423_v60  ;;  %v3387_v57 = vld [vmem:[%s8735_s3 + $0x210] sm:$0xff]  ;;  %v3386_v60 = vld [vmem:[%s8735_s3 + $0x208] sm:$0xff] }
 0x3c0   : > { %3200 = vxpose.xlu0.b32.cont [8/16] (narrow) %v2912_v61, 24  ;;  %5872 = vmatprep.subr.mxu1 %v3438_v1  ;;  %v2901_v61 = vld [vmem:[#allocation2 + $0x360] sm:$0xff]  ;;  %v2920_v1 = vld [vmem:[#allocation2 + $0x3f8] sm:$0xff] }
 0x3c1   : > { %5873 = vmatpush3.msra.mxu1 %v3422_v3  ;;  %5828 = vmatpush3.msra.mxu0 %v3392_v38 }
 0x3c2   : > { %5874 = vmatprep.subr.mxu1 %v3437_v7  ;;  %5829 = vmatprep.subr.mxu0 %v3407_v41  ;;  %v2937_v7 = vld [vmem:[#allocation2 + $0x480] sm:$0xff]  ;;  %v3458_v41 = vld [vmem:[%s8735_s3 + $0x448] sm:$0xff] }
 0x3c3   : > { %3166 = vxpose.xlu1.b32.cont [6/16] (narrow) %v2894_v4, 24  ;;  %5875 = vmatpush3.msra.mxu1 %v3421_v10  ;;  %v3480_v4 = vld [vmem:[%s8735_s3 + $0x4f8] sm:$0xff] }
 0x3c4   : > { %3201 = vxpose.xlu0.b32.cont [9/16] (narrow) %v2913_v8, 24  ;;  %5876 = vmatprep.subr.mxu1 %v3436_v14  ;;  %v2903_v8 = vld [vmem:[#allocation2 + $0x370] sm:$0xff]  ;;  %v2904_v10 = vld [vmem:[#allocation2 + $0x378] sm:$0xff] }
 0x3c5   : > { %5877 = vmatpush3.msra.mxu1 %v3420_v18  ;;  %5830 = vmatpush3.msra.mxu0 %v3391_v43  ;;  %v3463_v18 = vld [vmem:[%s8735_s3 + $0x470] sm:$0xff]  ;;  %v3473_v43 = vld [vmem:[%s8735_s3 + $0x4c0] sm:$0xff] }
 0x3c6   : > { %5878 = vmatprep.subr.mxu1 %v3435_v21  ;;  %5831 = vmatprep.subr.mxu0 %v3406_v45  ;;  %v2921_v21 = vld [vmem:[#allocation2 + $0x400] sm:$0xff] }
 0x3c7   : > { %3167 = vxpose.xlu1.b32.cont [7/16] (narrow) %v2895_v12, 24  ;;  %5879 = vmatpush3.msra.mxu1 %v3419_v25  ;;  %v2939_v12 = vld [vmem:[#allocation2 + $0x490] sm:$0xff]  ;;  %v3457_v45 = vld [vmem:[%s8735_s3 + $0x440] sm:$0xff] }
 0x3c8   : > { %3202 = vxpose.xlu0.b32.cont [10/16] (narrow) %v2914_v15, 24  ;;  %5880 = vmatprep.subr.mxu1 %v3434_v28  ;;  %v3479_v15 = vld [vmem:[%s8735_s3 + $0x4f0] sm:$0xff]  ;;  %v3476_v28 = vld [vmem:[%s8735_s3 + $0x4d8] sm:$0xff] }
 0x3c9   : > { %5881 = vmatpush3.msra.mxu1 %v3418_v32  ;;  %5832 = vmatpush3.msra.mxu0 %v3390_v46  ;;  %v2941_v32 = vld [vmem:[#allocation2 + $0x4a0] sm:$0xff]  ;;  %v3472_v46 = vld [vmem:[%s8735_s3 + $0x4b8] sm:$0xff] }
 0x3ca   : > { %5882 = vmatprep.subr.mxu1 %v3433_v37  ;;  %5833 = vmatprep.subr.mxu0 %v3405_v49  ;;  %v3459_v37 = vld [vmem:[%s8735_s3 + $0x450] sm:$0xff]  ;;  %v3456_v49 = vld [vmem:[%s8735_s3 + $0x438] sm:$0xff] }
 0x3cb   : > { %3168 = vxpose.xlu1.b32.cont [8/16] (narrow) %v2896_v22, 24  ;;  %5883 = vmatpush3.msra.mxu1 %v3417_v39  ;;  %v3462_v22 = vld [vmem:[%s8735_s3 + $0x468] sm:$0xff] }
 0x3cc   : > { %3203 = vxpose.xlu0.b32.cont [11/16] (narrow) %v2915_v26, 24  ;;  %5969 = vmatprep.subr.mxu1 %v8741_v0  ;;  %v3477_v26 = vld [vmem:[%s8735_s3 + $0x4e0] sm:$0xff]  ;;  %v3474_v39 = vld [vmem:[%s8735_s3 + $0x4c8] sm:$0xff] }
 0x3cd   : > { %5834 = vmatpush3.msra.mxu0 %v3389_v51  ;;  %v3471_v51 = vld [vmem:[%s8735_s3 + $0x4b0] sm:$0xff] }
 0x3ce   : > { %5835 = vmatprep.subr.mxu0 %v3404_v52  ;;  %v3455_v52 = vld [vmem:[%s8735_s3 + $0x430] sm:$0xff] }
 0x3cf   : > { %3169 = vxpose.xlu1.b32.cont [9/16] (narrow) %v2897_v30, 24  ;;  %5836 = vmatpush3.msra.mxu0 %v3388_v53  ;;  %v2922_v30 = vld [vmem:[#allocation2 + $0x408] sm:$0xff] }
 0x3d0   : > { %3204 = vxpose.xlu0.b32.cont [12/16] (narrow) %v2916_v33, 24  ;;  %5837 = vmatprep.subr.mxu0 %v3403_v55  ;;  %v3475_v33 = vld [vmem:[%s8735_s3 + $0x4d0] sm:$0xff]  ;;  %v3470_v53 = vld [vmem:[%s8735_s3 + $0x4a8] sm:$0xff] }
 0x3d1   : > { %5838 = vmatpush3.msra.mxu0 %v3387_v57  ;;  %v3454_v55 = vld [vmem:[%s8735_s3 + $0x428] sm:$0xff]  ;;  %v3469_v57 = vld [vmem:[%s8735_s3 + $0x4a0] sm:$0xff] }
 0x3d2   : > { %5839 = vmatprep.subr.mxu0 %v3402_v58  ;;  %v3453_v58 = vld [vmem:[%s8735_s3 + $0x420] sm:$0xff] }
 0x3d3   : > { %3170 = vxpose.xlu1.b32.cont [10/16] (narrow) %v2898_v40, 24  ;;  %5840 = vmatpush3.msra.mxu0 %v3386_v60  ;;  %v2923_v40 = vld [vmem:[#allocation2 + $0x410] sm:$0xff]  ;;  %v3468_v60 = vld [vmem:[%s8735_s3 + $0x498] sm:$0xff] }
 0x3d4   : > { %3205 = vxpose.xlu0.b32.cont [13/16] (narrow) %v2917_v42, 24  ;;  %5841 = vmatprep.subr.mxu0 %v3401_v63  ;;  %v2942_v42 = vld [vmem:[#allocation2 + $0x4a8] sm:$0xff]  ;;  %v3452_v63 = vld [vmem:[%s8735_s3 + $0x418] sm:$0xff] }
 0x3d5   : > { %5842 = vmatpush3.msra.mxu0 %v3385_v2  ;;  %v3467_v2 = vld [vmem:[%s8735_s3 + $0x490] sm:$0xff] }
 0x3d6   : > { %5893 = vmatprep.subr.mxu0 %v3480_v4  ;;  %v3451_v4 = vld [vmem:[%s8735_s3 + $0x410] sm:$0xff] }
 0x3d7   : > { %3171 = vxpose.xlu1.b32.cont [11/16] (narrow) %v2899_v47, 24  ;;  %v2924_v47 = vld [vmem:[#allocation2 + $0x418] sm:$0xff] }
 0x3d8   : > { %3206 = vxpose.xlu0.b32.cont [14/16] (narrow) %v2918_v50, 24  ;;  %v2943_v50 = vld [vmem:[#allocation2 + $0x4b0] sm:$0xff] }
 0x3db   : > { %3172 = vxpose.xlu1.b32.cont [12/16] (narrow) %v2900_v54, 24  ;;  %v2925_v54 = vld [vmem:[#allocation2 + $0x420] sm:$0xff] }
 0x3dc   : > { %3207 = vxpose.xlu0.b32.cont [15/16] (narrow) %v2919_v56, 24  ;;  %v2944_v56 = vld [vmem:[#allocation2 + $0x4b8] sm:$0xff] }
 0x3df   : > { %3173 = vxpose.xlu1.b32.cont [13/16] (narrow) %v2901_v61, 24  ;;  %v2926_v61 = vld [vmem:[#allocation2 + $0x428] sm:$0xff] }
 0x3e0   : > { %3208 = vxpose.xlu0.b32.end [16/16] (narrow) %v2920_v1, 24  ;;  %v7978_v3 = vpop.trf.xlu0  ;;  %v2945_v1 = vld [vmem:[#allocation2 + $0x4c0] sm:$0xff] }
 0x3e1   : > { %3728 = vmatprep.mubr.f32.mxu0 %v7978_v3 }
 0x3e3   : > { %3174 = vxpose.xlu1.b32.cont [14/16] (narrow) %v2902_v5, 24  ;;  %v3466_v5 = vld [vmem:[%s8735_s3 + $0x488] sm:$0xff] }
 0x3e4   : > { %3257 = vxpose.xlu0.b32.start [1/16] (narrow) %v2937_v7, 24  ;;  %v7992_v16 = vpop.trf.xlu0  ;;  %v2927_v7 = vld [vmem:[#allocation2 + $0x430] sm:$0xff] }
 0x3e7   : > { %3175 = vxpose.xlu1.b32.cont [15/16] (narrow) %v2903_v8, 24  ;;  %v3450_v8 = vld [vmem:[%s8735_s3 + $0x408] sm:$0xff] }
 0x3e8   : > { %3258 = vxpose.xlu0.b32.cont [2/16] (narrow) %v2938_v9, 24  ;;  %v8023_v36 = vpop.trf.xlu0  ;;  %v2946_v9 = vld [vmem:[#allocation2 + $0x4c8] sm:$0xff] }
 0x3eb   : > { %3176 = vxpose.xlu1.b32.end [16/16] (narrow) %v2904_v10, 24  ;;  %v7987_v14 = vpop.trf.xlu1  ;;  %v3465_v10 = vld [vmem:[%s8735_s3 + $0x480] sm:$0xff] }
 0x3ec   : > { %3259 = vxpose.xlu0.b32.cont [3/16] (narrow) %v2939_v12, 24  ;;  %3729 = vmatmul.mubr.f32.vlgmr.msra.gmra.mxu0 %v7987_v14  ;;  %v2928_v12 = vld [vmem:[#allocation2 + $0x438] sm:$0xff] }
 0x3ed   : > { %5894 = vmatpush3.msra.mxu0 %v3464_v11  ;;  %3733 = vmatprep.mubr.f32.mxu0 %v7992_v16  ;;  %v3449_v11 = vld [vmem:[%s8735_s3 + $0x400] sm:$0xff] }
 0x3ee   : > { %5895 = vmatprep.subr.mxu0 %v3479_v15  ;;  %v2947_v15 = vld [vmem:[#allocation2 + $0x4d0] sm:$0xff] }
 0x3ef   : > { %3225 = vxpose.xlu1.b32.start [1/16] (narrow) %v2921_v21, 24  ;;  %v8005_v25 = vpop.trf.xlu1  ;;  %5896 = vmatpush3.msra.mxu0 %v3463_v18  ;;  %v2929_v18 = vld [vmem:[#allocation2 + $0x440] sm:$0xff]  ;;  %v2930_v21 = vld [vmem:[#allocation2 + $0x448] sm:$0xff] }
 0x3f0   : > { %3260 = vxpose.xlu0.b32.cont [4/16] (narrow) %v2940_v23, 24  ;;  %5897 = vmatprep.subr.mxu0 %v3478_v20  ;;  %v2948_v20 = vld [vmem:[#allocation2 + $0x4d8] sm:$0xff]  ;;  %v2931_v23 = vld [vmem:[#allocation2 + $0x450] sm:$0xff] }
 0x3f1   : > { %5898 = vmatpush3.msra.mxu0 %v3462_v22  ;;  %v2949_v22 = vld [vmem:[#allocation2 + $0x4e0] sm:$0xff] }
 0x3f2   : > { %5899 = vmatprep.subr.mxu0 %v3477_v26  ;;  %3734 = vmatmul.mubr.f32.gmra.mxu0 %v8005_v25  ;;  %v2950_v26 = vld [vmem:[#allocation2 + $0x4e8] sm:$0xff] }
 0x3f3   : > { %3226 = vxpose.xlu1.b32.cont [2/16] (narrow) %v2922_v30, 24  ;;  %5900 = vmatpush3.msra.mxu0 %v3461_v27  ;;  %v8028_v38 = vpop.trf.xlu1  ;;  %v2932_v27 = vld [vmem:[#allocation2 + $0x458] sm:$0xff]  ;;  %v2933_v30 = vld [vmem:[#allocation2 + $0x460] sm:$0xff] }
 0x3f4   : > { %3261 = vxpose.xlu0.b32.cont [5/16] (narrow) %v2941_v32, 24  ;;  %5901 = vmatprep.subr.mxu0 %v3476_v28  ;;  %v2951_v28 = vld [vmem:[#allocation2 + $0x4f0] sm:$0xff] }
 0x3f5   : > { %5902 = vmatpush3.msra.mxu0 %v3460_v31  ;;  %3738 = vmatprep.mubr.f32.mxu0 %v8023_v36  ;;  %v2952_v31 = vld [vmem:[#allocation2 + $0x4f8] sm:$0xff] }
 0x3f6   : > { %5903 = vmatprep.subr.mxu0 %v3475_v33  ;;  %3739 = vmatmul.mubr.f32.gmra.mxu0 %v8028_v38  ;;  %v2934_v33 = vld [vmem:[#allocation2 + $0x468] sm:$0xff] }
 0x3f7   : > { %3227 = vxpose.xlu1.b32.cont [3/16] (narrow) %v2923_v40, 24  ;;  %5904 = vmatpush3.msra.mxu0 %v3459_v37  ;;  %v2953_v37 = vld [vmem:[#allocation2 + $0x500] sm:$0xff]  ;;  %v2954_v40 = vld [vmem:[#allocation2 + $0x508] sm:$0xff] }
 0x3f8   : > { %3262 = vxpose.xlu0.b32.cont [6/16] (narrow) %v2942_v42, 24  ;;  %5905 = vmatprep.subr.mxu0 %v3474_v39  ;;  %v2935_v39 = vld [vmem:[#allocation2 + $0x470] sm:$0xff]  ;;  %v3496_v42 = vld [vmem:[%s8735_s3 + $0x578] sm:$0xff] }
 0x3f9   : > { %5906 = vmatpush3.msra.mxu0 %v3458_v41  ;;  %v2936_v41 = vld [vmem:[#allocation2 + $0x478] sm:$0xff] }
 0x3fa   : > { %5907 = vmatprep.subr.mxu0 %v3473_v43 }
 0x3fb   : > { %3228 = vxpose.xlu1.b32.cont [4/16] (narrow) %v2924_v47, 24  ;;  %5908 = vmatpush3.msra.mxu0 %v3457_v45  ;;  %v2955_v45 = vld [vmem:[#allocation2 + $0x510] sm:$0xff] }
 0x3fc   : > { %3263 = vxpose.xlu0.b32.cont [7/16] (narrow) %v2943_v50, 24  ;;  %5909 = vmatprep.subr.mxu0 %v3472_v46  ;;  %v3495_v47 = vld [vmem:[%s8735_s3 + $0x570] sm:$0xff]  ;;  %v2956_v50 = vld [vmem:[#allocation2 + $0x518] sm:$0xff] }
 0x3fd   : > { %5910 = vmatpush3.msra.mxu0 %v3456_v49  ;;  %v3494_v49 = vld [vmem:[%s8735_s3 + $0x568] sm:$0xff] }
 0x3fe   : > { %5911 = vmatprep.subr.mxu0 %v3471_v51 }
 0x3ff   : > { %3229 = vxpose.xlu1.b32.cont [5/16] (narrow) %v2925_v54, 24  ;;  %5912 = vmatpush3.msra.mxu0 %v3455_v52  ;;  %v3493_v52 = vld [vmem:[%s8735_s3 + $0x560] sm:$0xff]  ;;  %v3492_v54 = vld [vmem:[%s8735_s3 + $0x558] sm:$0xff] }
 0x400   : > { %3264 = vxpose.xlu0.b32.cont [8/16] (narrow) %v2944_v56, 24  ;;  %5913 = vmatprep.subr.mxu0 %v3470_v53 }
 0x401   : > { %5914 = vmatpush3.msra.mxu0 %v3454_v55  ;;  %v2957_v55 = vld [vmem:[#allocation2 + $0x520] sm:$0xff] }
 0x402   : > { %5915 = vmatprep.subr.mxu0 %v3469_v57  ;;  %v3491_v57 = vld [vmem:[%s8735_s3 + $0x550] sm:$0xff] }
 0x403   : > { %3230 = vxpose.xlu1.b32.cont [6/16] (narrow) %v2926_v61, 24  ;;  %5916 = vmatpush3.msra.mxu0 %v3453_v58  ;;  %v3490_v58 = vld [vmem:[%s8735_s3 + $0x548] sm:$0xff]  ;;  %v3489_v61 = vld [vmem:[%s8735_s3 + $0x540] sm:$0xff] }
 0x404   : > { %3265 = vxpose.xlu0.b32.cont [9/16] (narrow) %v2945_v1, 24  ;;  %5917 = vmatprep.subr.mxu0 %v3468_v60  ;;  %v2958_v60 = vld [vmem:[#allocation2 + $0x528] sm:$0xff]  ;;  %v2959_v1 = vld [vmem:[#allocation2 + $0x530] sm:$0xff] }
 0x405   : > { %5918 = vmatpush3.msra.mxu0 %v3452_v63  ;;  %v3488_v63 = vld [vmem:[%s8735_s3 + $0x538] sm:$0xff] }
 0x406   : > { %5919 = vmatprep.subr.mxu0 %v3467_v2  ;;  %v3487_v2 = vld [vmem:[%s8735_s3 + $0x530] sm:$0xff] }
 0x407   : > { %3231 = vxpose.xlu1.b32.cont [7/16] (narrow) %v2927_v7, 24  ;;  %5920 = vmatpush3.msra.mxu0 %v3451_v4  ;;  %v3486_v4 = vld [vmem:[%s8735_s3 + $0x528] sm:$0xff]  ;;  %v3485_v7 = vld [vmem:[%s8735_s3 + $0x520] sm:$0xff] }
 0x408   : > { %3266 = vxpose.xlu0.b32.cont [10/16] (narrow) %v2946_v9, 24  ;;  %5921 = vmatprep.subr.mxu0 %v3466_v5  ;;  %v2960_v5 = vld [vmem:[#allocation2 + $0x538] sm:$0xff]  ;;  %v2961_v9 = vld [vmem:[#allocation2 + $0x540] sm:$0xff] }
 0x409   : > { %5922 = vmatpush3.msra.mxu0 %v3450_v8  ;;  %v3484_v8 = vld [vmem:[%s8735_s3 + $0x518] sm:$0xff] }
 0x40a   : > { %5923 = vmatprep.subr.mxu0 %v3465_v10  ;;  %v3483_v10 = vld [vmem:[%s8735_s3 + $0x510] sm:$0xff] }
 0x40b   : > { %3232 = vxpose.xlu1.b32.cont [8/16] (narrow) %v2928_v12, 24  ;;  %5924 = vmatpush3.msra.mxu0 %v3449_v11  ;;  %v3482_v11 = vld [vmem:[%s8735_s3 + $0x508] sm:$0xff] }
 0x40c   : > { %3267 = vxpose.xlu0.b32.cont [11/16] (narrow) %v2947_v15, 24  ;;  %6010 = vmatprep.subr.mxu0 %v8741_v0  ;;  %v2962_v12 = vld [vmem:[#allocation2 + $0x548] sm:$0xff]  ;;  %v3481_v15 = vld [vmem:[%s8735_s3 + $0x500] sm:$0xff] }
 0x40f   : > { %3233 = vxpose.xlu1.b32.cont [9/16] (narrow) %v2929_v18, 24  ;;  %v2963_v18 = vld [vmem:[#allocation2 + $0x550] sm:$0xff] }
 0x410   : > { %3268 = vxpose.xlu0.b32.cont [12/16] (narrow) %v2948_v20, 24  ;;  %v2964_v20 = vld [vmem:[#allocation2 + $0x558] sm:$0xff] }
 0x413   : > { %3234 = vxpose.xlu1.b32.cont [10/16] (narrow) %v2930_v21, 24  ;;  %v2965_v21 = vld [vmem:[#allocation2 + $0x560] sm:$0xff] }
 0x414   : > { %3269 = vxpose.xlu0.b32.cont [13/16] (narrow) %v2949_v22, 24  ;;  %v2966_v22 = vld [vmem:[#allocation2 + $0x568] sm:$0xff] }
 0x417   : > { %3235 = vxpose.xlu1.b32.cont [11/16] (narrow) %v2931_v23, 24  ;;  %v2967_v23 = vld [vmem:[#allocation2 + $0x570] sm:$0xff] }
 0x418   : > { %3270 = vxpose.xlu0.b32.cont [14/16] (narrow) %v2950_v26, 24  ;;  %v2968_v26 = vld [vmem:[#allocation2 + $0x578] sm:$0xff] }
 0x41b   : > { %3236 = vxpose.xlu1.b32.cont [12/16] (narrow) %v2932_v27, 24 }
 0x41c   : > { %3271 = vxpose.xlu0.b32.cont [15/16] (narrow) %v2951_v28, 24 }
 0x41f   : > { %3237 = vxpose.xlu1.b32.cont [13/16] (narrow) %v2933_v30, 24 }
 0x420   : > { %3272 = vxpose.xlu0.b32.end [16/16] (narrow) %v2952_v31, 24  ;;  %v8093_v32 = vpop.trf.xlu0  ;;  %v3985_v31 = vld [vmem:[%s8737_s5 + $0x8] sm:$0xff] }
 0x421   : > { %3808 = vmatprep.mubr.f32.mxu1 %v8093_v32 }
 0x423   : > { %3238 = vxpose.xlu1.b32.cont [14/16] (narrow) %v2934_v33, 24  ;;  %v3984_v33 = vld [vmem:[%s8737_s5] sm:$0xff] }
 0x424   : > { %3289 = vxpose.xlu0.b32.start [1/16] (narrow) %v2953_v37, 24  ;;  %v8099_v43 = vpop.trf.xlu0 }
 0x427   : > { %3239 = vxpose.xlu1.b32.cont [15/16] (narrow) %v2935_v39, 24 }
 0x428   : > { %3290 = vxpose.xlu0.b32.cont [2/16] (narrow) %v2954_v40, 24  ;;  %v8118_v53 = vpop.trf.xlu0 }
 0x42b   : > { %3240 = vxpose.xlu1.b32.end [16/16] (narrow) %v2936_v41, 24  ;;  %v8101_v46 = vpop.trf.xlu1 }
 0x42c   : > { %3291 = vxpose.xlu0.b32.cont [3/16] (narrow) %v2955_v45, 24  ;;  %3809 = vmatmul.mubr.f32.vlgmr.msra.gmra.mxu1 %v8101_v46 }
 0x42d   : > { %5970 = vmatpush3.msra.mxu1 %v3496_v42  ;;  %3813 = vmatprep.mubr.f32.mxu1 %v8099_v43 }
 0x42e   : > { %5971 = vmatprep.subr.mxu1 %v8741_v0 }
 0x42f   : > { %5972 = vmatpush3.msra.mxu1 %v3495_v47  ;;  %v8112_v51 = vpop.trf.xlu1 }
 0x430   : > { %3292 = vxpose.xlu0.b32.cont [4/16] (narrow) %v2956_v50, 24  ;;  %5973 = vmatprep.subr.mxu1 %v8741_v0 }
 0x431   : > { %5974 = vmatpush3.msra.mxu1 %v3494_v49 }
 0x432   : > { %5975 = vmatprep.subr.mxu1 %v8741_v0  ;;  %3814 = vmatmul.mubr.f32.gmra.mxu1 %v8112_v51 }
 0x433   : > { %5976 = vmatpush3.msra.mxu1 %v3493_v52  ;;  %3818 = vmatprep.mubr.f32.mxu1 %v8118_v53  ;;  %v8126_v56 = vpop.trf.xlu1 }
 0x434   : > { %3293 = vxpose.xlu0.b32.cont [5/16] (narrow) %v2957_v55, 24  ;;  %5977 = vmatprep.subr.mxu1 %v8741_v0 }
 0x435   : > { %5978 = vmatpush3.msra.mxu1 %v3492_v54 }
 0x436   : > { %5979 = vmatprep.subr.mxu1 %v8741_v0  ;;  %3819 = vmatmul.mubr.f32.gmra.mxu1 %v8126_v56 }
 0x437   : > { %5980 = vmatpush3.msra.mxu1 %v3491_v57  ;;  %6001 = vmatprep.mubr.msk.f32.mxu1 %vm6085_vm8, %v8741_v0 }
 0x438   : > { %3294 = vxpose.xlu0.b32.cont [6/16] (narrow) %v2958_v60, 24  ;;  %5981 = vmatprep.subr.mxu1 %v8741_v0 }
 0x439   : > { %5982 = vmatpush3.msra.mxu1 %v3490_v58 }
 0x43a   : > { %5983 = vmatprep.subr.mxu1 %v8741_v0 }
 0x43b   : > { %5984 = vmatpush3.msra.mxu1 %v3489_v61 }
 0x43c   : > { %3295 = vxpose.xlu0.b32.cont [7/16] (narrow) %v2959_v1, 24  ;;  %5985 = vmatprep.subr.mxu1 %v8741_v0 }
 0x43d   : > { %5986 = vmatpush3.msra.mxu1 %v3488_v63 }
 0x43e   : > { %5987 = vmatprep.subr.mxu1 %v8741_v0 }
 0x43f   : > { %5988 = vmatpush3.msra.mxu1 %v3487_v2 }
 0x440   : > { %3296 = vxpose.xlu0.b32.cont [8/16] (narrow) %v2960_v5, 24  ;;  %5989 = vmatprep.subr.mxu1 %v8741_v0  ;;  %v5699_v5 = vld [vmem:[%s8736_s4] ss:$0 sm:$0xff] }
 0x441   : > { %5990 = vmatpush3.msra.mxu1 %v3486_v4 }
 0x442   : > { %5991 = vmatprep.subr.mxu1 %v8741_v0 }
 0x443   : > { %5992 = vmatpush3.msra.mxu1 %v3485_v7 }
 0x444   : > { %3297 = vxpose.xlu0.b32.cont [9/16] (narrow) %v2961_v9, 24  ;;  %5993 = vmatprep.subr.mxu1 %v8741_v0 }
 0x445   : > { %5994 = vmatpush3.msra.mxu1 %v3484_v8 }
 0x446   : > { %5995 = vmatprep.subr.mxu1 %v8741_v0 }
 0x447   : > { %5996 = vmatpush3.msra.mxu1 %v3483_v10 }
 0x448   : > { %3298 = vxpose.xlu0.b32.cont [10/16] (narrow) %v2962_v12, 24  ;;  %5997 = vmatprep.subr.mxu1 %v8741_v0 }
 0x449   : > { %5998 = vmatpush3.msra.mxu1 %v3482_v11 }
 0x44a   : > { %5999 = vmatprep.subr.mxu1 %v8741_v0 }
 0x44b   : > { %6000 = vmatpush3.msra.mxu1 %v3481_v15 }
 0x44c   : > { %3299 = vxpose.xlu0.b32.cont [11/16] (narrow) %v2963_v18, 24  ;;  %4146 = vmatprep.subr.mxu1 %v7688_v48  ;;  %v3986_v48 = vld [vmem:[%s8737_s5 + $0x10] sm:$0xff] }
 0x450   : > { %3300 = vxpose.xlu0.b32.cont [12/16] (narrow) %v2964_v20, 24 }
 0x454   : > { %3301 = vxpose.xlu0.b32.cont [13/16] (narrow) %v2965_v21, 24 }
 0x458   : > { %3302 = vxpose.xlu0.b32.cont [14/16] (narrow) %v2966_v22, 24 }
 0x45c   : > { %3303 = vxpose.xlu0.b32.cont [15/16] (narrow) %v2967_v23, 24 }
 0x460   : > { %3304 = vxpose.xlu0.b32.end [16/16] (narrow) %v2968_v26, 24  ;;  %v8177_v27 = vpop.trf.xlu0 }
 0x461   : > { %8746 = vst [vmem:[#allocation3_spill] sm:$0xff] %v8177_v27  ;;  %3888 = vmatprep.mubr.f32.mxu0 %v8177_v27 }
 0x464   : > { %v8180_v28 = vpop.trf.xlu0 }
 0x468   : > { %v8196_v37 = vpop.trf.xlu0 }
 0x46b   : > { %v8185_v30 = vpop.trf.xlu1 }
 0x46c   : > { %8747 = vst [vmem:[#allocation4_spill] sm:$0xff] %v8185_v30  ;;  %3889 = vmatmul.mubr.f32.vlgmr.msra.gmra.mxu0 %v8185_v30  ;;  %v5802_v47 = vpop.f32.mrf.mxu1 }
 0x46d   : > { %6011 = vmatpush3.msra.mxu0 %v3986_v48  ;;  %3893 = vmatprep.mubr.f32.mxu0 %v8180_v28 }
 0x46e   : > { %6012 = vmatprep.subr.mxu0 %v8741_v0  ;;  %v5803_v50 = vpop.f32.mrf.mxu1 }
 0x46f   : > { %6013 = vmatpush3.msra.mxu0 %v3985_v31  ;;  %v8198_v39 = vpop.trf.xlu1  ;;  %v5804_v10 = vadd.f32 %v5803_v50, %v5802_v47 }
 0x470   : > { %6014 = vmatprep.subr.mxu0 %v8741_v0  ;;  %3894 = vmatmul.mubr.f32.gmra.mxu0 %v8198_v39 }
 0x471   : > { %6015 = vmatpush3.msra.mxu0 %v3984_v33  ;;  %3898 = vmatprep.mubr.f32.mxu0 %v8196_v37 }
 0x472   : > { %4229 = vmatprep.subr.mxu0 %v7906_v29  ;;  %v5805_v52 = vpop.f32.mrf.mxu1 }
 0x473   : > { %v8204_v40 = vpop.trf.xlu1 }
 0x474   : > { %3899 = vmatmul.mubr.f32.gmra.mxu0 %v8204_v40  ;;  %v5806_v55 = vpop.f32.mrf.mxu1 }
 0x475   : > { %6016 = vmatprep.mubr.msk.f32.mxu0 %vm6085_vm8, %v8741_v0  ;;  %v5807_v22 = vadd.f32 %v5806_v55, %v5805_v52 }
 0x4a0   : > { %v8209_v41 = vpop.trf.xlu0 }
 0x4a1   : > { %8748 = vst [vmem:[#allocation5_spill] sm:$0xff] %v8209_v41  ;;  %6002 = vmatmul.mubr.f32.vlgmr.msra.gmra.mxu1 %v8209_v41 }
 0x4a2   : > { %4147 = vmatpush1.msra.mxu1 %v7734_v6  ;;  %6004 = vmatprep.mubr.msk.f32.mxu1 %vm6085_vm8, %v8741_v0 }
 0x4a3   : > { %4148 = vmatprep.subr.mxu1 %v7660_v35  ;;  %v5761_v35 = vpop.f32.mrf.mxu0 }
 0x4a4   : > { %4149 = vmatpush1.msra.mxu1 %v7711_v59  ;;  %v8217_v29 = vpop.trf.xlu0 }
 0x4a5   : > { %4150 = vmatprep.subr.mxu1 %v7634_v24  ;;  %6005 = vmatmul.mubr.f32.gmra.mxu1 %v8217_v29  ;;  %v5762_v59 = vpop.f32.mrf.mxu0 }
 0x4a6   : > { %4151 = vmatpush1.msra.mxu1 %v7680_v44  ;;  %6007 = vmatprep.mubr.msk.f32.mxu1 %vm6085_vm8, %v8741_v0  ;;  %v5763_v4 = vadd.f32 %v5762_v59, %v5761_v35 }
 0x4a7   : > { %4312 = vmatprep.subr.mxu1 %v8023_v36  ;;  %v5764_v42 = vpop.f32.mrf.mxu0  ;;  %v5808_v36 = vpop.f32.mrf.mxu1 }
 0x4a8   : > { %v8225_v6 = vpop.trf.xlu0  ;;  %v3571_v9 = vadd.f32 %v5763_v4, %v5699_v5 }
 0x4a9   : > { %6008 = vmatmul.mubr.f32.gmra.mxu1 %v8225_v6  ;;  %v5765_v45 = vpop.f32.mrf.mxu0  ;;  %v5809_v60 = vpop.f32.mrf.mxu1 }
 0x4aa   : > { %4184 = vmatprep.mubr.f32.mxu1 %v8741_v0  ;;  %v5766_v11 = vadd.f32 %v5765_v45, %v5764_v42  ;;  %v3651_v20 = vadd.f32 %v5804_v10, %v3571_v9  ;;  %v5810_v31 = vadd.f32 %v5809_v60, %v5808_v36 }
 0x4ab   : > { %v5767_v24 = vpop.f32.mrf.mxu0 }
 0x4ac   : > { %v3576_v21 = vadd.f32 %v5766_v11, %v5699_v5 }
 0x4ad   : > { %v5768_v49 = vpop.f32.mrf.mxu0 }
 0x4ae   : > { %v5769_v15 = vadd.f32 %v5768_v49, %v5767_v24  ;;  %v3656_v35 = vadd.f32 %v5807_v22, %v3576_v21 }
 0x4af   : > { %v5843_v44 = vpop.f32.mrf.mxu0 }
 0x4b0   : > { %v3581_v48 = vadd.f32 %v5769_v15, %v5699_v5 }
 0x4b1   : > { %v5844_v54 = vpop.f32.mrf.mxu0 }
 0x4b2   : > { %v5845_v23 = vadd.f32 %v5844_v54, %v5843_v44  ;;  %v3661_v4 = vadd.f32 %v5810_v31, %v3581_v48 }
 0x4b3   : > { %v5846_v57 = vpop.f32.mrf.mxu0 }
 0x4b4   : > { %v3731_v59 = vadd.f32 %v5845_v23, %v3651_v20 }
 0x4b5   : > { %v5847_v58 = vpop.f32.mrf.mxu0 }
 0x4b6   : > { %v5848_v41 = vadd.f32 %v5847_v58, %v5846_v57 }
 0x4b7   : > { %v5849_v61 = vpop.f32.mrf.mxu0 }
 0x4b8   : > { %v3736_v45 = vadd.f32 %v5848_v41, %v3656_v35  ;;  %v8749_v41 = vmov 0.0  }
 0x4b9   : > { %v5850_v1 = vpop.f32.mrf.mxu0 }
 0x4ba   : > { %v5851_v49 = vadd.f32 %v5850_v1, %v5849_v61 }
 0x4bc   : > { %v3741_v36 = vadd.f32 %v5851_v49, %v3661_v4 }
 0x4ec   : > { %v5884_v63 = vpop.f32.mrf.mxu1 }
 0x4ee   : > { %v5885_v7 = vpop.f32.mrf.mxu1 }
 0x4ef   : > { %v5886_v0 = vadd.f32 %v5885_v7, %v5884_v63 }
 0x4f1   : > { %v3811_v42 = vadd.f32 %v5886_v0, %v3731_v59 }
 0x4f2   : > { %v5887_v12 = vpop.f32.mrf.mxu1 }
 0x4f4   : > { %v5888_v26 = vpop.f32.mrf.mxu1 }
 0x4f5   : > { %v5889_v24 = vadd.f32 %v5888_v26, %v5887_v12 }
 0x4f6   : > { %v5890_v30 = vpop.f32.mrf.mxu1 }
 0x4f7   : > { %v3816_v55 = vadd.f32 %v5889_v24, %v3736_v45 }
 0x4f8   : > { %v5891_v50 = vpop.f32.mrf.mxu1 }
 0x4f9   : > { %v5892_v60 = vadd.f32 %v5891_v50, %v5890_v30 }
 0x4fb   : > { %v3821_v58 = vadd.f32 %v5892_v60, %v3741_v36 }
 0x52c   : > { %v5925_v2 = vpop.f32.mrf.mxu0 }
 0x52e   : > { %v5926_v8 = vpop.f32.mrf.mxu0 }
 0x52f   : > { %v5927_v27 = vadd.f32 %v5926_v8, %v5925_v2 }
 0x530   : > { %v5928_v18 = vpop.f32.mrf.mxu0 }
 0x531   : > { %v3891_v52 = vadd.f32 %v5927_v27, %v3811_v42 }
 0x532   : > { %v5929_v33 = vpop.f32.mrf.mxu0 }
 0x533   : > { %v5930_v9 = vadd.f32 %v5929_v33, %v5928_v18 }
 0x534   : > { %v5931_v47 = vpop.f32.mrf.mxu0 }
 0x535   : > { %v3896_v57 = vadd.f32 %v5930_v9, %v3816_v55 }
 0x536   : > { %v5932_v44 = vpop.f32.mrf.mxu0 }
 0x537   : > { %v5933_v63 = vadd.f32 %v5932_v44, %v5931_v47 }
 0x539   : > { %v3901_v30 = vadd.f32 %v5933_v63, %v3821_v58 }
 0x561   : > { %v3970_v54 = vpop.f32.mrf.mxu1 }
 0x562   : > { %v3971_v5 = vadd.f32 %v3970_v54, %v3891_v52 }
 0x563   : > { %v6003_v10 = vpop.f32.mrf.mxu1 }
 0x564   : > { %6017 = vmatmul.mubr.msk.f32.vlgmr.msra.gmra.mxu0 %vm346_vm4, %v3971_v5 }
 0x565   : > { %4230 = vmatpush1.msra.mxu0 %v7915_v34  ;;  %v3975_v0 = vpop.f32.mrf.mxu1  ;;  %6019 = vmatprep.mubr.msk.f32.mxu0 %vm6085_vm8, %v8749_v41 }
 0x566   : > { %v3976_v61 = vadd.f32 %v3975_v0, %v3896_v57  ;;  %4231 = vmatprep.subr.mxu0 %v7873_v13 }
 0x567   : > { %4232 = vmatpush1.msra.mxu0 %v7885_v19  ;;  %v6006_v27 = vpop.f32.mrf.mxu1 }
 0x568   : > { %4233 = vmatprep.subr.mxu0 %v7719_v62  ;;  %6020 = vmatmul.mubr.msk.f32.gmra.mxu0 %vm346_vm4, %v3976_v61 }
 0x569   : > { %4234 = vmatpush1.msra.mxu0 %v7755_v17  ;;  %v3980_v1 = vpop.f32.mrf.mxu1  ;;  %6022 = vmatprep.mubr.msk.f32.mxu0 %vm6085_vm8, %v8749_v41 }
 0x56a   : > { %v3981_v34 = vadd.f32 %v3980_v1, %v3901_v30  ;;  %4395 = vmatprep.subr.mxu0 %v8118_v53 }
 0x56b   : > { %v6009_v2 = vpop.f32.mrf.mxu1 }
 0x56c   : > { %6023 = vmatmul.mubr.msk.f32.gmra.mxu0 %vm346_vm4, %v3981_v34 }
 0x56d   : > { %4267 = vmatprep.mubr.f32.mxu0 %v8749_v41 }
 0x624   : > { %v4062_v13 = vpop.f32.mrf.mxu0 }
 0x625   : > { %v4076_v17 = vsel %vm346_vm4, %v4062_v13, -inf }
 0x626   : > { %v6018_v19 = vpop.f32.mrf.mxu0 }
 0x628   : > { %v4067_v62 = vpop.f32.mrf.mxu0 }
 0x629   : > { %v4077_v7 = vsel %vm346_vm4, %v4067_v62, -inf }
 0x62a   : > { %v6021_v8 = vpop.f32.mrf.mxu0  ;;  %v4079_v11 = vmax.f32 %v4076_v17, %v4077_v7  ;;  %v8324_v17 = vld [vmem:[%s8738_s6] sm:$0xff] }
 0x62c   : > { %v4072_v12 = vpop.f32.mrf.mxu0 }
 0x62d   : > { %v4078_v15 = vsel %vm346_vm4, %v4072_v12, -inf }
 0x62e   : > { %v4080_v18 = vmax.f32 %v4079_v11, %v4078_v15  ;;  %v6024_v20 = vpop.f32.mrf.mxu0 }
 0x630   : > { %v4081_v53 = vrot.slane %v4080_v18, 4 }
 0x632   : > { %v4082_v21 = vmax.f32 %v4080_v18, %v4081_v53 }
 0x634   : > { %v4083_v22 = vrot.slane %v4082_v21, 2 }
 0x636   : > { %v4084_v23 = vmax.f32 %v4082_v21, %v4083_v22 }
 0x638   : > { %v4085_v26 = vrot.slane %v4084_v23, 1 }
 0x63a   : > { %v4086_v48 = vmax.f32 %v4084_v23, %v4085_v26 }
 0x63c   : > { %v4087_v31 = vsub.f32 %v4062_v13, %v4086_v48  ;;  %v4088_v33 = vsub.f32 %v4067_v62, %v4086_v48  ;;  %v4089_v35 = vsub.f32 %v4072_v12, %v4086_v48 }
 0x63e   : > { %v4090_v59 = vmul.f32 1.442695, %v4087_v31  ;;  %v4092_v4 = vmul.f32 1.442695, %v4088_v33  ;;  %v4094_v47 = vmul.f32 1.442695, %v4089_v35 }
 0x640   : > { %6066 = vpow2.f32 %v4090_v59 }
 0x641   : > { %6068 = vpow2.f32 %v4092_v4 }
 0x642   : > { %6070 = vpow2.f32 %v4094_v47 }
 0x64d   : > { %v6067_v42 = vpop.eup %6066 }
 0x64e   : > { %v6069_v45 = vpop.eup %6068  ;;  %v4096_v24 = vsel %vm346_vm4, %v6067_v42, 0.0 }
 0x64f   : > { %v6071_v49 = vpop.eup %6070  ;;  %v4097_v50 = vsel %vm346_vm4, %v6069_v45, 0.0 }
 0x650   : > { %v4098_v9 = vadd.f32 %v4097_v50, %v4096_v24  ;;  %v4099_v52 = vsel %vm346_vm4, %v6071_v49, 0.0 }
 0x652   : > { %v4100_v44 = vadd.f32 %v4099_v52, %v4098_v9 }
 0x654   : > { %v4101_v54 = vrot.slane %v4100_v44, 4 }
 0x656   : > { %v4102_v55 = vadd.f32 %v4101_v54, %v4100_v44 }
 0x658   : > { %v4103_v36 = vrot.slane %v4102_v55, 2 }
 0x65a   : > { %v4104_v60 = vadd.f32 %v4103_v36, %v4102_v55 }
 0x65c   : > { %v4105_v5 = vrot.slane %v4104_v60, 1 }
 0x65e   : > { %v4106_v10 = vadd.f32 %v4105_v5, %v4104_v60 }
 0x660   : > { %6072 = vrcp.f32 %v4106_v10 }
 0x66d   : > { %v6073_v63 = vpop.eup %6072 }
 0x66e   : > { %v4108_v57 = vmul.f32 %v6073_v63, %v6067_v42  ;;  %v4109_v0 = vmul.f32 %v6073_v63, %v6069_v45 }
 0x670   : > { %5703 = vmatmul.mubr.msk.f32.vlgmr.msra.gmra.mxu1 %vm346_vm4, %v4108_v57  ;;  %5706 = vmatmul.mubr.msk.f32.vlgmr.msra.gmra.mxu0 %vm346_vm4, %v4108_v57 }
 0x671   : > { %4313 = vmatpush1.msra.mxu1 %v8028_v38  ;;  %4396 = vmatpush1.msra.mxu0 %v8126_v56  ;;  %v4649_v38 = vld [vmem:[%s8739_s7] sm:$0xff] }
 0x672   : > { %4314 = vmatprep.subr.mxu1 %v7992_v16  ;;  %4397 = vmatprep.subr.mxu0 %v8099_v43  ;;  %v4110_v16 = vmul.f32 %v6073_v63, %v6071_v49 }
 0x673   : > { %4315 = vmatpush1.msra.mxu1 %v8005_v25  ;;  %4398 = vmatpush1.msra.mxu0 %v8112_v51  ;;  %v8752_v25 = vld [vmem:[#allocation5_spill] sm:$0xff] }
 0x674   : > { %4190 = vmatprep.mubr.f32.mxu1 %v8749_v41  ;;  %4273 = vmatprep.mubr.f32.mxu0 %v8749_v41 }
 0x675   : > { %4316 = vmatprep.subr.mxu1 %v7978_v3  ;;  %4399 = vmatprep.subr.mxu0 %v8093_v32  ;;  %v8750_v3 = vld [vmem:[#allocation3_spill] sm:$0xff]  ;;  %v6086_v32 = vmov 0  }
 0x676   : > { %5704 = vmatmul.mubr.msk.f32.gmra.mxu1 %vm346_vm4, %v4109_v0  ;;  %5707 = vmatmul.mubr.msk.f32.gmra.mxu0 %vm346_vm4, %v4109_v0 }
 0x677   : > { %4317 = vmatpush1.msra.mxu1 %v7987_v14  ;;  %4400 = vmatpush1.msra.mxu0 %v8101_v46  ;;  %v8751_v14 = vld [vmem:[#allocation4_spill] sm:$0xff] }
 0x678   : > { %4478 = vmatprep.subr.mxu1 %v8196_v37  ;;  %4196 = vmatprep.mubr.f32.mxu1 %v8749_v41 }
 0x679   : > { %4279 = vmatprep.mubr.f32.mxu0 %v8749_v41  ;;  %6025 = vmatprep.subr.mxu0 %v8749_v41 }
 0x67a   : > { %5705 = vmatmul.mubr.msk.f32.gmra.mxu1 %vm346_vm4, %v4110_v16  ;;  %5708 = vmatmul.mubr.msk.f32.gmra.mxu0 %vm346_vm4, %v4110_v16 }
 0x67b   : > { %4350 = vmatprep.mubr.f32.mxu1 %v8749_v41  ;;  %4433 = vmatprep.mubr.f32.mxu0 %v8749_v41 }
 0x67c   : > { %6064 = vset.pattern.permute.xlu1 %v6086_v32 }
 0x67d   : > { %4652 = vperm.xlu1 %6064, %v4649_v38  }
 0x67e   : > { %5709 = vmatmul.mubr.msk.f32.vlgmr.msra.gmra.mxu1 %vm346_vm4, %v4108_v57  ;;  %5712 = vmatmul.mubr.msk.f32.vlgmr.msra.gmra.mxu0 %vm346_vm4, %v4108_v57 }
 0x67f   : > { %4479 = vmatpush1.msra.mxu1 %v8204_v40  ;;  %6026 = vmatpush3.msra.mxu0 %v8225_v6 }
 0x680   : > { %4480 = vmatprep.subr.mxu1 %v8180_v28  ;;  %6027 = vmatprep.subr.mxu0 %v8749_v41 }
 0x681   : > { %4481 = vmatpush1.msra.mxu1 %v8198_v39  ;;  %6028 = vmatpush3.msra.mxu0 %v8217_v29 }
 0x682   : > { %4356 = vmatprep.mubr.f32.mxu1 %v8749_v41  ;;  %4439 = vmatprep.mubr.f32.mxu0 %v8749_v41 }
 0x683   : > { %4482 = vmatprep.subr.mxu1 %v8750_v3  ;;  %6029 = vmatprep.subr.mxu0 %v8749_v41 }
 0x684   : > { %5710 = vmatmul.mubr.msk.f32.gmra.mxu1 %vm346_vm4, %v4109_v0  ;;  %5713 = vmatmul.mubr.msk.f32.gmra.mxu0 %vm346_vm4, %v4109_v0 }
 0x685   : > { %4483 = vmatpush1.msra.mxu1 %v8751_v14  ;;  %6030 = vmatpush3.msra.mxu0 %v8752_v25 }
 0x686   : > { %4362 = vmatprep.mubr.f32.mxu1 %v8749_v41  ;;  %4445 = vmatprep.mubr.f32.mxu0 %v8749_v41 }
 0x688   : > { %5711 = vmatmul.mubr.msk.f32.gmra.mxu1 %vm346_vm4, %v4110_v16  ;;  %5714 = vmatmul.mubr.msk.f32.gmra.mxu0 %vm346_vm4, %v4110_v16 }
 0x689   : > { %4516 = vmatprep.mubr.f32.mxu1 %v8749_v41  ;;  %6031 = vmatprep.mubr.msk.f32.mxu0 %vm6085_vm8, %v8749_v41 }
 0x68c   : > { %5715 = vmatmul.mubr.msk.f32.vlgmr.msra.gmra.mxu1 %vm346_vm4, %v4108_v57  ;;  %6032 = vmatmul.mubr.msk.f32.vlgmr.msra.gmra.mxu0 %vm346_vm4, %v4108_v57 }
 0x68d   : > { %4522 = vmatprep.mubr.f32.mxu1 %v8749_v41  ;;  %6034 = vmatprep.mubr.msk.f32.mxu0 %vm6085_vm8, %v8749_v41 }
 0x690   : > { %5716 = vmatmul.mubr.msk.f32.gmra.mxu1 %vm346_vm4, %v4109_v0  ;;  %6035 = vmatmul.mubr.msk.f32.gmra.mxu0 %vm346_vm4, %v4109_v0 }
 0x691   : > { %4528 = vmatprep.mubr.f32.mxu1 %v8749_v41  ;;  %6037 = vmatprep.mubr.msk.f32.mxu0 %vm6085_vm8, %v8749_v41 }
 0x694   : > { %5717 = vmatmul.mubr.msk.f32.gmra.mxu1 %vm346_vm4, %v4110_v16  ;;  %6038 = vmatmul.mubr.msk.f32.gmra.mxu0 %vm346_vm4, %v4110_v16 }
 0x695   : > { %4722 = vmatprep.mubr.f32.mxu1 %v8749_v41  ;;  %4864 = vmatprep.mubr.f32.mxu0 %v8749_v41 }
 0x730   : > { %v4186_v43 = vpop.f32.mrf.mxu1  ;;  %v4269_v46 = vpop.f32.mrf.mxu0 }
 0x731   : > { %v4615_v8 = vmax.f32 %v4186_v43, 0.0  ;;  %v4617_v26 = vmax.f32 %v4269_v46, 0.0 }
 0x732   : > { %v4188_v51 = vpop.f32.mrf.mxu1  ;;  %v4271_v56 = vpop.f32.mrf.mxu0 }
 0x733   : > { %v4616_v7 = vmax.f32 %v4188_v51, 0.0  ;;  %v4618_v23 = vmax.f32 %v4271_v56, 0.0 }
 0x736   : > { %v4192_v28 = vpop.f32.mrf.mxu1  ;;  %v4275_v37 = vpop.f32.mrf.mxu0 }
 0x737   : > { %v4626_v13 = vmax.f32 %v4192_v28, 0.0  ;;  %v4628_v53 = vmax.f32 %v4275_v37, 0.0 }
 0x738   : > { %v4194_v39 = vpop.f32.mrf.mxu1  ;;  %v4277_v40 = vpop.f32.mrf.mxu0 }
 0x739   : > { %v4627_v2 = vmax.f32 %v4194_v39, 0.0  ;;  %v4629_v20 = vmax.f32 %v4277_v40, 0.0 }
 0x73a   : > { %v4198_v29 = vpop.f32.mrf.mxu1  ;;  %v4281_v6 = vpop.f32.mrf.mxu0 }
 0x73b   : > { %v4637_v30 = vmax.f32 %v4198_v29, 0.0  ;;  %v4639_v12 = vmax.f32 %v4281_v6, 0.0  ;;  %v8348_v29 = vpop.permute.xlu1 %4652 }
 0x73c   : > { %v4200_v58 = vpop.f32.mrf.mxu1  ;;  %v4283_v61 = vpop.f32.mrf.mxu0 }
 0x73d   : > { %v4638_v27 = vmax.f32 %v4200_v58, 0.0  ;;  %v4640_v11 = vmax.f32 %v4283_v61, 0.0 }
 0x73e   : > { %v8317_v1 = vpop.f32.mrf.mxu1  ;;  %v8319_v34 = vpop.f32.mrf.mxu0 }
 0x73f   : > { %4684 = vmatprep.subr.mxu1 %v4638_v27  ;;  %v4619_v60 = vmax.f32 %v8317_v1, 0.0  ;;  %v4621_v5 = vmax.f32 %v8319_v34, 0.0 }
 0x740   : > { %v4354_v19 = vpop.f32.mrf.mxu1  ;;  %v4437_v62 = vpop.f32.mrf.mxu0  ;;  %4685 = vmatpush1.msra.mxu1 %v4637_v30 }
 0x741   : > { %4686 = vmatprep.subr.mxu1 %v4627_v2  ;;  %v4620_v55 = vmax.f32 %v4354_v19, 0.0  ;;  %v4622_v36 = vmax.f32 %v4437_v62, 0.0 }
 0x742   : > { %4687 = vmatpush1.msra.mxu1 %v4626_v13 }
 0x743   : > { %4688 = vmatprep.subr.mxu1 %v4616_v7 }
 0x744   : > { %v4358_v15 = vpop.f32.mrf.mxu1  ;;  %v4441_v18 = vpop.f32.mrf.mxu0  ;;  %4689 = vmatpush1.msra.mxu1 %v4615_v8 }
 0x745   : > { %5721 = vmatmul.mubr.msk.f32.vlgmr.msra.gmra.mxu1 %vm346_vm4, %v8324_v17  ;;  %4755 = vmatprep.subr.mxu1 %v4640_v11  ;;  %v4630_v9 = vmax.f32 %v4358_v15, 0.0  ;;  %v4632_v52 = vmax.f32 %v4441_v18, 0.0 }
 0x746   : > { %v4360_v21 = vpop.f32.mrf.mxu1  ;;  %v4443_v22 = vpop.f32.mrf.mxu0  ;;  %4756 = vmatpush1.msra.mxu1 %v4639_v12  ;;  %4793 = vmatprep.mubr.f32.mxu1 %v8749_v41 }
 0x747   : > { %4757 = vmatprep.subr.mxu1 %v4629_v20  ;;  %v4631_v49 = vmax.f32 %v4360_v21, 0.0  ;;  %v4633_v50 = vmax.f32 %v4443_v22, 0.0 }
 0x748   : > { %v4364_v48 = vpop.f32.mrf.mxu1  ;;  %v4447_v31 = vpop.f32.mrf.mxu0  ;;  %4758 = vmatpush1.msra.mxu1 %v4628_v53 }
 0x749   : > { %4759 = vmatprep.subr.mxu1 %v4618_v23  ;;  %v4641_v47 = vmax.f32 %v4364_v48, 0.0  ;;  %v4643_v42 = vmax.f32 %v4447_v31, 0.0 }
 0x74a   : > { %v4366_v33 = vpop.f32.mrf.mxu1  ;;  %v4449_v35 = vpop.f32.mrf.mxu0  ;;  %4760 = vmatpush1.msra.mxu1 %v4617_v26 }
 0x74b   : > { %v4642_v59 = vmax.f32 %v4366_v33, 0.0  ;;  %v4644_v4 = vmax.f32 %v4449_v35, 0.0  ;;  %5722 = vmatmul.mubr.msk.f32.vlgmr.msra.gmra.mxu1 %vm346_vm4, %v8324_v17 }
 0x74c   : > { %v4518_v45 = vpop.f32.mrf.mxu1  ;;  %v4601_v24 = vpop.f32.mrf.mxu0  ;;  %4935 = vmatprep.mubr.f32.mxu1 %v8749_v41 }
 0x74d   : > { %4826 = vmatprep.subr.mxu0 %v4642_v59  ;;  %4897 = vmatprep.subr.mxu1 %v4644_v4  ;;  %v4625_v56 = vmax.f32 %v4601_v24, 0.0  ;;  %v4623_v40 = vmax.f32 %v4518_v45, 0.0 }
 0x74e   : > { %v4520_v44 = vpop.f32.mrf.mxu1  ;;  %v6033_v54 = vpop.f32.mrf.mxu0  ;;  %4827 = vmatpush1.msra.mxu0 %v4641_v47  ;;  %4898 = vmatpush1.msra.mxu1 %v4643_v42 }
 0x74f   : > { %4828 = vmatprep.subr.mxu0 %v4631_v49  ;;  %4899 = vmatprep.subr.mxu1 %v4633_v50  ;;  %v4624_v39 = vmax.f32 %v4520_v44, 0.0 }
 0x750   : > { %v4524_v10 = vpop.f32.mrf.mxu1  ;;  %v4606_v63 = vpop.f32.mrf.mxu0  ;;  %4829 = vmatpush1.msra.mxu0 %v4630_v9  ;;  %4900 = vmatpush1.msra.mxu1 %v4632_v52 }
 0x751   : > { %4830 = vmatprep.subr.mxu0 %v4620_v55  ;;  %4901 = vmatprep.subr.mxu1 %v4622_v36  ;;  %v4636_v43 = vmax.f32 %v4606_v63, 0.0  ;;  %v4634_v37 = vmax.f32 %v4524_v10, 0.0 }
 0x752   : > { %v4526_v57 = vpop.f32.mrf.mxu1  ;;  %v6036_v0 = vpop.f32.mrf.mxu0  ;;  %4831 = vmatpush1.msra.mxu0 %v4619_v60  ;;  %4902 = vmatpush1.msra.mxu1 %v4621_v5 }
 0x753   : > { %5723 = vmatmul.mubr.msk.f32.vlgmr.msra.gmra.mxu0 %vm346_vm4, %v8324_v17  ;;  %5724 = vmatmul.mubr.msk.f32.vlgmr.msra.gmra.mxu1 %vm346_vm4, %v8324_v17  ;;  %v4635_v28 = vmax.f32 %v4526_v57, 0.0 }
 0x754   : > { %v4530_v16 = vpop.f32.mrf.mxu1  ;;  %v4611_v3 = vpop.f32.mrf.mxu0  ;;  %6040 = vmatprep.subr.mxu1 %v8749_v41  ;;  %6046 = vmatprep.mubr.msk.f32.mxu1 %vm6085_vm8, %v8749_v41 }
 0x755   : > { %v4647_v14 = vmax.f32 %v4611_v3, 0.0  ;;  %5006 = vmatprep.mubr.f32.mxu0 %v8749_v41  ;;  %v4645_v51 = vmax.f32 %v4530_v16, 0.0 }
 0x756   : > { %v4532_v25 = vpop.f32.mrf.mxu1  ;;  %v6039_v38 = vpop.f32.mrf.mxu0 }
 0x757   : > { %v4646_v46 = vmax.f32 %v4532_v25, 0.0  ;;  %6041 = vmatpush3.msra.mxu1 %v4647_v14 }
 0x758   : > { %6042 = vmatprep.subr.mxu1 %v8749_v41 }
 0x759   : > { %4968 = vmatprep.subr.mxu0 %v4646_v46  ;;  %6043 = vmatpush3.msra.mxu1 %v4636_v43 }
 0x75a   : > { %4969 = vmatpush1.msra.mxu0 %v4645_v51  ;;  %6044 = vmatprep.subr.mxu1 %v8749_v41 }
 0x75b   : > { %4970 = vmatprep.subr.mxu0 %v4635_v28  ;;  %6045 = vmatpush3.msra.mxu1 %v4625_v56 }
 0x75c   : > { %4971 = vmatpush1.msra.mxu0 %v4634_v37  ;;  %6047 = vmatmul.mubr.msk.f32.vlgmr.msra.gmra.mxu1 %vm346_vm4, %v8324_v17 }
 0x75d   : > { %4972 = vmatprep.subr.mxu0 %v4624_v39 }
 0x75e   : > { %4973 = vmatpush1.msra.mxu0 %v4623_v40 }
 0x75f   : > { %5725 = vmatmul.mubr.msk.f32.vlgmr.msra.gmra.mxu0 %vm346_vm4, %v8324_v17 }
 0x805   : > { %v4724_v6 = vpop.f32.mrf.mxu1 }
 0x806   : > { %v4725_v58 = vadd.f32 %v4724_v6, %v8348_v29 }
 0x807   : > { %v4726_v61 = vpop.f32.mrf.mxu1 }
 0x808   : > { %v4727_v41 = vadd.f32 %v4726_v61, %v8348_v29  ;;  %5083 = vxpose.xlu1.b32.start.end [1/1] (short) %v4725_v58, 128 }
 0x80a   : > { %5115 = vxpose.xlu0.b32.start.end [1/1] (short) %v4727_v41, 128 }
 0x80b   : > { %v4795_v27 = vpop.f32.mrf.mxu1 }
 0x80c   : > { %v4796_v62 = vadd.f32 %v4795_v27, %v8348_v29 }
 0x80d   : > { %v4797_v30 = vpop.f32.mrf.mxu1 }
 0x80e   : > { %v4798_v19 = vadd.f32 %v4797_v30, %v8348_v29 }
 0x813   : > { %v8352_v1 = vpop.f32.mrf.mxu1  ;;  %v4866_v7 = vpop.f32.mrf.mxu0 }
 0x814   : > { %v4867_v11 = vadd.f32 %v4866_v7, %v8348_v29  ;;  %v4938_v57 = vadd.f32 %v8352_v1, %v8348_v29 }
 0x815   : > { %v8354_v34 = vpop.f32.mrf.mxu1  ;;  %v4868_v8 = vpop.f32.mrf.mxu0 }
 0x816   : > { %v4869_v17 = vadd.f32 %v4868_v8, %v8348_v29  ;;  %v4940_v10 = vadd.f32 %v8354_v34, %v8348_v29 }
 0x81c   : > { %v8356_v2 = vpop.f32.mrf.mxu1 }
 0x81e   : > { %v6048_v13 = vpop.f32.mrf.mxu1 }
 0x81f   : > { %v5008_v8 = vpop.f32.mrf.mxu0 }
 0x845   : > { %5179 = vxpose.xlu1.b32.start.end [1/1] (short) %v4798_v19, 128 }
 0x847   : > { %5147 = vxpose.xlu0.b32.start.end [1/1] (short) %v4796_v62, 128 }
 0x882   : > { %5243 = vxpose.xlu1.b32.start.end [1/1] (short) %v4869_v17, 128 }
 0x884   : > { %5211 = vxpose.xlu0.b32.start.end [1/1] (short) %v4867_v11, 128  ;;  %v5099_v12 = vpop.trf.xlu1 }
 0x885   : > { %5435 = vst.msk [vmem:[%s8366_s26] sm:$0xff] %vm525_vm0, %v5099_v12  ;;  %v5010_v12 = vpop.f32.mrf.mxu0 }
 0x886   : > { %v5131_v15 = vpop.trf.xlu0 }
 0x887   : > { %5451 = vst.msk [vmem:[%s8366_s26 + $0x80] sm:$0xff] %vm525_vm0, %v5131_v15 }
 0x888   : > { %v5100_v18 = vpop.trf.xlu1 }
 0x889   : > { %5436 = vst.msk [vmem:[%s8366_s26 + $0x8] sm:$0xff] %vm525_vm0, %v5100_v18  ;;  %v5011_v18 = vadd.f32 %v5010_v12, %v8348_v29 }
 0x88a   : > { %v5132_v20 = vpop.trf.xlu0 }
 0x88b   : > { %5452 = vst.msk [vmem:[%s8366_s26 + $0x88] sm:$0xff] %vm525_vm0, %v5132_v20 }
 0x88c   : > { %v5101_v53 = vpop.trf.xlu1 }
 0x88d   : > { %5437 = vst.msk [vmem:[%s8366_s26 + $0x10] sm:$0xff] %vm525_vm0, %v5101_v53  ;;  %v5009_v53 = vadd.f32 %v5008_v8, %v8348_v29 }
 0x88e   : > { %v5133_v21 = vpop.trf.xlu0 }
 0x88f   : > { %5453 = vst.msk [vmem:[%s8366_s26 + $0x90] sm:$0xff] %vm525_vm0, %v5133_v21 }
 0x890   : > { %v5102_v22 = vpop.trf.xlu1 }
 0x891   : > { %5438 = vst.msk [vmem:[%s8366_s26 + $0x18] sm:$0xff] %vm525_vm0, %v5102_v22 }
 0x892   : > { %v5134_v23 = vpop.trf.xlu0 }
 0x893   : > { %5454 = vst.msk [vmem:[%s8366_s26 + $0x98] sm:$0xff] %vm525_vm0, %v5134_v23 }
 0x894   : > { %v5103_v26 = vpop.trf.xlu1 }
 0x895   : > { %5439 = vst.msk [vmem:[%s8366_s26 + $0x20] sm:$0xff] %vm525_vm0, %v5103_v26 }
 0x896   : > { %v5135_v48 = vpop.trf.xlu0 }
 0x897   : > { %5455 = vst.msk [vmem:[%s8366_s26 + $0xa0] sm:$0xff] %vm525_vm0, %v5135_v48 }
 0x898   : > { %v5104_v31 = vpop.trf.xlu1 }
 0x899   : > { %5440 = vst.msk [vmem:[%s8366_s26 + $0x28] sm:$0xff] %vm525_vm0, %v5104_v31 }
 0x89a   : > { %v5136_v33 = vpop.trf.xlu0 }
 0x89b   : > { %5456 = vst.msk [vmem:[%s8366_s26 + $0xa8] sm:$0xff] %vm525_vm0, %v5136_v33 }
 0x89c   : > { %v5105_v35 = vpop.trf.xlu1 }
 0x89d   : > { %5441 = vst.msk [vmem:[%s8366_s26 + $0x30] sm:$0xff] %vm525_vm0, %v5105_v35 }
 0x89e   : > { %v5137_v59 = vpop.trf.xlu0 }
 0x89f   : > { %5457 = vst.msk [vmem:[%s8366_s26 + $0xb0] sm:$0xff] %vm525_vm0, %v5137_v59 }
 0x8a0   : > { %v5106_v4 = vpop.trf.xlu1 }
 0x8a1   : > { %5442 = vst.msk [vmem:[%s8366_s26 + $0x38] sm:$0xff] %vm525_vm0, %v5106_v4 }
 0x8a2   : > { %v5138_v47 = vpop.trf.xlu0 }
 0x8a3   : > { %5458 = vst.msk [vmem:[%s8366_s26 + $0xb8] sm:$0xff] %vm525_vm0, %v5138_v47 }
 0x8a4   : > { %v5107_v42 = vpop.trf.xlu1 }
 0x8a5   : > { %5443 = vst.msk [vmem:[%s8366_s26 + $0x40] sm:$0xff] %vm525_vm0, %v5107_v42 }
 0x8a6   : > { %v5139_v45 = vpop.trf.xlu0 }
 0x8a7   : > { %5459 = vst.msk [vmem:[%s8366_s26 + $0xc0] sm:$0xff] %vm525_vm0, %v5139_v45 }
 0x8a8   : > { %v5108_v24 = vpop.trf.xlu1 }
 0x8a9   : > { %5444 = vst.msk [vmem:[%s8366_s26 + $0x48] sm:$0xff] %vm525_vm0, %v5108_v24 }
 0x8aa   : > { %v5140_v49 = vpop.trf.xlu0 }
 0x8ab   : > { %5460 = vst.msk [vmem:[%s8366_s26 + $0xc8] sm:$0xff] %vm525_vm0, %v5140_v49 }
 0x8ac   : > { %v5109_v50 = vpop.trf.xlu1 }
 0x8ad   : > { %5445 = vst.msk [vmem:[%s8366_s26 + $0x50] sm:$0xff] %vm525_vm0, %v5109_v50 }
 0x8ae   : > { %v5141_v9 = vpop.trf.xlu0 }
 0x8af   : > { %5461 = vst.msk [vmem:[%s8366_s26 + $0xd0] sm:$0xff] %vm525_vm0, %v5141_v9 }
 0x8b0   : > { %v5110_v52 = vpop.trf.xlu1 }
 0x8b1   : > { %5446 = vst.msk [vmem:[%s8366_s26 + $0x58] sm:$0xff] %vm525_vm0, %v5110_v52 }
 0x8b2   : > { %v5142_v44 = vpop.trf.xlu0 }
 0x8b3   : > { %5462 = vst.msk [vmem:[%s8366_s26 + $0xd8] sm:$0xff] %vm525_vm0, %v5142_v44 }
 0x8b4   : > { %v5111_v54 = vpop.trf.xlu1 }
 0x8b5   : > { %5447 = vst.msk [vmem:[%s8366_s26 + $0x60] sm:$0xff] %vm525_vm0, %v5111_v54 }
 0x8b6   : > { %v5143_v55 = vpop.trf.xlu0 }
 0x8b7   : > { %5463 = vst.msk [vmem:[%s8366_s26 + $0xe0] sm:$0xff] %vm525_vm0, %v5143_v55 }
 0x8b8   : > { %v5112_v36 = vpop.trf.xlu1 }
 0x8b9   : > { %5448 = vst.msk [vmem:[%s8366_s26 + $0x68] sm:$0xff] %vm525_vm0, %v5112_v36 }
 0x8ba   : > { %v5144_v60 = vpop.trf.xlu0 }
 0x8bb   : > { %5464 = vst.msk [vmem:[%s8366_s26 + $0xe8] sm:$0xff] %vm525_vm0, %v5144_v60 }
 0x8bc   : > { %v5113_v5 = vpop.trf.xlu1 }
 0x8bd   : > { %5449 = vst.msk [vmem:[%s8366_s26 + $0x70] sm:$0xff] %vm525_vm0, %v5113_v5 }
 0x8be   : > { %v5145_v63 = vpop.trf.xlu0 }
 0x8bf   : > { %5465 = vst.msk [vmem:[%s8366_s26 + $0xf0] sm:$0xff] %vm525_vm0, %v5145_v63  ;;  %5307 = vxpose.xlu1.b32.start.end [1/1] (short) %v4940_v10, 128 }
 0x8c0   : > { %v5114_v0 = vpop.trf.xlu1 }
 0x8c1   : > { %5450 = vst.msk [vmem:[%s8366_s26 + $0x78] sm:$0xff] %vm525_vm0, %v5114_v0  ;;  %5275 = vxpose.xlu0.b32.start.end [1/1] (short) %v4938_v57, 128 }
 0x8c2   : > { %v5146_v16 = vpop.trf.xlu0 }
 0x8c3   : > { %5466 = vst.msk [vmem:[%s8366_s26 + $0xf8] sm:$0xff] %vm525_vm0, %v5146_v16 }
 0x8c4   : > { %v5195_v3 = vpop.trf.xlu1 }
 0x8c5   : > { %5483 = vst.msk [vmem:[%s8366_s26 + $0x180] sm:$0xff] %vm525_vm0, %v5195_v3 }
 0x8c6   : > { %v5163_v14 = vpop.trf.xlu0 }
 0x8c7   : > { %5467 = vst.msk [vmem:[%s8366_s26 + $0x100] sm:$0xff] %vm525_vm0, %v5163_v14 }
 0x8c8   : > { %v5196_v25 = vpop.trf.xlu1 }
 0x8c9   : > { %5484 = vst.msk [vmem:[%s8366_s26 + $0x188] sm:$0xff] %vm525_vm0, %v5196_v25 }
 0x8ca   : > { %v5164_v38 = vpop.trf.xlu0 }
 0x8cb   : > { %5468 = vst.msk [vmem:[%s8366_s26 + $0x108] sm:$0xff] %vm525_vm0, %v5164_v38  ;;  %v5080_v38 = vadd.f32 %v8356_v2, %v8348_v29 }
 0x8cc   : > { %v5197_v43 = vpop.trf.xlu1 }
 0x8cd   : > { %5485 = vst.msk [vmem:[%s8366_s26 + $0x190] sm:$0xff] %vm525_vm0, %v5197_v43 }
 0x8ce   : > { %v5165_v46 = vpop.trf.xlu0 }
 0x8cf   : > { %5469 = vst.msk [vmem:[%s8366_s26 + $0x110] sm:$0xff] %vm525_vm0, %v5165_v46 }
 0x8d0   : > { %v5198_v51 = vpop.trf.xlu1 }
 0x8d1   : > { %5486 = vst.msk [vmem:[%s8366_s26 + $0x198] sm:$0xff] %vm525_vm0, %v5198_v51 }
 0x8d2   : > { %v5166_v56 = vpop.trf.xlu0 }
 0x8d3   : > { %5470 = vst.msk [vmem:[%s8366_s26 + $0x118] sm:$0xff] %vm525_vm0, %v5166_v56 }
 0x8d4   : > { %v5199_v28 = vpop.trf.xlu1 }
 0x8d5   : > { %5487 = vst.msk [vmem:[%s8366_s26 + $0x1a0] sm:$0xff] %vm525_vm0, %v5199_v28 }
 0x8d6   : > { %v5167_v37 = vpop.trf.xlu0 }
 0x8d7   : > { %5471 = vst.msk [vmem:[%s8366_s26 + $0x120] sm:$0xff] %vm525_vm0, %v5167_v37 }
 0x8d8   : > { %v5200_v39 = vpop.trf.xlu1 }
 0x8d9   : > { %5488 = vst.msk [vmem:[%s8366_s26 + $0x1a8] sm:$0xff] %vm525_vm0, %v5200_v39 }
 0x8da   : > { %v5168_v40 = vpop.trf.xlu0 }
 0x8db   : > { %5472 = vst.msk [vmem:[%s8366_s26 + $0x128] sm:$0xff] %vm525_vm0, %v5168_v40 }
 0x8dc   : > { %v5201_v6 = vpop.trf.xlu1 }
 0x8dd   : > { %5489 = vst.msk [vmem:[%s8366_s26 + $0x1b0] sm:$0xff] %vm525_vm0, %v5201_v6 }
 0x8de   : > { %v5169_v58 = vpop.trf.xlu0 }
 0x8df   : > { %5473 = vst.msk [vmem:[%s8366_s26 + $0x130] sm:$0xff] %vm525_vm0, %v5169_v58 }
 0x8e0   : > { %v5202_v61 = vpop.trf.xlu1 }
 0x8e1   : > { %5490 = vst.msk [vmem:[%s8366_s26 + $0x1b8] sm:$0xff] %vm525_vm0, %v5202_v61 }
 0x8e2   : > { %v5170_v41 = vpop.trf.xlu0 }
 0x8e3   : > { %5474 = vst.msk [vmem:[%s8366_s26 + $0x138] sm:$0xff] %vm525_vm0, %v5170_v41 }
 0x8e4   : > { %v5203_v27 = vpop.trf.xlu1 }
 0x8e5   : > { %5491 = vst.msk [vmem:[%s8366_s26 + $0x1c0] sm:$0xff] %vm525_vm0, %v5203_v27 }
 0x8e6   : > { %v5171_v30 = vpop.trf.xlu0 }
 0x8e7   : > { %5475 = vst.msk [vmem:[%s8366_s26 + $0x140] sm:$0xff] %vm525_vm0, %v5171_v30 }
 0x8e8   : > { %v5204_v1 = vpop.trf.xlu1 }
 0x8e9   : > { %5492 = vst.msk [vmem:[%s8366_s26 + $0x1c8] sm:$0xff] %vm525_vm0, %v5204_v1 }
 0x8ea   : > { %v5172_v34 = vpop.trf.xlu0 }
 0x8eb   : > { %5476 = vst.msk [vmem:[%s8366_s26 + $0x148] sm:$0xff] %vm525_vm0, %v5172_v34 }
 0x8ec   : > { %v5205_v13 = vpop.trf.xlu1 }
 0x8ed   : > { %5493 = vst.msk [vmem:[%s8366_s26 + $0x1d0] sm:$0xff] %vm525_vm0, %v5205_v13 }
 0x8ee   : > { %v5173_v19 = vpop.trf.xlu0 }
 0x8ef   : > { %5477 = vst.msk [vmem:[%s8366_s26 + $0x150] sm:$0xff] %vm525_vm0, %v5173_v19 }
 0x8f0   : > { %v5206_v62 = vpop.trf.xlu1 }
 0x8f1   : > { %5494 = vst.msk [vmem:[%s8366_s26 + $0x1d8] sm:$0xff] %vm525_vm0, %v5206_v62 }
 0x8f2   : > { %v5174_v7 = vpop.trf.xlu0 }
 0x8f3   : > { %5478 = vst.msk [vmem:[%s8366_s26 + $0x158] sm:$0xff] %vm525_vm0, %v5174_v7 }
 0x8f4   : > { %v5207_v17 = vpop.trf.xlu1 }
 0x8f5   : > { %5495 = vst.msk [vmem:[%s8366_s26 + $0x1e0] sm:$0xff] %vm525_vm0, %v5207_v17 }
 0x8f6   : > { %v5175_v11 = vpop.trf.xlu0 }
 0x8f7   : > { %5479 = vst.msk [vmem:[%s8366_s26 + $0x160] sm:$0xff] %vm525_vm0, %v5175_v11 }
 0x8f8   : > { %v5208_v15 = vpop.trf.xlu1 }
 0x8f9   : > { %5496 = vst.msk [vmem:[%s8366_s26 + $0x1e8] sm:$0xff] %vm525_vm0, %v5208_v15 }
 0x8fa   : > { %v5176_v20 = vpop.trf.xlu0 }
 0x8fb   : > { %5480 = vst.msk [vmem:[%s8366_s26 + $0x168] sm:$0xff] %vm525_vm0, %v5176_v20 }
 0x8fc   : > { %v5209_v21 = vpop.trf.xlu1  ;;  %5371 = vxpose.xlu1.b32.start.end [1/1] (short) %v5011_v18, 128 }
 0x8fd   : > { %5497 = vst.msk [vmem:[%s8366_s26 + $0x1f0] sm:$0xff] %vm525_vm0, %v5209_v21 }
 0x8fe   : > { %v5177_v22 = vpop.trf.xlu0  ;;  %5339 = vxpose.xlu0.b32.start.end [1/1] (short) %v5009_v53, 128 }
 0x8ff   : > { %5481 = vst.msk [vmem:[%s8366_s26 + $0x170] sm:$0xff] %vm525_vm0, %v5177_v22 }
 0x900   : > { %v5210_v23 = vpop.trf.xlu1 }
 0x901   : > { %5498 = vst.msk [vmem:[%s8366_s26 + $0x1f8] sm:$0xff] %vm525_vm0, %v5210_v23 }
 0x902   : > { %v5178_v26 = vpop.trf.xlu0 }
 0x903   : > { %5482 = vst.msk [vmem:[%s8366_s26 + $0x178] sm:$0xff] %vm525_vm0, %v5178_v26 }
 0x904   : > { %v5259_v48 = vpop.trf.xlu1 }
 0x905   : > { %5515 = vst.msk [vmem:[%s8366_s26 + $0x280] sm:$0xff] %vm525_vm0, %v5259_v48 }
 0x906   : > { %v5227_v31 = vpop.trf.xlu0 }
 0x907   : > { %5499 = vst.msk [vmem:[%s8366_s26 + $0x200] sm:$0xff] %vm525_vm0, %v5227_v31 }
 0x908   : > { %v5260_v33 = vpop.trf.xlu1 }
 0x909   : > { %5516 = vst.msk [vmem:[%s8366_s26 + $0x288] sm:$0xff] %vm525_vm0, %v5260_v33 }
 0x90a   : > { %v5228_v35 = vpop.trf.xlu0 }
 0x90b   : > { %5500 = vst.msk [vmem:[%s8366_s26 + $0x208] sm:$0xff] %vm525_vm0, %v5228_v35 }
 0x90c   : > { %v5261_v59 = vpop.trf.xlu1 }
 0x90d   : > { %5517 = vst.msk [vmem:[%s8366_s26 + $0x290] sm:$0xff] %vm525_vm0, %v5261_v59 }
 0x90e   : > { %v5229_v4 = vpop.trf.xlu0 }
 0x90f   : > { %5501 = vst.msk [vmem:[%s8366_s26 + $0x210] sm:$0xff] %vm525_vm0, %v5229_v4 }
 0x910   : > { %v5262_v47 = vpop.trf.xlu1 }
 0x911   : > { %5518 = vst.msk [vmem:[%s8366_s26 + $0x298] sm:$0xff] %vm525_vm0, %v5262_v47 }
 0x912   : > { %v5230_v42 = vpop.trf.xlu0 }
 0x913   : > { %5502 = vst.msk [vmem:[%s8366_s26 + $0x218] sm:$0xff] %vm525_vm0, %v5230_v42 }
 0x914   : > { %v5263_v45 = vpop.trf.xlu1 }
 0x915   : > { %5519 = vst.msk [vmem:[%s8366_s26 + $0x2a0] sm:$0xff] %vm525_vm0, %v5263_v45 }
 0x916   : > { %v5231_v24 = vpop.trf.xlu0 }
 0x917   : > { %5503 = vst.msk [vmem:[%s8366_s26 + $0x220] sm:$0xff] %vm525_vm0, %v5231_v24 }
 0x918   : > { %v5264_v49 = vpop.trf.xlu1 }
 0x919   : > { %5520 = vst.msk [vmem:[%s8366_s26 + $0x2a8] sm:$0xff] %vm525_vm0, %v5264_v49 }
 0x91a   : > { %v5232_v50 = vpop.trf.xlu0 }
 0x91b   : > { %5504 = vst.msk [vmem:[%s8366_s26 + $0x228] sm:$0xff] %vm525_vm0, %v5232_v50 }
 0x91c   : > { %v5265_v9 = vpop.trf.xlu1 }
 0x91d   : > { %5521 = vst.msk [vmem:[%s8366_s26 + $0x2b0] sm:$0xff] %vm525_vm0, %v5265_v9 }
 0x91e   : > { %v5233_v52 = vpop.trf.xlu0 }
 0x91f   : > { %5505 = vst.msk [vmem:[%s8366_s26 + $0x230] sm:$0xff] %vm525_vm0, %v5233_v52 }
 0x920   : > { %v5266_v44 = vpop.trf.xlu1 }
 0x921   : > { %5522 = vst.msk [vmem:[%s8366_s26 + $0x2b8] sm:$0xff] %vm525_vm0, %v5266_v44 }
 0x922   : > { %v5234_v54 = vpop.trf.xlu0 }
 0x923   : > { %5506 = vst.msk [vmem:[%s8366_s26 + $0x238] sm:$0xff] %vm525_vm0, %v5234_v54 }
 0x924   : > { %v5267_v55 = vpop.trf.xlu1 }
 0x925   : > { %5523 = vst.msk [vmem:[%s8366_s26 + $0x2c0] sm:$0xff] %vm525_vm0, %v5267_v55 }
 0x926   : > { %v5235_v36 = vpop.trf.xlu0 }
 0x927   : > { %5507 = vst.msk [vmem:[%s8366_s26 + $0x240] sm:$0xff] %vm525_vm0, %v5235_v36 }
 0x928   : > { %v5268_v60 = vpop.trf.xlu1 }
 0x929   : > { %5524 = vst.msk [vmem:[%s8366_s26 + $0x2c8] sm:$0xff] %vm525_vm0, %v5268_v60 }
 0x92a   : > { %v5236_v5 = vpop.trf.xlu0 }
 0x92b   : > { %5508 = vst.msk [vmem:[%s8366_s26 + $0x248] sm:$0xff] %vm525_vm0, %v5236_v5 }
 0x92c   : > { %v5269_v10 = vpop.trf.xlu1 }
 0x92d   : > { %5525 = vst.msk [vmem:[%s8366_s26 + $0x2d0] sm:$0xff] %vm525_vm0, %v5269_v10 }
 0x92e   : > { %v5237_v63 = vpop.trf.xlu0 }
 0x92f   : > { %5509 = vst.msk [vmem:[%s8366_s26 + $0x250] sm:$0xff] %vm525_vm0, %v5237_v63 }
 0x930   : > { %v5270_v57 = vpop.trf.xlu1 }
 0x931   : > { %5526 = vst.msk [vmem:[%s8366_s26 + $0x2d8] sm:$0xff] %vm525_vm0, %v5270_v57 }
 0x932   : > { %v5238_v0 = vpop.trf.xlu0 }
 0x933   : > { %5510 = vst.msk [vmem:[%s8366_s26 + $0x258] sm:$0xff] %vm525_vm0, %v5238_v0 }
 0x934   : > { %v5271_v16 = vpop.trf.xlu1 }
 0x935   : > { %5527 = vst.msk [vmem:[%s8366_s26 + $0x2e0] sm:$0xff] %vm525_vm0, %v5271_v16 }
 0x936   : > { %v5239_v3 = vpop.trf.xlu0 }
 0x937   : > { %5511 = vst.msk [vmem:[%s8366_s26 + $0x260] sm:$0xff] %vm525_vm0, %v5239_v3 }
 0x938   : > { %v5272_v14 = vpop.trf.xlu1 }
 0x939   : > { %5528 = vst.msk [vmem:[%s8366_s26 + $0x2e8] sm:$0xff] %vm525_vm0, %v5272_v14 }
 0x93a   : > { %v5240_v25 = vpop.trf.xlu0 }
 0x93b   : > { %5512 = vst.msk [vmem:[%s8366_s26 + $0x268] sm:$0xff] %vm525_vm0, %v5240_v25 }
 0x93c   : > { %v5273_v43 = vpop.trf.xlu1 }
 0x93d   : > { %5529 = vst.msk [vmem:[%s8366_s26 + $0x2f0] sm:$0xff] %vm525_vm0, %v5273_v43 }
 0x93e   : > { %v5241_v46 = vpop.trf.xlu0  ;;  %5403 = vxpose.xlu0.b32.start.end [1/1] (short) %v5080_v38, 128 }
 0x93f   : > { %5513 = vst.msk [vmem:[%s8366_s26 + $0x270] sm:$0xff] %vm525_vm0, %v5241_v46 }
 0x940   : > { %v5274_v51 = vpop.trf.xlu1 }
 0x941   : > { %5530 = vst.msk [vmem:[%s8366_s26 + $0x2f8] sm:$0xff] %vm525_vm0, %v5274_v51 }
 0x942   : > { %v5242_v56 = vpop.trf.xlu0 }
 0x943   : > { %5514 = vst.msk [vmem:[%s8366_s26 + $0x278] sm:$0xff] %vm525_vm0, %v5242_v56 }
 0x944   : > { %v5323_v28 = vpop.trf.xlu1 }
 0x945   : > { %5547 = vst.msk [vmem:[%s8366_s26 + $0x380] sm:$0xff] %vm525_vm0, %v5323_v28 }
 0x946   : > { %v5291_v29 = vpop.trf.xlu0 }
 0x947   : > { %5531 = vst.msk [vmem:[%s8366_s26 + $0x300] sm:$0xff] %vm525_vm0, %v5291_v29 }
 0x948   : > { %v5324_v2 = vpop.trf.xlu1 }
 0x949   : > { %5548 = vst.msk [vmem:[%s8366_s26 + $0x388] sm:$0xff] %vm525_vm0, %v5324_v2 }
 0x94a   : > { %v5292_v37 = vpop.trf.xlu0 }
 0x94b   : > { %5532 = vst.msk [vmem:[%s8366_s26 + $0x308] sm:$0xff] %vm525_vm0, %v5292_v37 }
 0x94c   : > { %v5325_v39 = vpop.trf.xlu1 }
 0x94d   : > { %5549 = vst.msk [vmem:[%s8366_s26 + $0x390] sm:$0xff] %vm525_vm0, %v5325_v39 }
 0x94e   : > { %v5293_v40 = vpop.trf.xlu0 }
 0x94f   : > { %5533 = vst.msk [vmem:[%s8366_s26 + $0x310] sm:$0xff] %vm525_vm0, %v5293_v40 }
 0x950   : > { %v5326_v6 = vpop.trf.xlu1 }
 0x951   : > { %5550 = vst.msk [vmem:[%s8366_s26 + $0x398] sm:$0xff] %vm525_vm0, %v5326_v6 }
 0x952   : > { %v5294_v58 = vpop.trf.xlu0 }
 0x953   : > { %5534 = vst.msk [vmem:[%s8366_s26 + $0x318] sm:$0xff] %vm525_vm0, %v5294_v58 }
 0x954   : > { %v5327_v61 = vpop.trf.xlu1 }
 0x955   : > { %5551 = vst.msk [vmem:[%s8366_s26 + $0x3a0] sm:$0xff] %vm525_vm0, %v5327_v61 }
 0x956   : > { %v5295_v41 = vpop.trf.xlu0 }
 0x957   : > { %5535 = vst.msk [vmem:[%s8366_s26 + $0x320] sm:$0xff] %vm525_vm0, %v5295_v41 }
 0x958   : > { %v5328_v27 = vpop.trf.xlu1 }
 0x959   : > { %5552 = vst.msk [vmem:[%s8366_s26 + $0x3a8] sm:$0xff] %vm525_vm0, %v5328_v27 }
 0x95a   : > { %v5296_v30 = vpop.trf.xlu0 }
 0x95b   : > { %5536 = vst.msk [vmem:[%s8366_s26 + $0x328] sm:$0xff] %vm525_vm0, %v5296_v30 }
 0x95c   : > { %v5329_v1 = vpop.trf.xlu1 }
 0x95d   : > { %5553 = vst.msk [vmem:[%s8366_s26 + $0x3b0] sm:$0xff] %vm525_vm0, %v5329_v1 }
 0x95e   : > { %v5297_v34 = vpop.trf.xlu0 }
 0x95f   : > { %5537 = vst.msk [vmem:[%s8366_s26 + $0x330] sm:$0xff] %vm525_vm0, %v5297_v34 }
 0x960   : > { %v5330_v13 = vpop.trf.xlu1 }
 0x961   : > { %5554 = vst.msk [vmem:[%s8366_s26 + $0x3b8] sm:$0xff] %vm525_vm0, %v5330_v13 }
 0x962   : > { %v5298_v19 = vpop.trf.xlu0 }
 0x963   : > { %5538 = vst.msk [vmem:[%s8366_s26 + $0x338] sm:$0xff] %vm525_vm0, %v5298_v19 }
 0x964   : > { %v5331_v62 = vpop.trf.xlu1 }
 0x965   : > { %5555 = vst.msk [vmem:[%s8366_s26 + $0x3c0] sm:$0xff] %vm525_vm0, %v5331_v62 }
 0x966   : > { %v5299_v7 = vpop.trf.xlu0 }
 0x967   : > { %5539 = vst.msk [vmem:[%s8366_s26 + $0x340] sm:$0xff] %vm525_vm0, %v5299_v7  ;;  %6065 = vset.pattern.permute.xlu0 %v6086_v32 }
 0x968   : > { %v5332_v8 = vpop.trf.xlu1 }
 0x969   : > { %5556 = vst.msk [vmem:[%s8366_s26 + $0x3c8] sm:$0xff] %vm525_vm0, %v5332_v8 }
 0x96a   : > { %v5300_v17 = vpop.trf.xlu0 }
 0x96b   : > { %5540 = vst.msk [vmem:[%s8366_s26 + $0x348] sm:$0xff] %vm525_vm0, %v5300_v17 }
 0x96c   : > { %v5333_v11 = vpop.trf.xlu1 }
 0x96d   : > { %5557 = vst.msk [vmem:[%s8366_s26 + $0x3d0] sm:$0xff] %vm525_vm0, %v5333_v11 }
 0x96e   : > { %v5301_v12 = vpop.trf.xlu0 }
 0x96f   : > { %5541 = vst.msk [vmem:[%s8366_s26 + $0x350] sm:$0xff] %vm525_vm0, %v5301_v12 }
 0x970   : > { %v5334_v15 = vpop.trf.xlu1 }
 0x971   : > { %5558 = vst.msk [vmem:[%s8366_s26 + $0x3d8] sm:$0xff] %vm525_vm0, %v5334_v15 }
 0x972   : > { %v5302_v32 = vpop.trf.xlu0 }
 0x973   : > { %5542 = vst.msk [vmem:[%s8366_s26 + $0x358] sm:$0xff] %vm525_vm0, %v5302_v32 }
 0x974   : > { %v5335_v18 = vpop.trf.xlu1 }
 0x975   : > { %5559 = vst.msk [vmem:[%s8366_s26 + $0x3e0] sm:$0xff] %vm525_vm0, %v5335_v18 }
 0x976   : > { %v5303_v20 = vpop.trf.xlu0 }
 0x977   : > { %5543 = vst.msk [vmem:[%s8366_s26 + $0x360] sm:$0xff] %vm525_vm0, %v5303_v20 }
 0x978   : > { %v5336_v53 = vpop.trf.xlu1 }
 0x979   : > { %5560 = vst.msk [vmem:[%s8366_s26 + $0x3e8] sm:$0xff] %vm525_vm0, %v5336_v53 }
 0x97a   : > { %v5304_v21 = vpop.trf.xlu0 }
 0x97b   : > { %5544 = vst.msk [vmem:[%s8366_s26 + $0x368] sm:$0xff] %vm525_vm0, %v5304_v21 }
 0x97c   : > { %v5337_v22 = vpop.trf.xlu1 }
 0x97d   : > { %5561 = vst.msk [vmem:[%s8366_s26 + $0x3f0] sm:$0xff] %vm525_vm0, %v5337_v22 }
 0x97e   : > { %v5305_v23 = vpop.trf.xlu0 }
 0x97f   : > { %5545 = vst.msk [vmem:[%s8366_s26 + $0x370] sm:$0xff] %vm525_vm0, %v5305_v23 }
 0x980   : > { %v5338_v26 = vpop.trf.xlu1 }
 0x981   : > { %5562 = vst.msk [vmem:[%s8366_s26 + $0x3f8] sm:$0xff] %vm525_vm0, %v5338_v26 }
 0x982   : > { %v5306_v48 = vpop.trf.xlu0 }
 0x983   : > { %5546 = vst.msk [vmem:[%s8366_s26 + $0x378] sm:$0xff] %vm525_vm0, %v5306_v48 }
 0x984   : > { %v5387_v31 = vpop.trf.xlu1 }
 0x985   : > { %5579 = vst.msk [vmem:[%s8366_s26 + $0x480] sm:$0xff] %vm525_vm0, %v5387_v31 }
 0x986   : > { %v5355_v33 = vpop.trf.xlu0 }
 0x987   : > { %5563 = vst.msk [vmem:[%s8366_s26 + $0x400] sm:$0xff] %vm525_vm0, %v5355_v33 }
 0x988   : > { %v5388_v35 = vpop.trf.xlu1 }
 0x989   : > { %5580 = vst.msk [vmem:[%s8366_s26 + $0x488] sm:$0xff] %vm525_vm0, %v5388_v35 }
 0x98a   : > { %v5356_v59 = vpop.trf.xlu0 }
 0x98b   : > { %5564 = vst.msk [vmem:[%s8366_s26 + $0x408] sm:$0xff] %vm525_vm0, %v5356_v59 }
 0x98c   : > { %v5389_v4 = vpop.trf.xlu1 }
 0x98d   : > { %5581 = vst.msk [vmem:[%s8366_s26 + $0x490] sm:$0xff] %vm525_vm0, %v5389_v4 }
 0x98e   : > { %v5357_v47 = vpop.trf.xlu0 }
 0x98f   : > { %5565 = vst.msk [vmem:[%s8366_s26 + $0x410] sm:$0xff] %vm525_vm0, %v5357_v47 }
 0x990   : > { %v5390_v42 = vpop.trf.xlu1 }
 0x991   : > { %5582 = vst.msk [vmem:[%s8366_s26 + $0x498] sm:$0xff] %vm525_vm0, %v5390_v42 }
 0x992   : > { %v5358_v45 = vpop.trf.xlu0 }
 0x993   : > { %5566 = vst.msk [vmem:[%s8366_s26 + $0x418] sm:$0xff] %vm525_vm0, %v5358_v45 }
 0x994   : > { %v5391_v24 = vpop.trf.xlu1 }
 0x995   : > { %5583 = vst.msk [vmem:[%s8366_s26 + $0x4a0] sm:$0xff] %vm525_vm0, %v5391_v24 }
 0x996   : > { %v5359_v49 = vpop.trf.xlu0 }
 0x997   : > { %5567 = vst.msk [vmem:[%s8366_s26 + $0x420] sm:$0xff] %vm525_vm0, %v5359_v49 }
 0x998   : > { %v5392_v50 = vpop.trf.xlu1 }
 0x999   : > { %5584 = vst.msk [vmem:[%s8366_s26 + $0x4a8] sm:$0xff] %vm525_vm0, %v5392_v50 }
 0x99a   : > { %v5360_v9 = vpop.trf.xlu0 }
 0x99b   : > { %5568 = vst.msk [vmem:[%s8366_s26 + $0x428] sm:$0xff] %vm525_vm0, %v5360_v9 }
 0x99c   : > { %v5393_v52 = vpop.trf.xlu1 }
 0x99d   : > { %5585 = vst.msk [vmem:[%s8366_s26 + $0x4b0] sm:$0xff] %vm525_vm0, %v5393_v52 }
 0x99e   : > { %v5361_v44 = vpop.trf.xlu0 }
 0x99f   : > { %5569 = vst.msk [vmem:[%s8366_s26 + $0x430] sm:$0xff] %vm525_vm0, %v5361_v44 }
 0x9a0   : > { %v5394_v54 = vpop.trf.xlu1 }
 0x9a1   : > { %5586 = vst.msk [vmem:[%s8366_s26 + $0x4b8] sm:$0xff] %vm525_vm0, %v5394_v54 }
 0x9a2   : > { %v5362_v55 = vpop.trf.xlu0 }
 0x9a3   : > { %5570 = vst.msk [vmem:[%s8366_s26 + $0x438] sm:$0xff] %vm525_vm0, %v5362_v55 }
 0x9a4   : > { %v5395_v36 = vpop.trf.xlu1 }
 0x9a5   : > { %5587 = vst.msk [vmem:[%s8366_s26 + $0x4c0] sm:$0xff] %vm525_vm0, %v5395_v36 }
 0x9a6   : > { %v5363_v60 = vpop.trf.xlu0 }
 0x9a7   : > { %5571 = vst.msk [vmem:[%s8366_s26 + $0x440] sm:$0xff] %vm525_vm0, %v5363_v60 }
 0x9a8   : > { %v5396_v5 = vpop.trf.xlu1 }
 0x9a9   : > { %5588 = vst.msk [vmem:[%s8366_s26 + $0x4c8] sm:$0xff] %vm525_vm0, %v5396_v5 }
 0x9aa   : > { %v5364_v10 = vpop.trf.xlu0 }
 0x9ab   : > { %5572 = vst.msk [vmem:[%s8366_s26 + $0x448] sm:$0xff] %vm525_vm0, %v5364_v10 }
 0x9ac   : > { %v5397_v63 = vpop.trf.xlu1 }
 0x9ad   : > { %5589 = vst.msk [vmem:[%s8366_s26 + $0x4d0] sm:$0xff] %vm525_vm0, %v5397_v63 }
 0x9ae   : > { %v5365_v57 = vpop.trf.xlu0 }
 0x9af   : > { %5573 = vst.msk [vmem:[%s8366_s26 + $0x450] sm:$0xff] %vm525_vm0, %v5365_v57 }
 0x9b0   : > { %v5398_v0 = vpop.trf.xlu1 }
 0x9b1   : > { %5590 = vst.msk [vmem:[%s8366_s26 + $0x4d8] sm:$0xff] %vm525_vm0, %v5398_v0 }
 0x9b2   : > { %v5366_v16 = vpop.trf.xlu0 }
 0x9b3   : > { %5574 = vst.msk [vmem:[%s8366_s26 + $0x458] sm:$0xff] %vm525_vm0, %v5366_v16 }
 0x9b4   : > { %v5399_v3 = vpop.trf.xlu1 }
 0x9b5   : > { %5591 = vst.msk [vmem:[%s8366_s26 + $0x4e0] sm:$0xff] %vm525_vm0, %v5399_v3 }
 0x9b6   : > { %v5367_v14 = vpop.trf.xlu0 }
 0x9b7   : > { %5575 = vst.msk [vmem:[%s8366_s26 + $0x460] sm:$0xff] %vm525_vm0, %v5367_v14 }
 0x9b8   : > { %v5400_v25 = vpop.trf.xlu1 }
 0x9b9   : > { %5592 = vst.msk [vmem:[%s8366_s26 + $0x4e8] sm:$0xff] %vm525_vm0, %v5400_v25 }
 0x9ba   : > { %v5368_v38 = vpop.trf.xlu0 }
 0x9bb   : > { %5576 = vst.msk [vmem:[%s8366_s26 + $0x468] sm:$0xff] %vm525_vm0, %v5368_v38 }
 0x9bc   : > { %v5401_v43 = vpop.trf.xlu1 }
 0x9bd   : > { %5593 = vst.msk [vmem:[%s8366_s26 + $0x4f0] sm:$0xff] %vm525_vm0, %v5401_v43 }
 0x9be   : > { %v5369_v46 = vpop.trf.xlu0 }
 0x9bf   : > { %5577 = vst.msk [vmem:[%s8366_s26 + $0x470] sm:$0xff] %vm525_vm0, %v5369_v46 }
 0x9c0   : > { %v5402_v51 = vpop.trf.xlu1 }
 0x9c1   : > { %5594 = vst.msk [vmem:[%s8366_s26 + $0x4f8] sm:$0xff] %vm525_vm0, %v5402_v51 }
 0x9c2   : > { %v5370_v56 = vpop.trf.xlu0 }
 0x9c3   : > { %5578 = vst.msk [vmem:[%s8366_s26 + $0x478] sm:$0xff] %vm525_vm0, %v5370_v56 }
 0x9c6   : > { %v5419_v28 = vpop.trf.xlu0 }
 0x9c7   : > { %5595 = vst.msk [vmem:[%s8366_s26 + $0x500] sm:$0xff] %vm525_vm0, %v5419_v28 }
 0x9ca   : > { %v5420_v29 = vpop.trf.xlu0 }
 0x9cb   : > { %5596 = vst.msk [vmem:[%s8366_s26 + $0x508] sm:$0xff] %vm525_vm0, %v5420_v29 }
 0x9ce   : > { %v5421_v2 = vpop.trf.xlu0 }
 0x9cf   : > { %5597 = vst.msk [vmem:[%s8366_s26 + $0x510] sm:$0xff] %vm525_vm0, %v5421_v2 }
 0x9d2   : > { %v5422_v37 = vpop.trf.xlu0 }
 0x9d3   : > { %5598 = vst.msk [vmem:[%s8366_s26 + $0x518] sm:$0xff] %vm525_vm0, %v5422_v37 }
 0x9d6   : > { %v5423_v39 = vpop.trf.xlu0 }
 0x9d7   : > { %5599 = vst.msk [vmem:[%s8366_s26 + $0x520] sm:$0xff] %vm525_vm0, %v5423_v39 }
 0x9da   : > { %v5424_v40 = vpop.trf.xlu0 }
 0x9db   : > { %5600 = vst.msk [vmem:[%s8366_s26 + $0x528] sm:$0xff] %vm525_vm0, %v5424_v40 }
 0x9de   : > { %v5425_v6 = vpop.trf.xlu0 }
 0x9df   : > { %5601 = vst.msk [vmem:[%s8366_s26 + $0x530] sm:$0xff] %vm525_vm0, %v5425_v6 }
 0x9e2   : > { %v5426_v58 = vpop.trf.xlu0 }
 0x9e3   : > { %5602 = vst.msk [vmem:[%s8366_s26 + $0x538] sm:$0xff] %vm525_vm0, %v5426_v58 }
 0x9e6   : > { %v5427_v61 = vpop.trf.xlu0 }
 0x9e7   : > { %5603 = vst.msk [vmem:[%s8366_s26 + $0x540] sm:$0xff] %vm525_vm0, %v5427_v61 }
 0x9ea   : > { %v5428_v41 = vpop.trf.xlu0 }
 0x9eb   : > { %5604 = vst.msk [vmem:[%s8366_s26 + $0x548] sm:$0xff] %vm525_vm0, %v5428_v41 }
 0x9ee   : > { %v5429_v27 = vpop.trf.xlu0 }
 0x9ef   : > { %5605 = vst.msk [vmem:[%s8366_s26 + $0x550] sm:$0xff] %vm525_vm0, %v5429_v27 }
 0x9f2   : > { %v5430_v30 = vpop.trf.xlu0 }
 0x9f3   : > { %5606 = vst.msk [vmem:[%s8366_s26 + $0x558] sm:$0xff] %vm525_vm0, %v5430_v30 }
 0x9f6   : > { %v5431_v1 = vpop.trf.xlu0 }
 0x9f7   : > { %5607 = vst.msk [vmem:[%s8366_s26 + $0x560] sm:$0xff] %vm525_vm0, %v5431_v1 }
 0x9fa   : > { %v5432_v34 = vpop.trf.xlu0 }
 0x9fb   : > { %5608 = vst.msk [vmem:[%s8366_s26 + $0x568] sm:$0xff] %vm525_vm0, %v5432_v34 }
 0x9fe   : > { %v5433_v13 = vpop.trf.xlu0 }
 0x9ff   : > { %5609 = vst.msk [vmem:[%s8366_s26 + $0x570] sm:$0xff] %vm525_vm0, %v5433_v13 }
 0xa02   : > { %v5434_v19 = vpop.trf.xlu0 }
 0xa03   : > { %5610 = vst.msk [vmem:[%s8366_s26 + $0x578] sm:$0xff] %vm525_vm0, %v5434_v19 }
 0xa04 PF: > { %s18_s27 = sadd.s32 1, %s6080_s27  }
 0xa05   : > { %p15_p4 = scmp.ge.s32.totalorder %s18_s27, 4  }
 0xa07   :  { %17 = sbr.rel (!%p15_p4) target bundleno = 1 (0x1), region = 88 }

</bundles_post_ra>
